<compile_context>
chip_gen: v7x
topology: tpu7x:2x2x1
jax: 0.10.0
libtpu: 0.0.40
codegen_flags: <defaults>
</compile_context>

<pallas_src>
import jax
import jax.numpy as jnp
from jax import lax
from jax.experimental import pallas as pl
from jax.experimental.pallas import tpu as pltpu

_HALO = 16      # halo quad-rows appended per tile (supports typical kernel sizes)


def _round_up(x, m):
    return (x + m - 1) // m * m


def _conv_out_len(n, k):
    # PyTorch Conv1d(stride=2, padding=k//2) output length.
    return (n + 2 * (k // 2) - k) // 2 + 1


def _pack_pairs(weight, bias, c_in_p, c_half_p):
    """Layer-1 weights: (C_out2, C_in, K) -> (ceil(K/2), 2*C_in_p, 2*c_half_p).

    Row block j stacks taps (2j, 2j+1) over C_in_p inputs; columns hold the GLU
    value half then gate half, each padded to c_half_p (lane aligned)."""
    c_out2, c_in, k = weight.shape
    c_half = c_out2 // 2
    n_pairs = (k + 1) // 2
    w = jnp.pad(weight, ((0, 0), (0, c_in_p - c_in), (0, 2 * n_pairs - k)))
    w = w.reshape(c_out2, c_in_p, n_pairs, 2)
    w = jnp.transpose(w, (2, 3, 1, 0)).reshape(n_pairs, 2 * c_in_p, c_out2)
    w_mat = jnp.zeros((n_pairs, 2 * c_in_p, 2 * c_half_p), jnp.float32)
    w_mat = w_mat.at[..., :c_half].set(w[..., :c_half])
    w_mat = w_mat.at[..., c_half_p:c_half_p + c_half].set(w[..., c_half:])
    b_vec = jnp.zeros((1, 2 * c_half_p), jnp.float32)
    b_vec = b_vec.at[0, :c_half].set(bias[:c_half])
    b_vec = b_vec.at[0, c_half_p:c_half_p + c_half].set(bias[c_half:])
    return w_mat, b_vec


def _pack_taps(weight, bias, c_in_p, c_half_p):
    """Layer-2 weights: (C_out2, C_in, K) -> (K, C_in_p, 2*c_half_p)."""
    c_out2, c_in, k = weight.shape
    c_half = c_out2 // 2
    w = jnp.pad(weight, ((0, 0), (0, c_in_p - c_in), (0, 0)))
    w = jnp.transpose(w, (2, 1, 0))                      # (K, C_in_p, C_out2)
    w_mat = jnp.zeros((k, c_in_p, 2 * c_half_p), jnp.float32)
    w_mat = w_mat.at[..., :c_half].set(w[..., :c_half])
    w_mat = w_mat.at[..., c_half_p:c_half_p + c_half].set(w[..., c_half:])
    b_vec = jnp.zeros((1, 2 * c_half_p), jnp.float32)
    b_vec = b_vec.at[0, :c_half].set(bias[:c_half])
    b_vec = b_vec.at[0, c_half_p:c_half_p + c_half].set(bias[c_half:])
    return w_mat, b_vec


def conv1d_subsampler_fused(src_tokens, params, *, t_tile=128,
                            compute_dtype=jnp.bfloat16):
    """Fused (Conv1d s=2 + GLU) x 2 in one pallas_call.

    src_tokens: (B, T, C_in).  Returns (y, T2, c_out) where y is
    (B, n_tiles*t_tile, c2_half_p) with valid data in [:, :T2, :c_out]."""
    assert len(params) == 2, "fused kernel implements the default 2-layer stack"
    # TODO(synk): generalize to other layer counts by chaining fused / 1-layer calls.
    (w1, b1), (w2, b2) = params
    B, T, C_in = src_tokens.shape
    C1out2, C_in_w, K1 = w1.shape
    C2out2, C2in_w, K2 = w2.shape
    assert C_in_w == C_in and C2in_w == C1out2 // 2

    p1, p2 = K1 // 2, K2 // 2
    n_pairs1 = (K1 + 1) // 2
    n_pairs2 = (K2 + 1) // 2
    T1 = _conv_out_len(T, K1)
    T2 = _conv_out_len(T1, K2)
    c1h, c2h = C1out2 // 2, C2out2 // 2

    # Lane / MXU alignment: contractions (2*C_in_p, c1h_p) end up multiples of
    # 256 for the v6e/v7x 2x256x256 MXU; output widths multiples of 128.
    C_in_p = _round_up(C_in, 128)
    c1h_p = _round_up(c1h, 256)
    c2h_p = _round_up(c2h, 128)

    # ---- tile size (layer-2 output rows per grid step) ----------------------
    assert t_tile % 16 == 0 and t_tile > 0
    t_tile = max(16, min(t_tile, _round_up(T2, 16)))
    n_tiles = -(-T2 // t_tile)
    if B * n_tiles < 2 and T2 > 16:          # keep both v7x TensorCores busy
        t_tile = _round_up(-(-T2 // 2), 16)
        n_tiles = -(-T2 // t_tile)
    t2_pad = n_tiles * t_tile
    n_v = t_tile + n_pairs2 - 1              # layer-1 output row-pairs per tile
    assert n_pairs1 // 2 + n_pairs2 - 1 <= _HALO, "kernel sizes too large for halo"

    # ---- pack weights (const-folds under jit when params are static) --------
    w1_mat, b1_vec = _pack_pairs(w1, b1, C_in_p, c1h_p)
    w2_mat, b2_vec = _pack_taps(w2, b2, c1h_p, c2h_p)
    w1_mat = w1_mat.astype(compute_dtype)
    w2_mat = w2_mat.astype(compute_dtype)

    # ---- activations: zero-pad time, fold 4 consecutive samples per row -----
    # quad row q = padded samples [4q..4q+3]; layer-1 "extended" output row e
    # (= layer-1 row + p2) reads padded samples [2e .. 2e+K1-1], so both output
    # parities read only contiguous half-row / row slices of the quad layout.
    F = p1 + 2 * p2                          # front zero pad
    q_total = max(n_tiles * t_tile + _HALO, -(-(F + T) // 4))
    x = jnp.pad(src_tokens.astype(compute_dtype),
                ((0, 0), (F, 4 * q_total - F - T), (0, C_in_p - C_in)))
    x_quad = x.reshape(B, q_total, 4 * C_in_p)

    CC = 2 * C_in_p
    halo_mult = t_tile // _HALO
    out_dtype = src_tokens.dtype

    def kernel(xm_ref, xh_ref, w1_ref, b1_ref, w2_ref, b2_ref, o_ref, slab_ref):
        t0 = pl.program_id(1) * t_tile

        # assemble the quad slab (main tile + halo) -> contiguous rows for taps
        slab_ref[0:t_tile, :] = xm_ref[...]
        slab_ref[t_tile:t_tile + _HALO, :] = xh_ref[...]

        # ---- layer 1: even / odd output rows as tap-pair MXU matmuls --------
        def tap1(row_off, half, j):
            return jnp.dot(
                slab_ref[row_off:row_off + n_v, half * CC:(half + 1) * CC],
                w1_ref[j], preferred_element_type=jnp.float32)

        acc_e = tap1(0, 0, 0)
        acc_o = tap1((0 + 1) // 2, (0 + 1) % 2, 0)
        for j in range(1, n_pairs1):
            acc_e = acc_e + tap1(j // 2, j % 2, j)
            acc_o = acc_o + tap1((j + 1) // 2, (j + 1) % 2, j)
        acc_e = acc_e + b1_ref[...]
        acc_o = acc_o + b1_ref[...]
        inter_e = acc_e[:, :c1h_p] * jax.nn.sigmoid(acc_e[:, c1h_p:])
        inter_o = acc_o[:, :c1h_p] * jax.nn.sigmoid(acc_o[:, c1h_p:])

        # Zero layer-1 rows outside [0, T1): they are layer-2's implicit zero
        # padding (GLU(bias) != 0 would otherwise leak into valid outputs).
        v = lax.broadcasted_iota(jnp.int32, (n_v, 1), 0)
        r1_e = 2 * t0 + 2 * v - p2
        r1_o = r1_e + 1
        inter_e = jnp.where((r1_e >= 0) & (r1_e < T1), inter_e, 0.0)
        inter_o = jnp.where((r1_o >= 0) & (r1_o < T1), inter_o, 0.0)
        inter_e = inter_e.astype(compute_dtype)
        inter_o = inter_o.astype(compute_dtype)

        # ---- layer 2: stride-2 taps = contiguous row windows of the parity-
        # split intermediate, which never leaves VMEM ---------------------------
        acc2 = jnp.dot(inter_e[0:t_tile, :], w2_ref[0],
                       preferred_element_type=jnp.float32)
        for k in range(1, K2):
            src = inter_e if k % 2 == 0 else inter_o
            acc2 = acc2 + jnp.dot(src[k // 2:k // 2 + t_tile, :], w2_ref[k],
                                  preferred_element_type=jnp.float32)
        acc2 = acc2 + b2_ref[...]
        y = acc2[:, :c2h_p] * jax.nn.sigmoid(acc2[:, c2h_p:])

        # zero rows past the true output length (only the last tile has any)
        t2 = t0 + lax.broadcasted_iota(jnp.int32, (t_tile, 1), 0)
        y = jnp.where(t2 < T2, y, 0.0)
        o_ref[...] = y.astype(o_ref.dtype)

    # per-generation VMEM budget: ~96 MiB on v5e/v6e (128 MiB VMEM), ~48 MiB on v7x
    try:
        vmem_cap = pltpu.get_tpu_info().vmem_capacity_bytes
        vmem_limit = min(int(vmem_cap) * 3 // 4, 112 * 1024 * 1024)
    except Exception:
        vmem_limit = 64 * 1024 * 1024

    y = pl.pallas_call(
        kernel,
        out_shape=jax.ShapeDtypeStruct((B, t2_pad, c2h_p), out_dtype),
        grid_spec=pltpu.PrefetchScalarGridSpec(
            num_scalar_prefetch=0,
            grid=(B, n_tiles),
            in_specs=[
                # main quad-slab tile: quad rows [t*t_tile, (t+1)*t_tile)
                pl.BlockSpec((None, t_tile, 4 * C_in_p), lambda b, t: (b, t, 0)),
                # halo: _HALO quad rows starting right after the main tile
                pl.BlockSpec((None, _HALO, 4 * C_in_p),
                             lambda b, t: (b, (t + 1) * halo_mult, 0)),
                # weights / biases: constant index maps -> fetched once, stay
                # VMEM resident across the whole grid.
                # TODO(synk): for LLM-sized out_channels add an output-channel
                # grid axis for w2/b2/out (indexed only by that axis, single
                # buffered) so the weight slab fits v7x's 64 MiB VMEM.
                pl.BlockSpec((n_pairs1, 2 * C_in_p, 2 * c1h_p),
                             lambda b, t: (0, 0, 0)),
                pl.BlockSpec((1, 2 * c1h_p), lambda b, t: (0, 0)),
                pl.BlockSpec((K2, c1h_p, 2 * c2h_p), lambda b, t: (0, 0, 0)),
                pl.BlockSpec((1, 2 * c2h_p), lambda b, t: (0, 0)),
            ],
            out_specs=pl.BlockSpec((None, t_tile, c2h_p), lambda b, t: (b, t, 0)),
            scratch_shapes=[
                pltpu.VMEM((t_tile + _HALO, 4 * C_in_p), compute_dtype)],
        ),
        compiler_params=pltpu.CompilerParams(
            dimension_semantics=("parallel", "parallel"),
            vmem_limit_bytes=vmem_limit),
    )(x_quad, x_quad, w1_mat, b1_vec, w2_mat, b2_vec)
    return y, T2, c2h


def get_out_seq_lens(in_seq_lens, n_layers):
    # scalar glue (matches Conv1dSubsampler.get_out_seq_lens_tensor)
    out = in_seq_lens
    for _ in range(n_layers):
        out = jnp.floor((out.astype(jnp.float32) - 1.0) / 2.0 + 1.0).astype(jnp.int32)
    return out


def conv1d_subsampler_forward(src_tokens, src_lengths, params, *, t_tile=128,
                              compute_dtype=jnp.bfloat16):
    """src_tokens: (B, T, C_in), src_lengths: (B,) int32.
    Returns x of shape (T_out, B, out_channels) and out_seq_lens (B,)."""
    y, t2, c_out = conv1d_subsampler_fused(src_tokens, params, t_tile=t_tile,
                                           compute_dtype=compute_dtype)
    # TODO(synk): fold this final (B,T,C)->(T,B,C) transpose + crop into the
    # kernel's out_specs (needs a size-1 second-minor output block in Mosaic).
    x = jnp.transpose(y[:, :t2, :c_out], (1, 0, 2))
    return x, get_out_seq_lens(src_lengths, len(params))


def init_params(key, in_channels, mid_channels, out_channels, kernel_sizes=(3, 3)):
    """Deterministic Conv1d param init (uniform, Kaiming-style bound like torch)."""
    n_layers = len(kernel_sizes)
    params = []
    for i, k in enumerate(kernel_sizes):
        c_in = in_channels if i == 0 else mid_channels // 2
        c_out = mid_channels if i < n_layers - 1 else out_channels * 2
        key, kw, kb = jax.random.split(key, 3)
        bound = 1.0 / float(c_in * k) ** 0.5
        w = jax.random.uniform(kw, (c_out, c_in, k), jnp.float32, -bound, bound)
        b = jax.random.uniform(kb, (c_out,), jnp.float32, -bound, bound)
        params.append((w, b))
    return params


def reference_forward(src_tokens, src_lengths, params):
    """Pure-JAX reference mirroring the PyTorch forward (NCT conv + GLU)."""
    x = jnp.transpose(src_tokens, (0, 2, 1))  # (B, C, T)
    for (w, b) in params:
        k = w.shape[-1]
        x = lax.conv_general_dilated(
            x, w, window_strides=(2,), padding=[(k // 2, k // 2)],
            dimension_numbers=("NCH", "OIH", "NCH"))
        x = x + b[None, :, None]
        c = x.shape[1] // 2
        x = x[:, :c, :] * jax.nn.sigmoid(x[:, c:, :])
    x = jnp.transpose(x, (2, 0, 1))  # (T_out, B, C)
    return x, get_out_seq_lens(src_lengths, len(params))


if __name__ == "__main__":
    key = jax.random.PRNGKey(0)
    B, T = 2, 16
    in_ch, mid_ch, out_ch = 8, 16, 16

    key, k_x, k_p = jax.random.split(key, 3)
    src_tokens = jax.random.normal(k_x, (B, T, in_ch), jnp.float32)
    src_lengths = jnp.array([16, 12], dtype=jnp.int32)
    params = init_params(k_p, in_ch, mid_ch, out_ch, kernel_sizes=(3, 3))

    ref, ref_lens = reference_forward(src_tokens, src_lengths, params)

    # strict f32 path
    out, out_lens = conv1d_subsampler_forward(src_tokens, src_lengths, params,
                                              t_tile=16,
                                              compute_dtype=jnp.float32)
    out = jax.block_until_ready(out)
    out_lens = jax.block_until_ready(out_lens)
    assert out.shape == ref.shape, (out.shape, ref.shape)
    assert jnp.allclose(out, ref, atol=1e-4, rtol=1e-4), \
        float(jnp.max(jnp.abs(out - ref)))
    assert jnp.array_equal(out_lens, ref_lens)

    # default bf16 MXU path (f32 accumulate + epilogue), looser tolerance
    out_bf16, _ = conv1d_subsampler_forward(src_tokens, src_lengths, params,
                                            t_tile=16)
    out_bf16 = jax.block_until_ready(out_bf16)
    assert out_bf16.shape == ref.shape
    assert float(jnp.max(jnp.abs(out_bf16.astype(jnp.float32) - ref))) < 7.5e-2

    # multi-tile / ragged case: T2 = 33 -> 3 tiles of 16 (last one partial);
    # exercises the quad halo across tile boundaries plus both row masks.
    B2, T2_in = 2, 131
    key, k_x2 = jax.random.split(key)
    src2 = jax.random.normal(k_x2, (B2, T2_in, in_ch), jnp.float32)
    len2 = jnp.array([131, 77], dtype=jnp.int32)
    ref2, ref_lens2 = reference_forward(src2, len2, params)
    out2, out_lens2 = conv1d_subsampler_forward(src2, len2, params, t_tile=16,
                                                compute_dtype=jnp.float32)
    out2 = jax.block_until_ready(out2)
    assert out2.shape == ref2.shape, (out2.shape, ref2.shape)
    assert jnp.allclose(out2, ref2, atol=1e-4, rtol=1e-4), \
        float(jnp.max(jnp.abs(out2 - ref2)))
    assert jnp.array_equal(jax.block_until_ready(out_lens2), ref_lens2)

    # non-default kernel sizes (exercises the general tap/pair packing)
    key, k_p3 = jax.random.split(key)
    params3 = init_params(k_p3, in_ch, mid_ch, out_ch, kernel_sizes=(5, 3))
    ref3, _ = reference_forward(src2, len2, params3)
    out3, _ = conv1d_subsampler_forward(src2, len2, params3, t_tile=16,
                                        compute_dtype=jnp.float32)
    out3 = jax.block_until_ready(out3)
    assert out3.shape == ref3.shape, (out3.shape, ref3.shape)
    assert jnp.allclose(out3, ref3, atol=1e-4, rtol=1e-4), \
        float(jnp.max(jnp.abs(out3 - ref3)))

    print("KERNEL_OK")
</pallas_src>

<mosaic_0001>
module attributes {stable_mosaic.version = 11 : i64} {
  func.func @kernel(%arg0: i32, %arg1: i32, %arg2: memref<1x16x512xf32, #tpu.memory_space<vmem>>, %arg3: memref<1x16x512xf32, #tpu.memory_space<vmem>>, %arg4: memref<2x256x512xf32, #tpu.memory_space<vmem>>, %arg5: memref<1x512xf32, #tpu.memory_space<vmem>>, %arg6: memref<3x256x256xf32, #tpu.memory_space<vmem>>, %arg7: memref<1x256xf32, #tpu.memory_space<vmem>>, %arg8: memref<1x16x128xf32, #tpu.memory_space<vmem>>, %arg9: memref<32x512xf32, #tpu.memory_space<vmem>>) attributes {dimension_semantics = [#tpu.dimension_semantics<parallel>, #tpu.dimension_semantics<parallel>], iteration_bounds = array<i64: 2, 1>, scalar_prefetch = 0 : i64, scratch_operands = 1 : i64, tpu.core_type = #tpu.core_type<tc>, window_params = [{transform_indices = @transform_0, window_bounds = array<i64: 1, 16, 512>}, {transform_indices = @transform_1, window_bounds = array<i64: 1, 16, 512>}, {pipeline_mode = #tpu.pipeline_mode<synchronous>, transform_indices = @transform_2, window_bounds = array<i64: 2, 256, 512>}, {pipeline_mode = #tpu.pipeline_mode<synchronous>, transform_indices = @transform_3, window_bounds = array<i64: 1, 512>}, {pipeline_mode = #tpu.pipeline_mode<synchronous>, transform_indices = @transform_4, window_bounds = array<i64: 3, 256, 256>}, {pipeline_mode = #tpu.pipeline_mode<synchronous>, transform_indices = @transform_5, window_bounds = array<i64: 1, 256>}, {transform_indices = @transform_6, window_bounds = array<i64: 1, 16, 128>}]} {
    %c16_i32 = arith.constant 16 : i32
    %0 = arith.muli %arg1, %c16_i32 : i32
    %c0 = arith.constant 0 : index
    %c0_0 = arith.constant 0 : index
    %c0_1 = arith.constant 0 : index
    %1 = vector.load %arg2[%c0, %c0_0, %c0_1] : memref<1x16x512xf32, #tpu.memory_space<vmem>>, vector<1x16x512xf32>
    %2 = vector.shape_cast %1 : vector<1x16x512xf32> to vector<16x512xf32>
    %c0_2 = arith.constant 0 : index
    %c0_3 = arith.constant 0 : index
    %3 = vector.load %arg9[%c0_2, %c0_3] : memref<32x512xf32, #tpu.memory_space<vmem>>, vector<16x512xf32>
    tpu.vector_store %arg9[%c0_2, %c0_3], %2 {strides = array<i32>} : memref<32x512xf32, #tpu.memory_space<vmem>>, vector<16x512xf32>,
    %c0_4 = arith.constant 0 : index
    %c0_5 = arith.constant 0 : index
    %c0_6 = arith.constant 0 : index
    %4 = vector.load %arg3[%c0_4, %c0_5, %c0_6] : memref<1x16x512xf32, #tpu.memory_space<vmem>>, vector<1x16x512xf32>
    %5 = vector.shape_cast %4 : vector<1x16x512xf32> to vector<16x512xf32>
    %c16 = arith.constant 16 : index
    %c0_7 = arith.constant 0 : index
    %6 = vector.load %arg9[%c16, %c0_7] : memref<32x512xf32, #tpu.memory_space<vmem>>, vector<16x512xf32>
    tpu.vector_store %arg9[%c16, %c0_7], %5 {strides = array<i32>} : memref<32x512xf32, #tpu.memory_space<vmem>>, vector<16x512xf32>,
    %c0_8 = arith.constant 0 : index
    %c0_9 = arith.constant 0 : index
    %7 = vector.load %arg9[%c0_8, %c0_9] : memref<32x512xf32, #tpu.memory_space<vmem>>, vector<17x256xf32>
    %c0_10 = arith.constant 0 : index
    %c0_11 = arith.constant 0 : index
    %c0_12 = arith.constant 0 : index
    %8 = vector.load %arg4[%c0_10, %c0_11, %c0_12] : memref<2x256x512xf32, #tpu.memory_space<vmem>>, vector<1x256x512xf32>
    %9 = vector.shape_cast %8 : vector<1x256x512xf32> to vector<256x512xf32>
    %cst = arith.constant dense<0.000000e+00> : vector<17x512xf32>
    %10 = tpu.matmul %7, %9, %cst {dimension_numbers = #tpu.dot_dimension_numbers<[1], [0], [0], [1], [0, 0, 1, 1], [], []>} : vector<17x256xf32>, vector<256x512xf32>, vector<17x512xf32> -> vector<17x512xf32>
    %c0_13 = arith.constant 0 : index
    %c256 = arith.constant 256 : index
    %11 = vector.load %arg9[%c0_13, %c256] : memref<32x512xf32, #tpu.memory_space<vmem>>, vector<17x256xf32>
    %c0_14 = arith.constant 0 : index
    %c0_15 = arith.constant 0 : index
    %c0_16 = arith.constant 0 : index
    %12 = vector.load %arg4[%c0_14, %c0_15, %c0_16] : memref<2x256x512xf32, #tpu.memory_space<vmem>>, vector<1x256x512xf32>
    %13 = vector.shape_cast %12 : vector<1x256x512xf32> to vector<256x512xf32>
    %cst_17 = arith.constant dense<0.000000e+00> : vector<17x512xf32>
    %14 = tpu.matmul %11, %13, %cst_17 {dimension_numbers = #tpu.dot_dimension_numbers<[1], [0], [0], [1], [0, 0, 1, 1], [], []>} : vector<17x256xf32>, vector<256x512xf32>, vector<17x512xf32> -> vector<17x512xf32>
    %c0_18 = arith.constant 0 : index
    %c256_19 = arith.constant 256 : index
    %15 = vector.load %arg9[%c0_18, %c256_19] : memref<32x512xf32, #tpu.memory_space<vmem>>, vector<17x256xf32>
    %c1 = arith.constant 1 : index
    %c0_20 = arith.constant 0 : index
    %c0_21 = arith.constant 0 : index
    %16 = vector.load %arg4[%c1, %c0_20, %c0_21] : memref<2x256x512xf32, #tpu.memory_space<vmem>>, vector<1x256x512xf32>
    %17 = vector.shape_cast %16 : vector<1x256x512xf32> to vector<256x512xf32>
    %cst_22 = arith.constant dense<0.000000e+00> : vector<17x512xf32>
    %18 = tpu.matmul %15, %17, %cst_22 {dimension_numbers = #tpu.dot_dimension_numbers<[1], [0], [0], [1], [0, 0, 1, 1], [], []>} : vector<17x256xf32>, vector<256x512xf32>, vector<17x512xf32> -> vector<17x512xf32>
    %19 = arith.addf %10, %18 : vector<17x512xf32>
    %c1_23 = arith.constant 1 : index
    %c0_24 = arith.constant 0 : index
    %20 = vector.load %arg9[%c1_23, %c0_24] : memref<32x512xf32, #tpu.memory_space<vmem>>, vector<17x256xf32>
    %c1_25 = arith.constant 1 : index
    %c0_26 = arith.constant 0 : index
    %c0_27 = arith.constant 0 : index
    %21 = vector.load %arg4[%c1_25, %c0_26, %c0_27] : memref<2x256x512xf32, #tpu.memory_space<vmem>>, vector<1x256x512xf32>
    %22 = vector.shape_cast %21 : vector<1x256x512xf32> to vector<256x512xf32>
    %cst_28 = arith.constant dense<0.000000e+00> : vector<17x512xf32>
    %23 = tpu.matmul %20, %22, %cst_28 {dimension_numbers = #tpu.dot_dimension_numbers<[1], [0], [0], [1], [0, 0, 1, 1], [], []>} : vector<17x256xf32>, vector<256x512xf32>, vector<17x512xf32> -> vector<17x512xf32>
    %24 = arith.addf %14, %23 : vector<17x512xf32>
    %c0_29 = arith.constant 0 : index
    %c0_30 = arith.constant 0 : index
    %25 = vector.load %arg5[%c0_29, %c0_30] : memref<1x512xf32, #tpu.memory_space<vmem>>, vector<1x512xf32>
    %26 = vector.broadcast %25 : vector<1x512xf32> to vector<17x512xf32>
    %27 = arith.addf %19, %26 : vector<17x512xf32>
    %c0_31 = arith.constant 0 : index
    %c0_32 = arith.constant 0 : index
    %28 = vector.load %arg5[%c0_31, %c0_32] : memref<1x512xf32, #tpu.memory_space<vmem>>, vector<1x512xf32>
    %29 = vector.broadcast %28 : vector<1x512xf32> to vector<17x512xf32>
    %30 = arith.addf %24, %29 : vector<17x512xf32>
    %31 = vector.extract_strided_slice %27 {offsets = [0, 0], sizes = [17, 256], strides = [1, 1]} : vector<17x512xf32> to vector<17x256xf32>
    %32 = vector.extract_strided_slice %27 {offsets = [0, 256], sizes = [17, 256], strides = [1, 1]} : vector<17x512xf32> to vector<17x256xf32>
    %33 = arith.negf %32 : vector<17x256xf32>
    %34 = math.exp %33 : vector<17x256xf32>
    %cst_33 = arith.constant 1.000000e+00 : f32
    %35 = vector.broadcast %cst_33 : f32 to vector<17x256xf32>
    %36 = arith.addf %35, %34 : vector<17x256xf32>
    %37 = arith.divf %35, %36 : vector<17x256xf32>
    %38 = arith.mulf %31, %37 : vector<17x256xf32>
    %39 = vector.extract_strided_slice %30 {offsets = [0, 0], sizes = [17, 256], strides = [1, 1]} : vector<17x512xf32> to vector<17x256xf32>
    %40 = vector.extract_strided_slice %30 {offsets = [0, 256], sizes = [17, 256], strides = [1, 1]} : vector<17x512xf32> to vector<17x256xf32>
    %41 = arith.negf %40 : vector<17x256xf32>
    %42 = math.exp %41 : vector<17x256xf32>
    %cst_34 = arith.constant 1.000000e+00 : f32
    %43 = vector.broadcast %cst_34 : f32 to vector<17x256xf32>
    %44 = arith.addf %43, %42 : vector<17x256xf32>
    %45 = arith.divf %43, %44 : vector<17x256xf32>
    %46 = arith.mulf %39, %45 : vector<17x256xf32>
    %47 = tpu.iota {dimensions = array<i32: 0>} : vector<17x1xi32>
    %c2_i32 = arith.constant 2 : i32
    %48 = arith.muli %c2_i32, %0 : i32
    %c2_i32_35 = arith.constant 2 : i32
    %49 = vector.broadcast %c2_i32_35 : i32 to vector<17x1xi32>
    %50 = arith.muli %49, %47 : vector<17x1xi32>
    %51 = vector.broadcast %48 : i32 to vector<17x1xi32>
    %52 = arith.addi %51, %50 : vector<17x1xi32>
    %c1_i32 = arith.constant 1 : i32
    %53 = vector.broadcast %c1_i32 : i32 to vector<17x1xi32>
    %54 = arith.subi %52, %53 : vector<17x1xi32>
    %c1_i32_36 = arith.constant 1 : i32
    %55 = vector.broadcast %c1_i32_36 : i32 to vector<17x1xi32>
    %56 = arith.addi %54, %55 : vector<17x1xi32>
    %c0_i32 = arith.constant 0 : i32
    %57 = vector.broadcast %c0_i32 : i32 to vector<17x1xi32>
    %58 = arith.cmpi sge, %54, %57 : vector<17x1xi32>
    %c8_i32 = arith.constant 8 : i32
    %59 = vector.broadcast %c8_i32 : i32 to vector<17x1xi32>
    %60 = arith.cmpi slt, %54, %59 : vector<17x1xi32>
    %61 = arith.andi %58, %60 : vector<17x1xi1>
    %cst_37 = arith.constant 0.000000e+00 : f32
    %62 = vector.shape_cast %61 : vector<17x1xi1> to vector<17x1xi1>
    %63 = vector.broadcast %62 : vector<17x1xi1> to vector<17x256xi1>
    %64 = vector.broadcast %cst_37 : f32 to vector<17x256xf32>
    %65 = arith.select %63, %38, %64 : vector<17x256xi1>, vector<17x256xf32>
    %c0_i32_38 = arith.constant 0 : i32
    %66 = vector.broadcast %c0_i32_38 : i32 to vector<17x1xi32>
    %67 = arith.cmpi sge, %56, %66 : vector<17x1xi32>
    %c8_i32_39 = arith.constant 8 : i32
    %68 = vector.broadcast %c8_i32_39 : i32 to vector<17x1xi32>
    %69 = arith.cmpi slt, %56, %68 : vector<17x1xi32>
    %70 = arith.andi %67, %69 : vector<17x1xi1>
    %cst_40 = arith.constant 0.000000e+00 : f32
    %71 = vector.shape_cast %70 : vector<17x1xi1> to vector<17x1xi1>
    %72 = vector.broadcast %71 : vector<17x1xi1> to vector<17x256xi1>
    %73 = vector.broadcast %cst_40 : f32 to vector<17x256xf32>
    %74 = arith.select %72, %46, %73 : vector<17x256xi1>, vector<17x256xf32>
    %75 = vector.extract_strided_slice %65 {offsets = [0, 0], sizes = [16, 256], strides = [1, 1]} : vector<17x256xf32> to vector<16x256xf32>
    %c0_41 = arith.constant 0 : index
    %c0_42 = arith.constant 0 : index
    %c0_43 = arith.constant 0 : index
    %76 = vector.load %arg6[%c0_41, %c0_42, %c0_43] : memref<3x256x256xf32, #tpu.memory_space<vmem>>, vector<1x256x256xf32>
    %77 = vector.shape_cast %76 : vector<1x256x256xf32> to vector<256x256xf32>
    %cst_44 = arith.constant dense<0.000000e+00> : vector<16x256xf32>
    %78 = tpu.matmul %75, %77, %cst_44 {dimension_numbers = #tpu.dot_dimension_numbers<[1], [0], [0], [1], [0, 0, 1, 1], [], []>} : vector<16x256xf32>, vector<256x256xf32>, vector<16x256xf32> -> vector<16x256xf32>
    %79 = vector.extract_strided_slice %74 {offsets = [0, 0], sizes = [16, 256], strides = [1, 1]} : vector<17x256xf32> to vector<16x256xf32>
    %c1_45 = arith.constant 1 : index
    %c0_46 = arith.constant 0 : index
    %c0_47 = arith.constant 0 : index
    %80 = vector.load %arg6[%c1_45, %c0_46, %c0_47] : memref<3x256x256xf32, #tpu.memory_space<vmem>>, vector<1x256x256xf32>
    %81 = vector.shape_cast %80 : vector<1x256x256xf32> to vector<256x256xf32>
    %cst_48 = arith.constant dense<0.000000e+00> : vector<16x256xf32>
    %82 = tpu.matmul %79, %81, %cst_48 {dimension_numbers = #tpu.dot_dimension_numbers<[1], [0], [0], [1], [0, 0, 1, 1], [], []>} : vector<16x256xf32>, vector<256x256xf32>, vector<16x256xf32> -> vector<16x256xf32>
    %83 = arith.addf %78, %82 : vector<16x256xf32>
    %84 = vector.extract_strided_slice %65 {offsets = [1, 0], sizes = [16, 256], strides = [1, 1]} : vector<17x256xf32> to vector<16x256xf32>
    %c2 = arith.constant 2 : index
    %c0_49 = arith.constant 0 : index
    %c0_50 = arith.constant 0 : index
    %85 = vector.load %arg6[%c2, %c0_49, %c0_50] : memref<3x256x256xf32, #tpu.memory_space<vmem>>, vector<1x256x256xf32>
    %86 = vector.shape_cast %85 : vector<1x256x256xf32> to vector<256x256xf32>
    %cst_51 = arith.constant dense<0.000000e+00> : vector<16x256xf32>
    %87 = tpu.matmul %84, %86, %cst_51 {dimension_numbers = #tpu.dot_dimension_numbers<[1], [0], [0], [1], [0, 0, 1, 1], [], []>} : vector<16x256xf32>, vector<256x256xf32>, vector<16x256xf32> -> vector<16x256xf32>
    %88 = arith.addf %83, %87 : vector<16x256xf32>
    %c0_52 = arith.constant 0 : index
    %c0_53 = arith.constant 0 : index
    %89 = vector.load %arg7[%c0_52, %c0_53] : memref<1x256xf32, #tpu.memory_space<vmem>>, vector<1x256xf32>
    %90 = vector.broadcast %89 : vector<1x256xf32> to vector<16x256xf32>
    %91 = arith.addf %88, %90 : vector<16x256xf32>
    %92 = vector.extract_strided_slice %91 {offsets = [0, 0], sizes = [16, 128], strides = [1, 1]} : vector<16x256xf32> to vector<16x128xf32>
    %93 = vector.extract_strided_slice %91 {offsets = [0, 128], sizes = [16, 128], strides = [1, 1]} : vector<16x256xf32> to vector<16x128xf32>
    %94 = arith.negf %93 : vector<16x128xf32>
    %95 = math.exp %94 : vector<16x128xf32>
    %cst_54 = arith.constant 1.000000e+00 : f32
    %96 = vector.broadcast %cst_54 : f32 to vector<16x128xf32>
    %97 = arith.addf %96, %95 : vector<16x128xf32>
    %98 = arith.divf %96, %97 : vector<16x128xf32>
    %99 = arith.mulf %92, %98 : vector<16x128xf32>
    %100 = tpu.iota {dimensions = array<i32: 0>} : vector<16x1xi32>
    %101 = vector.broadcast %0 : i32 to vector<16x1xi32>
    %102 = arith.addi %101, %100 : vector<16x1xi32>
    %c4_i32 = arith.constant 4 : i32
    %103 = vector.broadcast %c4_i32 : i32 to vector<16x1xi32>
    %104 = arith.cmpi slt, %102, %103 : vector<16x1xi32>
    %cst_55 = arith.constant 0.000000e+00 : f32
    %105 = vector.shape_cast %104 : vector<16x1xi1> to vector<16x1xi1>
    %106 = vector.broadcast %105 : vector<16x1xi1> to vector<16x128xi1>
    %107 = vector.broadcast %cst_55 : f32 to vector<16x128xf32>
    %108 = arith.select %106, %99, %107 : vector<16x128xi1>, vector<16x128xf32>
    %c0_56 = arith.constant 0 : index
    %c0_57 = arith.constant 0 : index
    %c0_58 = arith.constant 0 : index
    %109 = vector.load %arg8[%c0_56, %c0_57, %c0_58] : memref<1x16x128xf32, #tpu.memory_space<vmem>>, vector<1x16x128xf32>
    %110 = vector.shape_cast %109 : vector<1x16x128xf32> to vector<16x128xf32>
    %111 = vector.shape_cast %108 : vector<16x128xf32> to vector<1x16x128xf32>
    tpu.vector_store %arg8[%c0_56, %c0_57, %c0_58], %111 {strides = array<i32>} : memref<1x16x128xf32, #tpu.memory_space<vmem>>, vector<1x16x128xf32>,
    return
  }
  func.func @transform_0(%arg0: i32, %arg1: i32) -> (i32, i32, i32) {
    %c0_i32 = arith.constant 0 : i32
    %c0_i32_0 = arith.constant 0 : i32
    return %arg0, %arg1, %c0_i32 : i32, i32, i32
  }
  func.func @transform_1(%arg0: i32, %arg1: i32) -> (i32, i32, i32) {
    %c1_i32 = arith.constant 1 : i32
    %0 = arith.addi %arg1, %c1_i32 : i32
    %c1_i32_0 = arith.constant 1 : i32
    %1 = arith.muli %0, %c1_i32_0 : i32
    %c0_i32 = arith.constant 0 : i32
    %c0_i32_1 = arith.constant 0 : i32
    return %arg0, %1, %c0_i32 : i32, i32, i32
  }
  func.func @transform_2(%arg0: i32, %arg1: i32) -> (i32, i32, i32) {
    %c0_i32 = arith.constant 0 : i32
    %c0_i32_0 = arith.constant 0 : i32
    %c0_i32_1 = arith.constant 0 : i32
    %c0_i32_2 = arith.constant 0 : i32
    return %c0_i32, %c0_i32_0, %c0_i32_1 : i32, i32, i32
  }
  func.func @transform_3(%arg0: i32, %arg1: i32) -> (i32, i32) {
    %c0_i32 = arith.constant 0 : i32
    %c0_i32_0 = arith.constant 0 : i32
    %c0_i32_1 = arith.constant 0 : i32
    return %c0_i32, %c0_i32_0 : i32, i32
  }
  func.func @transform_4(%arg0: i32, %arg1: i32) -> (i32, i32, i32) {
    %c0_i32 = arith.constant 0 : i32
    %c0_i32_0 = arith.constant 0 : i32
    %c0_i32_1 = arith.constant 0 : i32
    %c0_i32_2 = arith.constant 0 : i32
    return %c0_i32, %c0_i32_0, %c0_i32_1 : i32, i32, i32
  }
  func.func @transform_5(%arg0: i32, %arg1: i32) -> (i32, i32) {
    %c0_i32 = arith.constant 0 : i32
    %c0_i32_0 = arith.constant 0 : i32
    %c0_i32_1 = arith.constant 0 : i32
    return %c0_i32, %c0_i32_0 : i32, i32
  }
  func.func @transform_6(%arg0: i32, %arg1: i32) -> (i32, i32, i32) {
    %c0_i32 = arith.constant 0 : i32
    %c0_i32_0 = arith.constant 0 : i32
    return %arg0, %arg1, %c0_i32 : i32, i32, i32
  }
}

</mosaic_0001>

<bundles_post_ra>
// kernel: tpu_custom_call.1
= control target key start
LH: loop header
LB: loop body
LE: loop exit
PB: predicated region body
PF: predicated region fallthrough
CT: control target
= control target key end

     0   :  { %s4760_s0 = inlined_call_operand.hbm [shape: f32[2,32,512], index: 0, kind: input, shape index: {}]   ;;  %s4761_s1 = inlined_call_operand.hbm [shape: f32[2,32,512], index: 1, kind: input, shape index: {}]   ;;  %s4762_s2 = inlined_call_operand.hbm [shape: f32[2,256,512], index: 2, kind: input, shape index: {}]   ;;  %s4763_s3 = inlined_call_operand.hbm [shape: f32[1,512], index: 3, kind: input, shape index: {}]   ;;  %s4764_s4 = inlined_call_operand.hbm [shape: f32[3,256,256], index: 4, kind: input, shape index: {}]   ;;  %s4765_s5 = inlined_call_operand.hbm [shape: f32[1,256], index: 5, kind: input, shape index: {}]   ;;  %s4766_s6 = inlined_call_operand.hbm [shape: f32[2,16,128], index: 6, kind: output, shape index: {}]  }
   0x1   :  { %4836 = sst [smem:[#allocation60_spill]] %s4762_s2 }
   0x2   :  { %4837 = sst [smem:[#allocation61_spill]] %s4763_s3 }
   0x3   :  { %4838 = sst [smem:[#allocation62_spill]] %s4764_s4 }
   0x4   :  { %11 = vsyncpa [#allocation4], 0 }
   0x5   :  { %13 = vsyncpa [#allocation4 + $0x1], 0 }
   0x6   :  { %14 = vsyncpa [#allocation7], 0 }
   0x7   :  { %16 = vsyncpa [#allocation7 + $0x1], 0 }
   0x8   :  { %17 = vsyncpa [#allocation10], 0 }
   0x9   :  { %18 = vsyncpa [#allocation13], 0 }
   0xa   :  { %19 = vsyncpa [#allocation5], 0 }
   0xb   :  { %21 = vsyncpa [#allocation5 + $0x1], 0  ;;  %s3497_s21 = smov 0   ;;  %s3499_s22 = smov 0  }
   0xc   :  { %s3501_s23 = smov 0   ;;  %s3503_s24 = smov 0  }
   0xd   :  { %s3505_s25 = smov 0   ;;  %s3507_s26 = smov 0  }
   0xe LB: > { %4839 = sst [smem:[#allocation21_spill]] %s3426_s21  ;;  %s3528_s27 = sadd.s32 4294967295, %s3446_s26   ;;  %s3446_s26 = sphi %s3507_s26, %s27_s26   ;;  %s3442_s25 = sphi %s3505_s25, %s4996_s25   ;;  %s3438_s24 = sphi %s3503_s24, %s4995_s24   ;;  %s3434_s23 = sphi %s3501_s23, %s4994_s23   ;;  %s3430_s22 = sphi %s3499_s22, %s4993_s22   ;;  %s3426_s21 = sphi %s3497_s21, %s4992_s21  }
   0xf   : > { %s2203_s28 = sadd.s32 4294967294, %s3446_s26   ;;  %p61_p0 = scmp.ne.s32.totalorder %s3430_s22, %s3426_s21 }
  0x10   : > { %p4767_p1 = scmp.eq.s32.totalorder %s3528_s27, 0  ;;  %p207_p3 = scmp.eq.s32.totalorder %s2203_s28, 1 }
  0x11   : > { %p2204_p5 = scmp.ge.s32.totalorder %s3446_s26, 1  ;;  %p214_p7 = scmp.lt.s32.totalorder %s3446_s26, 3 }
  0x12   : > { %p3537_p4 = por %p4767_p1, %p61_p0  ;;  %p3542_p6 = por %p207_p3, %p61_p0 }
  0x13   : > { %p3547_p8 = pnand %p2204_p5, %p214_p7  ;;  %s3448_s8 = smov [#allocation8]  }
  0x14   : > { %s4840_s29 = scalar_select %p3537_p4, 1, 0 }
  0x15   : > { %s4841_s30 = scalar_select %p3542_p6, 1, 0 }
  0x16   : > { %s4843_s7 = scalar_select %p3547_p8, 1, 0 }
  0x17   : > { %4842 = sst [smem:[#allocation22_spill]] %s4841_s30  ;;  %s226_s9 = sshll.u32 %s3448_s8, 4  ;;  %s3551_s9 = int_to_ptr.vmem [resolvable:$true] %s226_s9 }
  0x18   : > { %p3037_p9 = pneg %p3547_p8  ;;  %s3449_s11 = smov [#allocation9]  }
  0x19   : > { %s240_s12 = sshll.u32 %s3449_s11, 4  ;;  %s3450_s13 = smov [#allocation11]   ;;  %s3562_s12 = int_to_ptr.vmem [resolvable:$true] %s240_s12 }
  0x1a   : > { %p3558_p11 = pnand %p3037_p9, %p4767_p1  ;;  %s3564_s14 = sshll.u32 %s3450_s13, 4  ;;  %s251_s14 = int_to_ptr.vmem [resolvable:$true] %s3564_s14 }
  0x1b   : > { %s4845_s2 = sld [smem:[#allocation60_spill]] }
  0x1c   : > { %p3574_p13 = pneg %p3558_p11 }
  0x21   : > { %s3175_s17 = scalar_lea.hbm %s4845_s2, 32768 }
  0x22   : > { %p3176_p12 = scmp.ne.s32.totalorder %s4845_s2, %s3175_s17  ;;  %p3182_p5 = scmp.lt.u32.totalorder %s3175_s17, %s4845_s2 }
  0x24   : > { %p3178_p0 = pnand %p3574_p13, %p3176_p12 }
  0x26   : > { %p3179_p3 = pneg %p3178_p0 }
  0x28   : > { %p3184_p7 = pnand %p3182_p5, %p3179_p3 }
  0x2a   : > { %3187 = shalt.err (!%p3184_p7)
}
  0x2b   : > { %s3188_s11 = scalar_lea.vmem %s3551_s9, 32768  ;;  %p3196_p2 = scmp.lt.s32.totalorder %s3551_s9, %s3551_s9 }
  0x2c   : > { %p3189_p9 = scmp.ne.s32.totalorder %s3551_s9, %s3188_s11  ;;  %p3197_p6 = scmp.lt.s32.totalorder %s3188_s11, %s3188_s11 }
  0x2e   : > { %p3191_p10 = pnand %p3189_p9, %p3574_p13  ;;  %p3198_p12 = por %p3197_p6, %p3196_p2 }
  0x30   : > { %p3192_p1 = pneg %p3191_p10 }
  0x32   : > { %p3199_p0 = pnand %p3198_p12, %p3192_p1 }
  0x34   : > { %3202 = shalt.err (!%p3199_p0)
}
  0x35   : > { %s4772_s13 = smov 512   ;;  %s4774_s15 = smov 32  }
  0x36   : > { %3040 = dma.hbm_to_vmem [thread:$0]  (!%p3558_p11), %s4845_s2, 32768, %s3551_s9, [#allocation7], %s4772_s13, %s4772_s13, %s4774_s15  }
  0x37   : > { %s4847_s3 = sld [smem:[#allocation61_spill]] }
  0x3d   : > { %s3203_s28 = scalar_lea.hbm %s4847_s3, 64 }
  0x3e   : > { %p3204_p1 = scmp.ne.s32.totalorder %s4847_s3, %s3203_s28  ;;  %p3210_p10 = scmp.lt.u32.totalorder %s3203_s28, %s4847_s3 }
  0x40   : > { %p3206_p2 = pnand %p3204_p1, %p3574_p13 }
  0x42   : > { %p3207_p6 = pneg %p3206_p2 }
  0x44   : > { %p3212_p3 = pnand %p3210_p10, %p3207_p6 }
  0x46   : > { %3215 = shalt.err (!%p3212_p3)
}
  0x47   : > { %s3216_s9 = scalar_lea.vmem %s3562_s12, 64  ;;  %p3224_p12 = scmp.lt.s32.totalorder %s3562_s12, %s3562_s12 }
  0x48   : > { %p3217_p5 = scmp.ne.s32.totalorder %s3562_s12, %s3216_s9  ;;  %p3225_p0 = scmp.lt.s32.totalorder %s3216_s9, %s3216_s9 }
  0x4a   : > { %p3219_p7 = pnand %p3217_p5, %p3574_p13  ;;  %p3226_p1 = por %p3225_p0, %p3224_p12 }
  0x4c   : > { %p3220_p9 = pneg %p3219_p7 }
  0x4e   : > { %p3227_p2 = pnand %p3226_p1, %p3220_p9 }
  0x50   : > { %3230 = shalt.err (!%p3227_p2)
}
  0x51   : > { %3043 = dma.hbm_to_vmem [thread:$0]  (!%p3558_p11), %s4847_s3, 64, %s3562_s12, [#allocation10]  }
  0x52   : > { %s4848_s4 = sld [smem:[#allocation62_spill]] }
  0x58   : > { %s3231_s18 = scalar_lea.hbm %s4848_s4, 24576 }
  0x59   : > { %p3232_p6 = scmp.ne.s32.totalorder %s4848_s4, %s3231_s18  ;;  %p3238_p5 = scmp.lt.u32.totalorder %s3231_s18, %s4848_s4 }
  0x5b   : > { %p3234_p10 = pnand %p3232_p6, %p3574_p13 }
  0x5d   : > { %p3235_p3 = pneg %p3234_p10 }
  0x5f   : > { %p3240_p7 = pnand %p3238_p5, %p3235_p3 }
  0x61   : > { %3243 = shalt.err (!%p3240_p7)
}
  0x62   : > { %s3244_s9 = scalar_lea.vmem %s251_s14, 24576  ;;  %p3252_p1 = scmp.lt.s32.totalorder %s251_s14, %s251_s14 }
  0x63   : > { %p3245_p9 = scmp.ne.s32.totalorder %s251_s14, %s3244_s9  ;;  %p3253_p2 = scmp.lt.s32.totalorder %s3244_s9, %s3244_s9 }
  0x65   : > { %p3247_p12 = pnand %p3245_p9, %p3574_p13  ;;  %p3254_p4 = por %p3253_p2, %p3252_p1 }
  0x67   : > { %p3248_p0 = pneg %p3247_p12 }
  0x69   : > { %p3255_p8 = pnand %p3254_p4, %p3248_p0 }
  0x6b   : > { %3258 = shalt.err (!%p3255_p8)
}
  0x6c   : > { %s3453_s12 = smov 256   ;;  %s3454_s21 = smov 16  }
  0x6d   : > { %3046 = dma.hbm_to_vmem [thread:$0]  (!%p3558_p11), %s4848_s4, 24576, %s251_s14, [#allocation10], %s3453_s12, %s3453_s12, %s3454_s21  }
  0x6e   : > { %s3455_s17 = smov [#allocation12]   ;;  %s3259_s8 = scalar_lea.hbm %s4765_s5, 32 }
  0x6f   : > { %s264_s18 = sshll.u32 %s3455_s17, 4  ;;  %p3260_p4 = scmp.ne.s32.totalorder %s4765_s5, %s3259_s8  ;;  %s265_s18 = int_to_ptr.vmem [resolvable:$true] %s264_s18 }
  0x70   : > { %p3266_p10 = scmp.lt.u32.totalorder %s3259_s8, %s4765_s5 }
  0x71   : > { %p3262_p8 = pnand %p3260_p4, %p3574_p13 }
  0x73   : > { %p3263_p6 = pneg %p3262_p8 }
  0x75   : > { %p3268_p3 = pnand %p3266_p10, %p3263_p6 }
  0x77   : > { %3271 = shalt.err (!%p3268_p3)
}
  0x78   : > { %s3272_s14 = scalar_lea.vmem %s265_s18, 32  ;;  %p3280_p12 = scmp.lt.s32.totalorder %s265_s18, %s265_s18 }
  0x79   : > { %p3273_p5 = scmp.ne.s32.totalorder %s265_s18, %s3272_s14  ;;  %p3281_p0 = scmp.lt.s32.totalorder %s3272_s14, %s3272_s14 }
  0x7b   : > { %p3275_p7 = pnand %p3273_p5, %p3574_p13  ;;  %p3282_p1 = por %p3281_p0, %p3280_p12 }
  0x7d   : > { %p3276_p9 = pneg %p3275_p7 }
  0x7f   : > { %p3283_p2 = pnand %p3282_p1, %p3276_p9 }
  0x81   : > { %3286 = shalt.err (!%p3283_p2)
}
  0x82   : > { %3049 = dma.hbm_to_vmem [thread:$0]  (!%p3558_p11), %s4765_s5, 32, %s265_s18, [#allocation13]  }
  0x83   : > { %s39_s20 = sadd.s32 1, %s3442_s25  ;;  %s48_s13 = sadd.s32 1, %s3434_s23 }
  0x84   : > { %p41_p13 = scmp.ge.s32.totalorder %s39_s20, 2  ;;  %p55_p4 = scmp.ne.s32.totalorder %s3434_s23, %s3430_s22 }
  0x85   : > { %p56_p8 = scmp.eq.s32.totalorder %s3446_s26, 0  ;;  %p3065_p6 = scmp.lt.s32.totalorder %s3446_s26, 2 }
  0x86   : > { %s4998_s20 = smov (%p41_p13, %s39_s20), 0  ;;  %p4849_p3 = scmp.eq.s32.totalorder %s3528_s27, 1 }
  0x87   : > { %p57_p10 = por %p56_p8, %p55_p4  ;;  %s43_s15 = ssub.s32 %s3442_s25, %s4998_s20 }
  0x88   : > { %p3668_p5 = por %p4849_p3, %p55_p4  ;;  %s275_s30 = sand.u32 1, %s3434_s23  }
  0x89   : > { %p46_p7 = scmp.eq.s32.totalorder %s43_s15, 0  ;;  %s3675_s16 = sshll.u32 %s275_s30, 6 }
  0x8a   : > { %s2252_s17 = sshll.u32 %s3442_s25, 11  ;;  %s279_s11 = scalar_lea.vmem [#allocation3], %s3675_s16 }
  0x8b   : > { %s3679_s18 = scalar_select %p46_p7, %s3434_s23, %s48_s13  }
  0x8c   : > { %s3684_s8 = scalar_lea.hbm %s4760_s0, %s2252_s17  ;;  %s289_s9 = sshll.u32 %s279_s11, 4  ;;  %s3693_s9 = int_to_ptr.vmem [resolvable:$true] %s289_s9 }
  0x8d   : > { %p3689_p11 = pnand %p3065_p6, %p57_p10  ;;  %s3698_s13 = scalar_lea.hbm %s4761_s1, %s2252_s17 }
  0x8e   : > { %s3700_s15 = scalar_lea.sflag [#allocation4], %s275_s30  ;;  %s3287_s19 = scalar_lea.hbm %s3684_s8, 1024 }
  0x8f   : > { %p3288_p9 = scmp.ne.s32.totalorder %s3684_s8, %s3287_s19  ;;  %p3289_p12 = pneg %p3689_p11 }
  0x90   : > { %s3292_s2 = scalar_lea.hbm %s4760_s0, 4096  ;;  %p3293_p2 = scmp.lt.u32.totalorder %s3684_s8, %s4760_s0 }
  0x91   : > { %p3290_p0 = pnand %p3289_p12, %p3288_p9  ;;  %p3294_p13 = scmp.lt.u32.totalorder %s3292_s2, %s3287_s19 }
  0x92   : > { %p3296_p8 = scmp.lt.u32.totalorder %s3287_s19, %s3684_s8 }
  0x93   : > { %p3291_p1 = pneg %p3290_p0  ;;  %p3295_p4 = por %p3294_p13, %p3293_p2 }
  0x95   : > { %p3297_p6 = por %p3296_p8, %p3295_p4 }
  0x97   : > { %p3298_p10 = pnand %p3297_p6, %p3291_p1 }
  0x99   : > { %3301 = shalt.err (!%p3298_p10)
}
  0x9a   : > { %s3302_s30 = scalar_lea.vmem %s3693_s9, 1024  ;;  %s3456_s17 = smov [#allocation3]  }
  0x9b   : > { %p3303_p3 = scmp.ne.s32.totalorder %s3693_s9, %s3302_s30  ;;  %s3307_s12 = sshll.u32 %s3456_s17, 4  ;;  %s3308_s12 = int_to_ptr.vmem [resolvable:$false] %s3307_s12 }
  0x9c   : > { %s3309_s3 = scalar_lea.vmem %s3308_s12, 2048  ;;  %p3310_p0 = scmp.lt.s32.totalorder %s3693_s9, %s3308_s12 }
  0x9d   : > { %p3305_p7 = pnand %p3303_p3, %p3289_p12  ;;  %p3311_p2 = scmp.lt.s32.totalorder %s3309_s3, %s3302_s30 }
  0x9f   : > { %p3306_p9 = pneg %p3305_p7  ;;  %p3312_p13 = por %p3311_p2, %p3310_p0 }
  0xa1   : > { %p3313_p4 = pnand %p3312_p13, %p3306_p9 }
  0xa3   : > { %3316 = shalt.err (!%p3313_p4)
}
  0xa4   : > { %s4852_s2 = smov 32   ;;  %s4853_s4 = smov 512  }
  0xa5   : > { %3053 = dma.hbm_to_vmem [thread:$0]  (!%p3689_p11), %s3684_s8, 1024, %s3693_s9, %s3700_s15, %s4853_s4, %s4853_s4, %s4852_s2  }
  0xa6   : > { %s3732_s21 = scalar_lea.hbm %s3698_s13, 1024  ;;  %s303_s19 = scalar_lea.vmem [#allocation6], %s3675_s16 }
  0xa7   : > { %s314_s28 = sshll.u32 %s303_s19, 4  ;;  %s299_s11 = sand.u32 1, %s3446_s26   ;;  %s3735_s28 = int_to_ptr.vmem [resolvable:$true] %s314_s28 }
  0xa8   : > { %s3738_s30 = scalar_lea.sflag [#allocation7], %s299_s11  ;;  %s3347_s17 = scalar_lea.hbm %s3698_s13, 2048 }
  0xa9   : > { %p3318_p1 = scmp.ne.s32.totalorder %s3732_s21, %s3347_s17  ;;  %s3322_s9 = scalar_lea.hbm %s4761_s1, 4096 }
  0xaa   : > { %p3323_p10 = scmp.lt.u32.totalorder %s3732_s21, %s4761_s1  ;;  %p3324_p3 = scmp.lt.u32.totalorder %s3322_s9, %s3347_s17 }
  0xab   : > { %p3320_p8 = pnand %p3318_p1, %p3289_p12  ;;  %p3326_p9 = scmp.lt.u32.totalorder %s3347_s17, %s3732_s21 }
  0xac   : > { %p3325_p7 = por %p3324_p3, %p3323_p10 }
  0xad   : > { %p3321_p6 = pneg %p3320_p8 }
  0xae   : > { %p3327_p0 = por %p3326_p9, %p3325_p7 }
  0xb0   : > { %p3328_p2 = pnand %p3327_p0, %p3321_p6 }
  0xb2   : > { %3331 = shalt.err (!%p3328_p2)
}
  0xb3   : > { %s3332_s16 = scalar_lea.vmem %s3735_s28, 1024  ;;  %s3457_s13 = smov [#allocation6]  }
  0xb4   : > { %p3333_p13 = scmp.ne.s32.totalorder %s3735_s28, %s3332_s16  ;;  %s3337_s19 = sshll.u32 %s3457_s13, 4  ;;  %s3338_s19 = int_to_ptr.vmem [resolvable:$false] %s3337_s19 }
  0xb5   : > { %s3339_s11 = scalar_lea.vmem %s3338_s19, 2048  ;;  %p3340_p8 = scmp.lt.s32.totalorder %s3735_s28, %s3338_s19 }
  0xb6   : > { %p3335_p4 = pnand %p3333_p13, %p3289_p12  ;;  %p3341_p10 = scmp.lt.s32.totalorder %s3339_s11, %s3332_s16 }
  0xb8   : > { %p3336_p1 = pneg %p3335_p4  ;;  %p3342_p3 = por %p3341_p10, %p3340_p8 }
  0xba   : > { %p3343_p7 = pnand %p3342_p3, %p3336_p1 }
  0xbc   : > { %3346 = shalt.err (!%p3343_p7)
}
  0xbd   : > { %3056 = dma.hbm_to_vmem [thread:$0]  (!%p3689_p11), %s3732_s21, 1024, %s3735_s28, %s3738_s30, %s4853_s4, %s4853_s4, %s4852_s2  }
  0xbe   : > { %p4854_p12 = scmp.ne.s32.totalorder %s4843_s7, 0 }
  0xc0   : > { %326 = sbr.rel (%p4854_p12) target bundleno = 1172 (0x494), region = 44 }
  0xc7   : > { %s3770_s17 = sand.u32 1, %s3430_s22   ;;  %p4855_p6 = scmp.ne.s32.totalorder %s4840_s29, 0 }
  0xc8   : > { %s2217_s12 = sshll.u32 %s3770_s17, 6  ;;  %s329_s8 = scalar_lea.sflag [#allocation4], %s3770_s17 }
  0xc9   : > { %s3774_s9 = scalar_lea.vmem [#allocation3], %s2217_s12 }
  0xca   : > { %3401 = dma.done.wait (%p4855_p6), %s329_s8, 1024  }
  0xcb   : > { %3403 = vsyncadd (%p4855_p6), %s329_s8, 4294966272  ;;  %s337_s14 = sand.u32 1, %s3528_s27   ;;  %s3781_s2 = scalar_lea.vmem [#allocation6], %s2217_s12 }
  0xcc   : > { %s338_s7 = scalar_lea.sflag [#allocation7], %s337_s14 }
  0xcd   : > { %3405 = dma.done.wait (%p4855_p6), %s338_s7, 1024  }
  0xce   : > { %3407 = vsyncadd (%p4855_p6), %s338_s7, 4294966272  ;;  %p4856_p11 = scmp.eq.s32.totalorder %s3528_s27, 0 }
  0xd0   : > { %3409 = dma.done.wait (%p4856_p11), [#allocation7], 32768   ;;  %p4857_p9 = pmov %p4856_p11 }
  0xd2   : > { %3411 = vsyncadd (%p4857_p9), [#allocation7], 4294934528  ;;  %p4858_p0 = pmov %p4857_p9 }
  0xd4   : > { %3413 = dma.done.wait (%p4858_p0), [#allocation10], 24640   ;;  %p4859_p2 = pmov %p4858_p0 }
  0xd5   : > { %p4860_p13 = pmov %p4858_p0 }
  0xd6   : > { %3415 = vsyncadd (%p4859_p2), [#allocation10], 4294942656 }
  0xd7   : > { %3417 = dma.done.wait (%p4860_p13), [#allocation13], 32   ;;  %p4861_p4 = pmov %p4858_p0 }
  0xd8   : > { %v570_v0 = vld [vmem:[#allocation8 + $0x408] sm:$0xff]  ;;  %v569_v5 = vld [vmem:[#allocation8 + $0x400] sm:$0xff]  ;;  %vm1039_vm0 = vcmask 1046528   ;;  %s2223_s27 = sshll.u32 %s3770_s17, 4  ;;  %s2254_s4 = sshll.u32 %s3438_s24, 8 }
  0xd9   : > { %3419 = vsyncadd (%p4861_p4), [#allocation13], 4294967264  ;;  %v574_v1 = vld [vmem:[#allocation8 + $0x428] sm:$0xff]  ;;  %v573_v7 = vld [vmem:[#allocation8 + $0x420] sm:$0xff]  ;;  %s390_s29 = scalar_lea.vmem [#allocation14], %s2223_s27  ;;  %s4709_s15 = scalar_lea.hbm %s4766_s6, %s2254_s4 }
  0xda   : > { %v3799_v2 = vpack.c.bf16 %v574_v1, %v570_v0  ;;  %v435_v3 = vld [vmem:[#allocation8 + $0x8] sm:$0xff]  ;;  %v434_v8 = vld [vmem:[#allocation8] sm:$0xff]  ;;  %v3804_v10 = vpack.c.bf16 %v573_v7, %v569_v5  ;;  %s2050_s21 = sshll.u32 %s390_s29, 4  ;;  %s2035_s3 = scalar_lea.sflag [#allocation5], %s3770_s17  ;;  %s4711_s21 = int_to_ptr.vmem [resolvable:$true] %s2050_s21 }
  0xdb   : > { %v439_v4 = vld [vmem:[#allocation8 + $0x28] sm:$0xff]  ;;  %v438_v9 = vld [vmem:[#allocation8 + $0x20] sm:$0xff]  ;;  %s3348_s24 = scalar_lea.vmem %s4711_s21, 256  ;;  %s3459_s16 = smov [#allocation14]  }
  0xdc   : > { %v3801_v6 = vpack.c.bf16 %v439_v4, %v435_v3  ;;  %2256 = vmatprep.subr.bf16.mxu1 %v3799_v2  ;;  %v3806_v11 = vpack.c.bf16 %v438_v9, %v434_v8  ;;  %v578_v12 = vld [vmem:[#allocation8 + $0x448] sm:$0xff]  ;;  %v577_v17 = vld [vmem:[#allocation8 + $0x440] sm:$0xff]  ;;  %p3349_p1 = scmp.ne.s32.totalorder %s4711_s21, %s3348_s24  ;;  %s3352_s13 = sshll.u32 %s3459_s16, 4  ;;  %s3353_s13 = int_to_ptr.vmem [resolvable:$false] %s3352_s13 }
  0xdd   : > { %v582_v13 = vld [vmem:[#allocation8 + $0x468] sm:$0xff]  ;;  %v581_v18 = vld [vmem:[#allocation8 + $0x460] sm:$0xff]  ;;  %2258 = vmatpush1.bf16.msra.mxu1 %v3804_v10  ;;  %s3354_s19 = scalar_lea.vmem %s3353_s13, 512  ;;  %p3355_p3 = scmp.lt.s32.totalorder %s4711_s21, %s3353_s13 }
  0xde   : > { %v443_v14 = vld [vmem:[#allocation8 + $0x48] sm:$0xff]  ;;  %2384 = vmatprep.subr.bf16.mxu0 %v3801_v6  ;;  %v3809_v15 = vpack.c.bf16 %v582_v13, %v578_v12  ;;  %v3815_v20 = vpack.c.bf16 %v581_v18, %v577_v17  ;;  %v442_v21 = vld [vmem:[#allocation8 + $0x40] sm:$0xff]  ;;  %p3350_p8 = pnand %p3349_p1, %p3668_p5  ;;  %p3356_p7 = scmp.lt.s32.totalorder %s3354_s19, %s3348_s24 }
  0xdf   : > { %v447_v16 = vld [vmem:[#allocation8 + $0x68] sm:$0xff]  ;;  %2386 = vmatpush1.bf16.msra.mxu0 %v3806_v11  ;;  %v446_v22 = vld [vmem:[#allocation8 + $0x60] sm:$0xff] }
  0xe0   : > { %v3813_v19 = vpack.c.bf16 %v447_v16, %v443_v14  ;;  %v586_v23 = vld [vmem:[#allocation8 + $0x488] sm:$0xff]  ;;  %2260 = vmatprep.subr.bf16.mxu1 %v3809_v15  ;;  %v3818_v24 = vpack.c.bf16 %v446_v22, %v442_v21  ;;  %v585_v30 = vld [vmem:[#allocation8 + $0x480] sm:$0xff]  ;;  %p3351_p10 = pneg %p3350_p8  ;;  %p3357_p12 = por %p3356_p7, %p3355_p3 }
  0xe1   : > { %v590_v25 = vld [vmem:[#allocation8 + $0x4a8] sm:$0xff]  ;;  %v589_v31 = vld [vmem:[#allocation8 + $0x4a0] sm:$0xff]  ;;  %2262 = vmatpush1.bf16.msra.mxu1 %v3815_v20 }
  0xe2   : > { %v451_v26 = vld [vmem:[#allocation8 + $0x88] sm:$0xff]  ;;  %2388 = vmatprep.subr.bf16.mxu0 %v3813_v19  ;;  %v3821_v28 = vpack.c.bf16 %v590_v25, %v586_v23  ;;  %v450_v32 = vld [vmem:[#allocation8 + $0x80] sm:$0xff]  ;;  %v3827_v36 = vpack.c.bf16 %v589_v31, %v585_v30  ;;  %p3358_p6 = pnand %p3357_p12, %p3351_p10 }
  0xe3   : > { %v455_v27 = vld [vmem:[#allocation8 + $0xa8] sm:$0xff]  ;;  %v454_v33 = vld [vmem:[#allocation8 + $0xa0] sm:$0xff]  ;;  %2390 = vmatpush1.bf16.msra.mxu0 %v3818_v24 }
  0xe4   : > { %v3823_v29 = vpack.c.bf16 %v455_v27, %v451_v26  ;;  %v594_v34 = vld [vmem:[#allocation8 + $0x4c8] sm:$0xff]  ;;  %v3829_v37 = vpack.c.bf16 %v454_v33, %v450_v32  ;;  %v593_v40 = vld [vmem:[#allocation8 + $0x4c0] sm:$0xff]  ;;  %2264 = vmatprep.subr.bf16.mxu1 %v3821_v28 }
  0xe5   : > { %v598_v35 = vld [vmem:[#allocation8 + $0x4e8] sm:$0xff]  ;;  %v597_v43 = vld [vmem:[#allocation8 + $0x4e0] sm:$0xff]  ;;  %2266 = vmatpush1.bf16.msra.mxu1 %v3827_v36 }
  0xe6   : > { %v459_v38 = vld [vmem:[#allocation8 + $0xc8] sm:$0xff]  ;;  %2392 = vmatprep.subr.bf16.mxu0 %v3823_v29  ;;  %v3833_v41 = vpack.c.bf16 %v598_v35, %v594_v34  ;;  %v458_v44 = vld [vmem:[#allocation8 + $0xc0] sm:$0xff]  ;;  %v3839_v50 = vpack.c.bf16 %v597_v43, %v593_v40 }
  0xe7   : > { %v463_v39 = vld [vmem:[#allocation8 + $0xe8] sm:$0xff]  ;;  %v462_v45 = vld [vmem:[#allocation8 + $0xe0] sm:$0xff]  ;;  %2394 = vmatpush1.bf16.msra.mxu0 %v3829_v37 }
  0xe8   : > { %v3835_v42 = vpack.c.bf16 %v463_v39, %v459_v38  ;;  %v602_v46 = vld [vmem:[#allocation8 + $0x508] sm:$0xff]  ;;  %v3841_v51 = vpack.c.bf16 %v462_v45, %v458_v44  ;;  %v601_v52 = vld [vmem:[#allocation8 + $0x500] sm:$0xff]  ;;  %2268 = vmatprep.subr.bf16.mxu1 %v3833_v41 }
  0xe9   : > { %v606_v47 = vld [vmem:[#allocation8 + $0x528] sm:$0xff]  ;;  %v605_v53 = vld [vmem:[#allocation8 + $0x520] sm:$0xff]  ;;  %2270 = vmatpush1.bf16.msra.mxu1 %v3839_v50 }
  0xea   : > { %v467_v48 = vld [vmem:[#allocation8 + $0x108] sm:$0xff]  ;;  %2396 = vmatprep.subr.bf16.mxu0 %v3835_v42  ;;  %v3845_v54 = vpack.c.bf16 %v606_v47, %v602_v46  ;;  %v466_v56 = vld [vmem:[#allocation8 + $0x100] sm:$0xff]  ;;  %v3851_v62 = vpack.c.bf16 %v605_v53, %v601_v52 }
  0xeb   : > { %v471_v49 = vld [vmem:[#allocation8 + $0x128] sm:$0xff]  ;;  %v470_v57 = vld [vmem:[#allocation8 + $0x120] sm:$0xff]  ;;  %2398 = vmatpush1.bf16.msra.mxu0 %v3841_v51 }
  0xec   : > { %v3847_v55 = vpack.c.bf16 %v471_v49, %v467_v48  ;;  %v610_v58 = vld [vmem:[#allocation8 + $0x548] sm:$0xff]  ;;  %v3853_v63 = vpack.c.bf16 %v470_v57, %v466_v56  ;;  %v609_v0 = vld [vmem:[#allocation8 + $0x540] sm:$0xff]  ;;  %2272 = vmatprep.subr.bf16.mxu1 %v3845_v54 }
  0xed   : > { %v614_v59 = vld [vmem:[#allocation8 + $0x568] sm:$0xff]  ;;  %v613_v1 = vld [vmem:[#allocation8 + $0x560] sm:$0xff]  ;;  %2274 = vmatpush1.bf16.msra.mxu1 %v3851_v62 }
  0xee   : > { %4862 = vst [vmem:[#allocation23_spill] sm:$0xff] %v3847_v55  ;;  %v475_v60 = vld [vmem:[#allocation8 + $0x148] sm:$0xff]  ;;  %4863 = vst [vmem:[#allocation24_spill] sm:$0xff] %v3853_v63  ;;  %2400 = vmatprep.subr.bf16.mxu0 %v3847_v55  ;;  %v3857_v3 = vpack.c.bf16 %v614_v59, %v610_v58  ;;  %v474_v5 = vld [vmem:[#allocation8 + $0x140] sm:$0xff]  ;;  %v3863_v14 = vpack.c.bf16 %v613_v1, %v609_v0 }
  0xef   : > { %v479_v61 = vld [vmem:[#allocation8 + $0x168] sm:$0xff]  ;;  %v478_v7 = vld [vmem:[#allocation8 + $0x160] sm:$0xff]  ;;  %2402 = vmatpush1.bf16.msra.mxu0 %v3853_v63  ;;  %v592_v63 = vld [vmem:[#allocation8 + $0x4b8] sm:$0xff] }
  0xf0   : > { %v3859_v4 = vpack.c.bf16 %v479_v61, %v475_v60  ;;  %v618_v8 = vld [vmem:[#allocation8 + $0x588] sm:$0xff]  ;;  %v3865_v16 = vpack.c.bf16 %v478_v7, %v474_v5  ;;  %v617_v17 = vld [vmem:[#allocation8 + $0x580] sm:$0xff]  ;;  %2276 = vmatprep.subr.bf16.mxu1 %v3857_v3 }
  0xf1   : > { %v622_v9 = vld [vmem:[#allocation8 + $0x5a8] sm:$0xff]  ;;  %v621_v18 = vld [vmem:[#allocation8 + $0x5a0] sm:$0xff]  ;;  %2278 = vmatpush1.bf16.msra.mxu1 %v3863_v14 }
  0xf2   : > { %4864 = vst [vmem:[#allocation25_spill] sm:$0xff] %v3859_v4  ;;  %v483_v12 = vld [vmem:[#allocation8 + $0x188] sm:$0xff]  ;;  %4865 = vst [vmem:[#allocation26_spill] sm:$0xff] %v3865_v16  ;;  %2404 = vmatprep.subr.bf16.mxu0 %v3859_v4  ;;  %v3869_v21 = vpack.c.bf16 %v622_v9, %v618_v8  ;;  %v482_v23 = vld [vmem:[#allocation8 + $0x180] sm:$0xff]  ;;  %v3875_v32 = vpack.c.bf16 %v621_v18, %v617_v17 }
  0xf3   : > { %v487_v13 = vld [vmem:[#allocation8 + $0x1a8] sm:$0xff]  ;;  %v486_v25 = vld [vmem:[#allocation8 + $0x1a0] sm:$0xff]  ;;  %2406 = vmatpush1.bf16.msra.mxu0 %v3865_v16  ;;  %v414_v16 = vld [vmem:[%s3781_s2 + $0x10] sm:$0xff] }
  0xf4   : > { %v3871_v22 = vpack.c.bf16 %v487_v13, %v483_v12  ;;  %v626_v26 = vld [vmem:[#allocation8 + $0x5c8] sm:$0xff]  ;;  %v3877_v33 = vpack.c.bf16 %v486_v25, %v482_v23  ;;  %v625_v34 = vld [vmem:[#allocation8 + $0x5c0] sm:$0xff]  ;;  %2280 = vmatprep.subr.bf16.mxu1 %v3869_v21  ;;  %v588_v4 = vld [vmem:[#allocation8 + $0x498] sm:$0xff]  ;;  %422 = vst [vmem:[#allocation2 + $0x50] sm:$0xff] %v414_v16 }
  0xf5   : > { %v630_v27 = vld [vmem:[#allocation8 + $0x5e8] sm:$0xff]  ;;  %v629_v35 = vld [vmem:[#allocation8 + $0x5e0] sm:$0xff]  ;;  %2282 = vmatpush1.bf16.msra.mxu1 %v3875_v32  ;;  %v596_v16 = vld [vmem:[#allocation8 + $0x4d8] sm:$0xff] }
  0xf6   : > { %4866 = vst [vmem:[#allocation27_spill] sm:$0xff] %v3871_v22  ;;  %v491_v30 = vld [vmem:[#allocation8 + $0x1c8] sm:$0xff]  ;;  %4867 = vst [vmem:[#allocation28_spill] sm:$0xff] %v3877_v33  ;;  %2408 = vmatprep.subr.bf16.mxu0 %v3871_v22  ;;  %v3881_v38 = vpack.c.bf16 %v630_v27, %v626_v26  ;;  %v490_v40 = vld [vmem:[#allocation8 + $0x1c0] sm:$0xff]  ;;  %v3887_v48 = vpack.c.bf16 %v629_v35, %v625_v34 }
  0xf7   : > { %v495_v31 = vld [vmem:[#allocation8 + $0x1e8] sm:$0xff]  ;;  %v494_v43 = vld [vmem:[#allocation8 + $0x1e0] sm:$0xff]  ;;  %2410 = vmatpush1.bf16.msra.mxu0 %v3877_v33 }
  0xf8   : > { %v3883_v39 = vpack.c.bf16 %v495_v31, %v491_v30  ;;  %v634_v44 = vld [vmem:[#allocation8 + $0x608] sm:$0xff]  ;;  %v3889_v49 = vpack.c.bf16 %v494_v43, %v490_v40  ;;  %v633_v52 = vld [vmem:[#allocation8 + $0x600] sm:$0xff]  ;;  %2284 = vmatprep.subr.bf16.mxu1 %v3881_v38 }
  0xf9   : > { %v638_v45 = vld [vmem:[#allocation8 + $0x628] sm:$0xff]  ;;  %v637_v53 = vld [vmem:[#allocation8 + $0x620] sm:$0xff]  ;;  %2286 = vmatpush1.bf16.msra.mxu1 %v3887_v48 }
  0xfa   : > { %4868 = vst [vmem:[#allocation29_spill] sm:$0xff] %v3883_v39  ;;  %v499_v46 = vld [vmem:[#allocation8 + $0x208] sm:$0xff]  ;;  %4869 = vst [vmem:[#allocation30_spill] sm:$0xff] %v3889_v49  ;;  %2412 = vmatprep.subr.bf16.mxu0 %v3883_v39  ;;  %v3893_v56 = vpack.c.bf16 %v638_v45, %v634_v44  ;;  %v498_v58 = vld [vmem:[#allocation8 + $0x200] sm:$0xff]  ;;  %v3899_v5 = vpack.c.bf16 %v637_v53, %v633_v52 }
  0xfb   : > { %v503_v47 = vld [vmem:[#allocation8 + $0x228] sm:$0xff]  ;;  %v502_v59 = vld [vmem:[#allocation8 + $0x220] sm:$0xff]  ;;  %2414 = vmatpush1.bf16.msra.mxu0 %v3889_v49 }
  0xfc   : > { %v3895_v57 = vpack.c.bf16 %v503_v47, %v499_v46  ;;  %v642_v60 = vld [vmem:[#allocation8 + $0x648] sm:$0xff]  ;;  %v3901_v7 = vpack.c.bf16 %v502_v59, %v498_v58  ;;  %v641_v8 = vld [vmem:[#allocation8 + $0x640] sm:$0xff]  ;;  %2288 = vmatprep.subr.bf16.mxu1 %v3893_v56 }
  0xfd   : > { %v646_v61 = vld [vmem:[#allocation8 + $0x668] sm:$0xff]  ;;  %v645_v9 = vld [vmem:[#allocation8 + $0x660] sm:$0xff]  ;;  %2290 = vmatpush1.bf16.msra.mxu1 %v3899_v5 }
  0xfe   : > { %4870 = vst [vmem:[#allocation31_spill] sm:$0xff] %v3895_v57  ;;  %v507_v0 = vld [vmem:[#allocation8 + $0x248] sm:$0xff]  ;;  %4871 = vst [vmem:[#allocation32_spill] sm:$0xff] %v3901_v7  ;;  %2416 = vmatprep.subr.bf16.mxu0 %v3895_v57  ;;  %v3905_v12 = vpack.c.bf16 %v646_v61, %v642_v60  ;;  %v506_v17 = vld [vmem:[#allocation8 + $0x240] sm:$0xff]  ;;  %v3911_v30 = vpack.c.bf16 %v645_v9, %v641_v8 }
  0xff   : > { %v511_v1 = vld [vmem:[#allocation8 + $0x268] sm:$0xff]  ;;  %v510_v18 = vld [vmem:[#allocation8 + $0x260] sm:$0xff]  ;;  %2418 = vmatpush1.bf16.msra.mxu0 %v3901_v7 }
 0x100   : > { %v3907_v13 = vpack.c.bf16 %v511_v1, %v507_v0  ;;  %v650_v23 = vld [vmem:[#allocation8 + $0x688] sm:$0xff]  ;;  %v3913_v31 = vpack.c.bf16 %v510_v18, %v506_v17  ;;  %v649_v34 = vld [vmem:[#allocation8 + $0x680] sm:$0xff]  ;;  %2292 = vmatprep.subr.bf16.mxu1 %v3905_v12 }
 0x101   : > { %v654_v25 = vld [vmem:[#allocation8 + $0x6a8] sm:$0xff]  ;;  %v653_v35 = vld [vmem:[#allocation8 + $0x6a0] sm:$0xff]  ;;  %2294 = vmatpush1.bf16.msra.mxu1 %v3911_v30 }
 0x102   : > { %4872 = vst [vmem:[#allocation33_spill] sm:$0xff] %v3907_v13  ;;  %v515_v26 = vld [vmem:[#allocation8 + $0x288] sm:$0xff]  ;;  %4873 = vst [vmem:[#allocation34_spill] sm:$0xff] %v3913_v31  ;;  %2420 = vmatprep.subr.bf16.mxu0 %v3907_v13  ;;  %v3917_v40 = vpack.c.bf16 %v654_v25, %v650_v23  ;;  %v514_v44 = vld [vmem:[#allocation8 + $0x280] sm:$0xff]  ;;  %v3923_v60 = vpack.c.bf16 %v653_v35, %v649_v34 }
 0x103   : > { %v519_v27 = vld [vmem:[#allocation8 + $0x2a8] sm:$0xff]  ;;  %v518_v45 = vld [vmem:[#allocation8 + $0x2a0] sm:$0xff]  ;;  %2422 = vmatpush1.bf16.msra.mxu0 %v3913_v31  ;;  %v3940_v34 = vld [vmem:[%s3774_s9 + $0x10] sm:$0xff] }
 0x104   : > { %v3919_v43 = vpack.c.bf16 %v519_v27, %v515_v26  ;;  %v658_v46 = vld [vmem:[#allocation8 + $0x6c8] sm:$0xff]  ;;  %v657_v58 = vld [vmem:[#allocation8 + $0x6c0] sm:$0xff]  ;;  %v3925_v61 = vpack.c.bf16 %v518_v45, %v514_v44  ;;  %2296 = vmatprep.subr.bf16.mxu1 %v3917_v40  ;;  %v3934_v26 = vld [vmem:[%s3774_s9 + $0x18] sm:$0xff]  ;;  %406 = vst [vmem:[#allocation2 + $0x10] sm:$0xff] %v3940_v34 }
 0x105   : > { %v662_v47 = vld [vmem:[#allocation8 + $0x6e8] sm:$0xff]  ;;  %v661_v59 = vld [vmem:[#allocation8 + $0x6e0] sm:$0xff]  ;;  %761 = vmatprep.mubr.f32.mxu1 %v3934_v26  ;;  %2298 = vmatpush1.bf16.msra.mxu1 %v3923_v60 }
 0x106   : > { %4874 = vst [vmem:[#allocation35_spill] sm:$0xff] %v3919_v43  ;;  %v523_v52 = vld [vmem:[#allocation8 + $0x2c8] sm:$0xff]  ;;  %4875 = vst [vmem:[#allocation36_spill] sm:$0xff] %v3925_v61  ;;  %v522_v0 = vld [vmem:[#allocation8 + $0x2c0] sm:$0xff]  ;;  %2424 = vmatprep.subr.bf16.mxu0 %v3919_v43  ;;  %v3929_v9 = vpack.c.bf16 %v662_v47, %v658_v46  ;;  %v3951_v44 = vpack.c.bf16 %v661_v59, %v657_v58 }
 0x107   : > { %v527_v53 = vld [vmem:[#allocation8 + $0x2e8] sm:$0xff]  ;;  %v526_v1 = vld [vmem:[#allocation8 + $0x2e0] sm:$0xff]  ;;  %2426 = vmatpush1.bf16.msra.mxu0 %v3925_v61 }
 0x108   : > { %v666_v8 = vld [vmem:[#allocation8 + $0x708] sm:$0xff]  ;;  %v3931_v17 = vpack.c.bf16 %v527_v53, %v523_v52  ;;  %v3947_v35 = vld [vmem:[%s3774_s9] sm:$0xff]  ;;  %v3953_v45 = vpack.c.bf16 %v526_v1, %v522_v0  ;;  %2300 = vmatprep.subr.bf16.mxu1 %v3929_v9 }
 0x109   : > { %v670_v18 = vld [vmem:[#allocation8 + $0x728] sm:$0xff]  ;;  %v665_v46 = vld [vmem:[#allocation8 + $0x700] sm:$0xff]  ;;  %404 = vst [vmem:[#allocation2] sm:$0xff] %v3947_v35  ;;  %2302 = vmatpush1.bf16.msra.mxu1 %v3951_v44 }
 0x10a   : > { %4876 = vst [vmem:[#allocation37_spill] sm:$0xff] %v3931_v17  ;;  %v531_v23 = vld [vmem:[#allocation8 + $0x308] sm:$0xff]  ;;  %4877 = vst [vmem:[#allocation38_spill] sm:$0xff] %v3953_v45  ;;  %v669_v47 = vld [vmem:[#allocation8 + $0x720] sm:$0xff]  ;;  %2428 = vmatprep.subr.bf16.mxu0 %v3931_v17  ;;  %v3958_v52 = vpack.c.bf16 %v670_v18, %v666_v8 }
 0x10b   : > { %v535_v25 = vld [vmem:[#allocation8 + $0x328] sm:$0xff]  ;;  %v530_v43 = vld [vmem:[#allocation8 + $0x300] sm:$0xff]  ;;  %2430 = vmatpush1.bf16.msra.mxu0 %v3953_v45  ;;  %v3964_v0 = vpack.c.bf16 %v669_v47, %v665_v46 }
 0x10c   : > { %v3937_v27 = vld [vmem:[%s3774_s9 + $0x8] sm:$0xff]  ;;  %v3960_v53 = vpack.c.bf16 %v535_v25, %v531_v23  ;;  %v534_v31 = vld [vmem:[#allocation8 + $0x320] sm:$0xff]  ;;  %2304 = vmatprep.subr.bf16.mxu1 %v3958_v52 }
 0x10d   : > { %405 = vst [vmem:[#allocation2 + $0x8] sm:$0xff] %v3937_v27  ;;  %927 = vmatprep.mubr.f32.mxu0 %v3937_v27  ;;  %v674_v13 = vld [vmem:[#allocation8 + $0x748] sm:$0xff]  ;;  %v3966_v1 = vpack.c.bf16 %v534_v31, %v530_v43  ;;  %v673_v7 = vld [vmem:[#allocation8 + $0x740] sm:$0xff]  ;;  %2306 = vmatpush1.bf16.msra.mxu1 %v3964_v0 }
 0x10e   : > { %4878 = vst [vmem:[#allocation39_spill] sm:$0xff] %v3960_v53  ;;  %v678_v61 = vld [vmem:[#allocation8 + $0x768] sm:$0xff]  ;;  %v677_v17 = vld [vmem:[#allocation8 + $0x760] sm:$0xff]  ;;  %2432 = vmatprep.subr.bf16.mxu0 %v3960_v53 }
 0x10f   : > { %v539_v58 = vld [vmem:[#allocation8 + $0x348] sm:$0xff]  ;;  %4879 = vst [vmem:[#allocation40_spill] sm:$0xff] %v3966_v1  ;;  %v3970_v8 = vpack.c.bf16 %v678_v61, %v674_v13  ;;  %v538_v23 = vld [vmem:[#allocation8 + $0x340] sm:$0xff]  ;;  %2434 = vmatpush1.bf16.msra.mxu0 %v3966_v1  ;;  %v3976_v31 = vpack.c.bf16 %v677_v17, %v673_v7 }
 0x110   : > { %v543_v59 = vld [vmem:[#allocation8 + $0x368] sm:$0xff]  ;;  %v542_v25 = vld [vmem:[#allocation8 + $0x360] sm:$0xff] }
 0x111   : > { %v3972_v18 = vpack.c.bf16 %v543_v59, %v539_v58  ;;  %v682_v57 = vld [vmem:[#allocation8 + $0x788] sm:$0xff]  ;;  %v3978_v43 = vpack.c.bf16 %v542_v25, %v538_v23  ;;  %v681_v46 = vld [vmem:[#allocation8 + $0x780] sm:$0xff]  ;;  %2308 = vmatprep.subr.bf16.mxu1 %v3970_v8 }
 0x112   : > { %v686_v49 = vld [vmem:[#allocation8 + $0x7a8] sm:$0xff]  ;;  %v685_v47 = vld [vmem:[#allocation8 + $0x7a0] sm:$0xff]  ;;  %2310 = vmatpush1.bf16.msra.mxu1 %v3976_v31 }
 0x113   : > { %4880 = vst [vmem:[#allocation41_spill] sm:$0xff] %v3972_v18  ;;  %v547_v39 = vld [vmem:[#allocation8 + $0x388] sm:$0xff]  ;;  %4881 = vst [vmem:[#allocation42_spill] sm:$0xff] %v3978_v43  ;;  %2436 = vmatprep.subr.bf16.mxu0 %v3972_v18  ;;  %v3982_v13 = vpack.c.bf16 %v686_v49, %v682_v57  ;;  %v546_v58 = vld [vmem:[#allocation8 + $0x380] sm:$0xff]  ;;  %v3988_v7 = vpack.c.bf16 %v685_v47, %v681_v46 }
 0x114   : > { %v551_v45 = vld [vmem:[#allocation8 + $0x3a8] sm:$0xff]  ;;  %v550_v59 = vld [vmem:[#allocation8 + $0x3a0] sm:$0xff]  ;;  %2438 = vmatpush1.bf16.msra.mxu0 %v3978_v43  ;;  %v572_v43 = vld [vmem:[#allocation8 + $0x418] sm:$0xff] }
 0x115   : > { %v3984_v61 = vpack.c.bf16 %v551_v45, %v547_v39  ;;  %v690_v53 = vld [vmem:[#allocation8 + $0x7c8] sm:$0xff]  ;;  %v3990_v17 = vpack.c.bf16 %v550_v59, %v546_v58  ;;  %v689_v23 = vld [vmem:[#allocation8 + $0x7c0] sm:$0xff]  ;;  %2312 = vmatprep.subr.bf16.mxu1 %v3982_v13  ;;  %v576_v46 = vld [vmem:[#allocation8 + $0x438] sm:$0xff] }
 0x116   : > { %v694_v33 = vld [vmem:[#allocation8 + $0x7e8] sm:$0xff]  ;;  %v693_v57 = vld [vmem:[#allocation8 + $0x7e0] sm:$0xff]  ;;  %2314 = vmatpush1.bf16.msra.mxu1 %v3988_v7  ;;  %v584_v59 = vld [vmem:[#allocation8 + $0x478] sm:$0xff] }
 0x117   : > { %4882 = vst [vmem:[#allocation43_spill] sm:$0xff] %v3984_v61  ;;  %v555_v22 = vld [vmem:[#allocation8 + $0x3c8] sm:$0xff]  ;;  %4883 = vst [vmem:[#allocation44_spill] sm:$0xff] %v3990_v17  ;;  %2440 = vmatprep.subr.bf16.mxu0 %v3984_v61  ;;  %v3994_v39 = vpack.c.bf16 %v694_v33, %v690_v53  ;;  %v554_v45 = vld [vmem:[#allocation8 + $0x3c0] sm:$0xff]  ;;  %v4000_v47 = vpack.c.bf16 %v693_v57, %v689_v23  ;;  %v4006_v33 = vpack.c.bf16 %v576_v46, %v572_v43 }
 0x118   : > { %v559_v1 = vld [vmem:[#allocation8 + $0x3e8] sm:$0xff]  ;;  %v558_v25 = vld [vmem:[#allocation8 + $0x3e0] sm:$0xff]  ;;  %2442 = vmatpush1.bf16.msra.mxu0 %v3990_v17  ;;  %v575_v53 = vld [vmem:[#allocation8 + $0x430] sm:$0xff] }
 0x119   : > { %v3996_v49 = vpack.c.bf16 %v559_v1, %v555_v22  ;;  %v4002_v58 = vpack.c.bf16 %v558_v25, %v554_v45  ;;  %v571_v22 = vld [vmem:[#allocation8 + $0x410] sm:$0xff]  ;;  %2316 = vmatprep.subr.bf16.mxu1 %v3994_v39  ;;  %v580_v1 = vld [vmem:[#allocation8 + $0x458] sm:$0xff]  ;;  %v4012_v17 = vld [vmem:[%s3774_s9 + $0x28] sm:$0xff] }
 0x11a   : > { %v4009_v61 = vld [vmem:[%s3774_s9 + $0x38] sm:$0xff]  ;;  %v4015_v23 = vld [vmem:[%s3774_s9 + $0x30] sm:$0xff]  ;;  %v4018_v57 = vld [vmem:[%s3774_s9 + $0x20] sm:$0xff]  ;;  %2318 = vmatpush1.bf16.msra.mxu1 %v4000_v47  ;;  %v4022_v43 = vpack.c.bf16 %v575_v53, %v571_v22  ;;  %v4026_v46 = vpack.c.bf16 %v584_v59, %v580_v1  ;;  %v4039_v53 = vpack.c.bf16 %v592_v63, %v588_v4 }
 0x11b   : > { %4884 = vst [vmem:[#allocation45_spill] sm:$0xff] %v3996_v49  ;;  %2444 = vmatprep.subr.bf16.mxu0 %v3996_v49  ;;  %v579_v45 = vld [vmem:[#allocation8 + $0x450] sm:$0xff]  ;;  %v415_v25 = vld [vmem:[%s3781_s2 + $0x18] sm:$0xff]  ;;  %2320 = vmatprep.subr.bf16.mxu1 %v4006_v33  ;;  %v413_v18 = vld [vmem:[%s3781_s2 + $0x8] sm:$0xff] }
 0x11c   : > { %2446 = vmatpush1.bf16.msra.mxu0 %v4002_v58  ;;  %v583_v49 = vld [vmem:[#allocation8 + $0x470] sm:$0xff]  ;;  %423 = vst [vmem:[#allocation2 + $0x58] sm:$0xff] %v415_v25  ;;  %421 = vst [vmem:[#allocation2 + $0x48] sm:$0xff] %v413_v18  ;;  %v412_v55 = vld [vmem:[%s3781_s2] sm:$0xff] }
 0x11d   : > { %2512 = vmatprep.subr.bf16.mxu0 %v3799_v2  ;;  %762 = vmatmul.mubr.f32.vlgmr.msra.gmra.mrb[0].mxu1 %v3940_v34  ;;  %420 = vst [vmem:[#allocation2 + $0x40] sm:$0xff] %v412_v55  ;;  %v4035_v22 = vpack.c.bf16 %v583_v49, %v579_v45  ;;  %4886 = vst [vmem:[#allocation47_spill] sm:$0xff] %v4039_v53  ;;  %v587_v2 = vld [vmem:[#allocation8 + $0x490] sm:$0xff]  ;;  %v600_v18 = vld [vmem:[#allocation8 + $0x4f8] sm:$0xff] }
 0x11e   : > { %2322 = vmatpush1.bf16.msra.mxu1 %v4022_v43  ;;  %767 = vmatprep.mubr.f32.mxu1 %v4009_v61  ;;  %v591_v1 = vld [vmem:[#allocation8 + $0x4b0] sm:$0xff]  ;;  %v4052_v63 = vpack.c.bf16 %v600_v18, %v596_v16  ;;  %v604_v25 = vld [vmem:[#allocation8 + $0x518] sm:$0xff] }
 0x11f   : > { %928 = vmatmul.mubr.f32.vlgmr.msra.gmra.mrb[0].mxu0 %v3947_v35  ;;  %4885 = vst [vmem:[#allocation46_spill] sm:$0xff] %v4035_v22  ;;  %2324 = vmatprep.subr.bf16.mxu1 %v4026_v46  ;;  %v4046_v55 = vpack.c.bf16 %v591_v1, %v587_v2  ;;  %v595_v49 = vld [vmem:[#allocation8 + $0x4d0] sm:$0xff] }
 0x120   : > { %933 = vmatprep.mubr.f32.mxu0 %v4012_v17  ;;  %2514 = vmatpush1.bf16.msra.mxu0 %v3804_v10  ;;  %4888 = vst [vmem:[#allocation49_spill] sm:$0xff] %v4052_v63  ;;  %v599_v4 = vld [vmem:[#allocation8 + $0x4f0] sm:$0xff] }
 0x121   : > { %768 = vmatmul.mubr.f32.gmra.mrb[2].mxu1 %v4015_v23  ;;  %4887 = vst [vmem:[#allocation48_spill] sm:$0xff] %v4046_v55  ;;  %2516 = vmatprep.subr.bf16.mxu0 %v3809_v15  ;;  %v4057_v45 = vld [vmem:[#allocation2 + $0x50] sm:$0x1]  ;;  %v4066_v15 = vpack.c.bf16 %v599_v4, %v595_v49 }
 0x122   : > { %2326 = vmatpush1.bf16.msra.mxu1 %v4035_v22  ;;  %v608_v22 = vld [vmem:[#allocation8 + $0x538] sm:$0xff]  ;;  %v603_v16 = vld [vmem:[#allocation8 + $0x510] sm:$0xff] }
 0x123   : > { %934 = vmatmul.mubr.f32.gmra.mrb[2].mxu0 %v4018_v57  ;;  %v4048_v59 = vld [vmem:[#allocation2 + $0x58] sm:$0x1]  ;;  %2328 = vmatprep.subr.bf16.mxu1 %v4039_v53  ;;  %v4055_v10 = vld [vmem:[#allocation2 + $0x48] sm:$0x1]  ;;  %v4070_v1 = vpack.c.bf16 %v608_v22, %v604_v25  ;;  %v607_v18 = vld [vmem:[#allocation8 + $0x530] sm:$0xff] }
 0x124   : > { %773 = vmatprep.mubr.f32.mxu1 %v4048_v59  ;;  %939 = vmatprep.mubr.f32.mxu0 %v4055_v10  ;;  %v4060_v2 = vld [vmem:[#allocation2 + $0x40] sm:$0x1]  ;;  %v612_v53 = vld [vmem:[#allocation8 + $0x558] sm:$0xff]  ;;  %v4076_v49 = vpack.c.bf16 %v607_v18, %v603_v16  ;;  %v611_v22 = vld [vmem:[#allocation8 + $0x550] sm:$0xff] }
 0x125   : > { %2518 = vmatpush1.bf16.msra.mxu0 %v3815_v20  ;;  %774 = vmatmul.mubr.f32.gmra.mrb[4].mxu1 %v4057_v45  ;;  %v616_v20 = vld [vmem:[#allocation8 + $0x578] sm:$0xff]  ;;  %v615_v25 = vld [vmem:[#allocation8 + $0x570] sm:$0xff] }
 0x126   : > { %2330 = vmatpush1.bf16.msra.mxu1 %v4046_v55  ;;  %844 = vmatprep.mubr.f32.mxu1 %v3934_v26  ;;  %v4079_v4 = vpack.c.bf16 %v616_v20, %v612_v53  ;;  %v624_v55 = vld [vmem:[#allocation8 + $0x5b8] sm:$0xff]  ;;  %v623_v16 = vld [vmem:[#allocation8 + $0x5b0] sm:$0xff] }
 0x127   : > { %940 = vmatmul.mubr.f32.gmra.mrb[4].mxu0 %v4060_v2  ;;  %2332 = vmatprep.subr.bf16.mxu1 %v4052_v63  ;;  %v620_v63 = vld [vmem:[#allocation8 + $0x598] sm:$0xff]  ;;  %v627_v20 = vld [vmem:[#allocation8 + $0x5d0] sm:$0xff] }
 0x128   : > { %2520 = vmatprep.subr.bf16.mxu0 %v3821_v28  ;;  %4889 = vst [vmem:[#allocation50_spill] sm:$0xff] %v4079_v4  ;;  %v4084_v28 = vpack.c.bf16 %v615_v25, %v611_v22  ;;  %v628_v53 = vld [vmem:[#allocation8 + $0x5d8] sm:$0xff]  ;;  %v631_v22 = vld [vmem:[#allocation8 + $0x5f0] sm:$0xff] }
 0x129   : > { %2522 = vmatpush1.bf16.msra.mxu0 %v3827_v36  ;;  %v4087_v36 = vpack.c.bf16 %v624_v55, %v620_v63  ;;  %v632_v18 = vld [vmem:[#allocation8 + $0x5f8] sm:$0xff]  ;;  %v4805_v55 = vrot.slane %v4012_v17, 1 }
 0x12a   : > { %2524 = vmatprep.subr.bf16.mxu0 %v3833_v41  ;;  %2334 = vmatpush1.bf16.msra.mxu1 %v4066_v15  ;;  %v619_v41 = vld [vmem:[#allocation8 + $0x590] sm:$0xff]  ;;  %v636_v63 = vld [vmem:[#allocation8 + $0x618] sm:$0xff] }
 0x12b   : > { %2336 = vmatprep.subr.bf16.mxu1 %v4070_v1  ;;  %4890 = vst [vmem:[#allocation51_spill] sm:$0xff] %v4087_v36  ;;  %v640_v25 = vld [vmem:[#allocation8 + $0x638] sm:$0xff] }
 0x12d   : > { %2526 = vmatpush1.bf16.msra.mxu0 %v3839_v50  ;;  %v4092_v50 = vpack.c.bf16 %v623_v16, %v619_v41  ;;  %v4104_v41 = vpack.c.bf16 %v640_v25, %v636_v63  ;;  %v635_v16 = vld [vmem:[#allocation8 + $0x610] sm:$0xff]  ;;  %v652_v63 = vld [vmem:[#allocation8 + $0x698] sm:$0xff] }
 0x12e   : > { %2528 = vmatprep.subr.bf16.mxu0 %v3845_v54  ;;  %2338 = vmatpush1.bf16.msra.mxu1 %v4076_v49  ;;  %v4095_v54 = vpack.c.bf16 %v632_v18, %v628_v53  ;;  %v639_v53 = vld [vmem:[#allocation8 + $0x630] sm:$0xff]  ;;  %v656_v25 = vld [vmem:[#allocation8 + $0x6b8] sm:$0xff] }
 0x12f   : > { %2340 = vmatprep.subr.bf16.mxu1 %v4079_v4  ;;  %v1030_v4 = vld [vmem:[#allocation2 + $0x8] sm:$0xfe] }
 0x131   : > { %2530 = vmatpush1.bf16.msra.mxu0 %v3851_v62  ;;  %v1043_v62 = vrot.slane %v1030_v4, 1 }
 0x132   : > { %2532 = vmatprep.subr.bf16.mxu0 %v3857_v3  ;;  %2342 = vmatpush1.bf16.msra.mxu1 %v4084_v28  ;;  %v4101_v3 = vpack.c.bf16 %v631_v22, %v627_v20  ;;  %v643_v20 = vld [vmem:[#allocation8 + $0x650] sm:$0xff] }
 0x133   : > { %2344 = vmatprep.subr.bf16.mxu1 %v4087_v36  ;;  %v4109_v18 = vsel %vm1039_vm0, %v1043_v62, %v4805_v55  ;;  %v648_v36 = vld [vmem:[#allocation8 + $0x678] sm:$0xff]  ;;  %v647_v22 = vld [vmem:[#allocation8 + $0x670] sm:$0xff] }
 0x134   : > { %1120 = vmatprep.mubr.f32.mxu0 %v4109_v18  ;;  %v651_v62 = vld [vmem:[#allocation8 + $0x690] sm:$0xff]  ;;  %v449_v55 = vld [vmem:[#allocation8 + $0x78] sm:$0xff] }
 0x135   : > { %2534 = vmatpush1.bf16.msra.mxu0 %v3863_v14  ;;  %v644_v14 = vld [vmem:[#allocation8 + $0x658] sm:$0xff] }
 0x136   : > { %2536 = vmatprep.subr.bf16.mxu0 %v3869_v21  ;;  %2346 = vmatpush1.bf16.msra.mxu1 %v4092_v50  ;;  %v4115_v21 = vpack.c.bf16 %v639_v53, %v635_v16  ;;  %v4118_v4 = vpack.c.bf16 %v648_v36, %v644_v14  ;;  %v655_v16 = vld [vmem:[#allocation8 + $0x6b0] sm:$0xff]  ;;  %v660_v36 = vld [vmem:[#allocation8 + $0x6d8] sm:$0xff] }
 0x137   : > { %2348 = vmatprep.subr.bf16.mxu1 %v4095_v54  ;;  %v664_v53 = vld [vmem:[#allocation8 + $0x6f8] sm:$0xff]  ;;  %v659_v14 = vld [vmem:[#allocation8 + $0x6d0] sm:$0xff] }
 0x139   : > { %2538 = vmatpush1.bf16.msra.mxu0 %v3875_v32  ;;  %v4123_v32 = vpack.c.bf16 %v647_v22, %v643_v20  ;;  %v663_v20 = vld [vmem:[#allocation8 + $0x6f0] sm:$0xff]  ;;  %v668_v22 = vld [vmem:[#allocation8 + $0x718] sm:$0xff] }
 0x13a   : > { %2540 = vmatprep.subr.bf16.mxu0 %v3881_v38  ;;  %2350 = vmatpush1.bf16.msra.mxu1 %v4101_v3  ;;  %v4126_v38 = vpack.c.bf16 %v656_v25, %v652_v63  ;;  %v672_v63 = vld [vmem:[#allocation8 + $0x738] sm:$0xff]  ;;  %v667_v25 = vld [vmem:[#allocation8 + $0x710] sm:$0xff] }
 0x13b   : > { %2352 = vmatprep.subr.bf16.mxu1 %v4104_v41 }
 0x13d   : > { %2542 = vmatpush1.bf16.msra.mxu0 %v3887_v48  ;;  %v4131_v48 = vpack.c.bf16 %v655_v16, %v651_v62  ;;  %v671_v62 = vld [vmem:[#allocation8 + $0x730] sm:$0xff]  ;;  %v676_v16 = vld [vmem:[#allocation8 + $0x758] sm:$0xff] }
 0x13e   : > { %2544 = vmatprep.subr.bf16.mxu0 %v3893_v56  ;;  %2354 = vmatpush1.bf16.msra.mxu1 %v4115_v21  ;;  %v4134_v56 = vpack.c.bf16 %v664_v53, %v660_v36  ;;  %v680_v36 = vld [vmem:[#allocation8 + $0x778] sm:$0xff]  ;;  %v675_v53 = vld [vmem:[#allocation8 + $0x750] sm:$0xff] }
 0x13f   : > { %2356 = vmatprep.subr.bf16.mxu1 %v4118_v4 }
 0x141   : > { %2546 = vmatpush1.bf16.msra.mxu0 %v3899_v5  ;;  %v4139_v5 = vpack.c.bf16 %v663_v20, %v659_v14  ;;  %v679_v14 = vld [vmem:[#allocation8 + $0x770] sm:$0xff]  ;;  %v684_v20 = vld [vmem:[#allocation8 + $0x798] sm:$0xff] }
 0x142   : > { %2548 = vmatprep.subr.bf16.mxu0 %v3905_v12  ;;  %2358 = vmatpush1.bf16.msra.mxu1 %v4123_v32  ;;  %v4142_v12 = vpack.c.bf16 %v672_v63, %v668_v22  ;;  %v688_v22 = vld [vmem:[#allocation8 + $0x7b8] sm:$0xff]  ;;  %v683_v63 = vld [vmem:[#allocation8 + $0x790] sm:$0xff] }
 0x143   : > { %2360 = vmatprep.subr.bf16.mxu1 %v4126_v38 }
 0x145   : > { %2550 = vmatpush1.bf16.msra.mxu0 %v3911_v30  ;;  %v4147_v30 = vpack.c.bf16 %v671_v62, %v667_v25  ;;  %v687_v25 = vld [vmem:[#allocation8 + $0x7b0] sm:$0xff]  ;;  %v692_v62 = vld [vmem:[#allocation8 + $0x7d8] sm:$0xff] }
 0x146   : > { %2552 = vmatprep.subr.bf16.mxu0 %v3917_v40  ;;  %2362 = vmatpush1.bf16.msra.mxu1 %v4131_v48  ;;  %v4150_v40 = vpack.c.bf16 %v680_v36, %v676_v16  ;;  %v696_v16 = vld [vmem:[#allocation8 + $0x7f8] sm:$0xff]  ;;  %v691_v36 = vld [vmem:[#allocation8 + $0x7d0] sm:$0xff] }
 0x147   : > { %2364 = vmatprep.subr.bf16.mxu1 %v4134_v56 }
 0x149   : > { %2554 = vmatpush1.bf16.msra.mxu0 %v3923_v60  ;;  %v4155_v60 = vpack.c.bf16 %v679_v14, %v675_v53  ;;  %v695_v53 = vld [vmem:[#allocation8 + $0x7f0] sm:$0xff]  ;;  %v437_v14 = vld [vmem:[#allocation8 + $0x18] sm:$0xff] }
 0x14a   : > { %2556 = vmatprep.subr.bf16.mxu0 %v3929_v9  ;;  %2366 = vmatpush1.bf16.msra.mxu1 %v4139_v5  ;;  %v4158_v9 = vpack.c.bf16 %v688_v22, %v684_v20  ;;  %v441_v20 = vld [vmem:[#allocation8 + $0x38] sm:$0xff]  ;;  %v1029_v22 = vld [vmem:[#allocation2] sm:$0xfe] }
 0x14b   : > { %2368 = vmatprep.subr.bf16.mxu1 %v4142_v12 }
 0x14d   : > { %2558 = vmatpush1.bf16.msra.mxu0 %v3951_v44  ;;  %v4163_v44 = vpack.c.bf16 %v687_v25, %v683_v63  ;;  %v436_v63 = vld [vmem:[#allocation8 + $0x10] sm:$0xff] }
 0x14e   : > { %2560 = vmatprep.subr.bf16.mxu0 %v3958_v52  ;;  %2370 = vmatpush1.bf16.msra.mxu1 %v4147_v30  ;;  %v4166_v52 = vpack.c.bf16 %v696_v16, %v692_v62  ;;  %v440_v25 = vld [vmem:[#allocation8 + $0x30] sm:$0xff]  ;;  %v4807_v62 = vrot.slane %v4018_v57, 1  ;;  %v445_v16 = vld [vmem:[#allocation8 + $0x58] sm:$0xff] }
 0x14f   : > { %2372 = vmatprep.subr.bf16.mxu1 %v4150_v40 }
 0x150   : > { %4891 = vst [vmem:[#allocation52_spill] sm:$0xff] %v4166_v52 }
 0x151   : > { %2562 = vmatpush1.bf16.msra.mxu0 %v3964_v0  ;;  %v4171_v0 = vpack.c.bf16 %v695_v53, %v691_v36  ;;  %v4183_v36 = vpack.c.bf16 %v449_v55, %v445_v16  ;;  %v444_v53 = vld [vmem:[#allocation8 + $0x50] sm:$0xff] }
 0x152   : > { %2564 = vmatprep.subr.bf16.mxu0 %v3970_v8  ;;  %2374 = vmatpush1.bf16.msra.mxu1 %v4155_v60  ;;  %v4174_v8 = vpack.c.bf16 %v441_v20, %v437_v14  ;;  %v448_v14 = vld [vmem:[#allocation8 + $0x70] sm:$0xff]  ;;  %v453_v20 = vld [vmem:[#allocation8 + $0x98] sm:$0xff] }
 0x153   : > { %2376 = vmatprep.subr.bf16.mxu1 %v4158_v9  ;;  %v460_v16 = vld [vmem:[#allocation8 + $0xd0] sm:$0xff] }
 0x155   : > { %2566 = vmatpush1.bf16.msra.mxu0 %v3976_v31  ;;  %v1040_v31 = vrot.slane %v1029_v22, 1  ;;  %v456_v22 = vld [vmem:[#allocation8 + $0xb0] sm:$0xff] }
 0x156   : > { %2568 = vmatprep.subr.bf16.mxu0 %v3982_v13  ;;  %2378 = vmatpush1.bf16.msra.mxu1 %v4163_v44  ;;  %v4180_v13 = vpack.c.bf16 %v440_v25, %v436_v63  ;;  %v461_v63 = vld [vmem:[#allocation8 + $0xd8] sm:$0xff] }
 0x157   : > { %2380 = vmatprep.subr.bf16.mxu1 %v4166_v52  ;;  %v457_v52 = vld [vmem:[#allocation8 + $0xb8] sm:$0xff] }
 0x158   : > { %v4198_v55 = vpack.c.bf16 %v457_v52, %v453_v20  ;;  %v465_v25 = vld [vmem:[#allocation8 + $0xf8] sm:$0xff]  ;;  %v468_v20 = vld [vmem:[#allocation8 + $0x110] sm:$0xff] }
 0x159   : > { %2570 = vmatpush1.bf16.msra.mxu0 %v3988_v7  ;;  %v4189_v7 = vsel %vm1039_vm0, %v1040_v31, %v4807_v62  ;;  %v4209_v52 = vpack.c.bf16 %v465_v25, %v461_v63  ;;  %v464_v31 = vld [vmem:[#allocation8 + $0xf0] sm:$0xff]  ;;  %v481_v63 = vld [vmem:[#allocation8 + $0x178] sm:$0xff] }
 0x15a   : > { %2572 = vmatprep.subr.bf16.mxu0 %v3994_v39  ;;  %2382 = vmatpush1.bf16.msra.mxu1 %v4171_v0  ;;  %v4194_v39 = vpack.c.bf16 %v448_v14, %v444_v53  ;;  %v469_v53 = vld [vmem:[#allocation8 + $0x118] sm:$0xff]  ;;  %v476_v25 = vld [vmem:[#allocation8 + $0x150] sm:$0xff] }
 0x15b   : > { %2448 = vmatprep.subr.bf16.mxu1 %v4174_v8  ;;  %4893 = vst [vmem:[#allocation54_spill] sm:$0xff] %v4209_v52  ;;  %v473_v14 = vld [vmem:[#allocation8 + $0x138] sm:$0xff] }
 0x15c   : > { %v489_v62 = vld [vmem:[#allocation8 + $0x1b8] sm:$0xff] }
 0x15d   : > { %2574 = vmatpush1.bf16.msra.mxu0 %v4000_v47  ;;  %845 = vmatmul.mubr.f32.vlgmr.msra.gmra.mrb[6].mxu1 %v3940_v34  ;;  %v452_v47 = vld [vmem:[#allocation8 + $0x90] sm:$0xff] }
 0x15e   : > { %2640 = vmatprep.subr.bf16.mxu0 %v3801_v6  ;;  %2450 = vmatpush1.bf16.msra.mxu1 %v4180_v13  ;;  %v4205_v6 = vpack.c.bf16 %v456_v22, %v452_v47  ;;  %v472_v47 = vld [vmem:[#allocation8 + $0x130] sm:$0xff]  ;;  %v477_v22 = vld [vmem:[#allocation8 + $0x158] sm:$0xff] }
 0x15f   : > { %850 = vmatprep.mubr.f32.mxu1 %v4009_v61  ;;  %2452 = vmatprep.subr.bf16.mxu1 %v4183_v36 }
 0x160   : > { %1121 = vmatmul.mubr.f32.vlgmr.msra.gmra.mrb[6].mxu0 %v4189_v7  ;;  %4892 = vst [vmem:[#allocation53_spill] sm:$0xff] %v4205_v6 }
 0x161   : > { %2642 = vmatpush1.bf16.msra.mxu0 %v3806_v11  ;;  %851 = vmatmul.mubr.f32.gmra.mrb[8].mxu1 %v4015_v23  ;;  %v4215_v11 = vpack.c.bf16 %v464_v31, %v460_v16  ;;  %v480_v16 = vld [vmem:[#allocation8 + $0x170] sm:$0xff] }
 0x162   : > { %2644 = vmatprep.subr.bf16.mxu0 %v3813_v19  ;;  %2454 = vmatpush1.bf16.msra.mxu1 %v4194_v39  ;;  %v4219_v19 = vpack.c.bf16 %v473_v14, %v469_v53  ;;  %v1031_v53 = vld [vmem:[#allocation2 + $0x40] sm:$0x3]  ;;  %v485_v14 = vld [vmem:[#allocation8 + $0x198] sm:$0xff] }
 0x163   : > { %856 = vmatprep.mubr.f32.mxu1 %v4048_v59  ;;  %2456 = vmatprep.subr.bf16.mxu1 %v4198_v55  ;;  %4894 = vst [vmem:[#allocation55_spill] sm:$0xff] %v4215_v11 }
 0x164   : > { %4895 = vst [vmem:[#allocation56_spill] sm:$0xff] %v4219_v19 }
 0x165   : > { %2646 = vmatpush1.bf16.msra.mxu0 %v3818_v24  ;;  %857 = vmatmul.mubr.f32.gmra.mrb[10].mxu1 %v4057_v45  ;;  %v4224_v24 = vpack.c.bf16 %v472_v47, %v468_v20  ;;  %v4899_v20 = vrot.slane %v4012_v17, 1 }
 0x166   : > { %2648 = vmatprep.subr.bf16.mxu0 %v3823_v29  ;;  %2458 = vmatpush1.bf16.msra.mxu1 %v4205_v6  ;;  %v1032_v29 = vld [vmem:[#allocation2 + $0x48] sm:$0x3]  ;;  %v4912_v6 = vld [vmem:[#allocation29_spill] sm:$0xff] }
 0x167   : > { %1010 = vmatprep.mubr.f32.mxu1 %v3937_v27  ;;  %2460 = vmatprep.subr.bf16.mxu1 %v4209_v52  ;;  %4896 = vst [vmem:[#allocation57_spill] sm:$0xff] %v4224_v24  ;;  %v4227_v27 = vpack.c.bf16 %v481_v63, %v477_v22  ;;  %v4229_v31 = vrot.slane %v1032_v29, 1  ;;  %v4242_v22 = vpack.c.bf16 %v480_v16, %v476_v25  ;;  %v4901_v63 = vrot.slane %v4018_v57, 1  ;;  %v4903_v25 = vld [vmem:[#allocation24_spill] sm:$0xff]  ;;  %v4904_v16 = vld [vmem:[#allocation25_spill] sm:$0xff]  ;;  %v4907_v52 = vld [vmem:[#allocation26_spill] sm:$0xff] }
 0x168   : > { %v4252_v29 = vpack.c.bf16 %v489_v62, %v485_v14  ;;  %v492_v14 = vld [vmem:[#allocation8 + $0x1d0] sm:$0xff] }
 0x169   : > { %2650 = vmatpush1.bf16.msra.mxu0 %v3829_v37  ;;  %4897 = vst [vmem:[#allocation58_spill] sm:$0xff] %v4227_v27  ;;  %v4232_v37 = vrot.slane %v1031_v53, 1  ;;  %v4239_v47 = vsel %vm1039_vm0, %v4899_v20, %v4229_v31  ;;  %v484_v53 = vld [vmem:[#allocation8 + $0x190] sm:$0xff]  ;;  %v493_v20 = vld [vmem:[#allocation8 + $0x1d8] sm:$0xff] }
 0x16a   : > { %2652 = vmatprep.subr.bf16.mxu0 %v3835_v42  ;;  %2462 = vmatpush1.bf16.msra.mxu1 %v4215_v11  ;;  %v4898_v42 = vld [vmem:[#allocation23_spill] sm:$0xff]  ;;  %4902 = vst [vmem:[#allocation59_spill] sm:$0xff] %v4252_v29  ;;  %v505_v11 = vld [vmem:[#allocation8 + $0x238] sm:$0xff] }
 0x16b   : > { %2464 = vmatprep.subr.bf16.mxu1 %v4219_v19  ;;  %4900 = vst [vmem:[#allocation23_spill] sm:$0xff] %v4242_v22  ;;  %1126 = vmatprep.mubr.f32.mxu0 %v4239_v47  ;;  %v501_v19 = vld [vmem:[#allocation8 + $0x218] sm:$0xff] }
 0x16d   : > { %2654 = vmatpush1.bf16.msra.mxu0 %v3841_v51  ;;  %v4249_v51 = vsel %vm1039_vm0, %v4901_v63, %v4232_v37 }
 0x16e   : > { %2656 = vmatprep.subr.bf16.mxu0 %v4898_v42  ;;  %2466 = vmatpush1.bf16.msra.mxu1 %v4224_v24  ;;  %v488_v42 = vld [vmem:[#allocation8 + $0x1b0] sm:$0xff]  ;;  %v497_v24 = vld [vmem:[#allocation8 + $0x1f8] sm:$0xff] }
 0x16f   : > { %2468 = vmatprep.subr.bf16.mxu1 %v4227_v27  ;;  %1127 = vmatmul.mubr.f32.gmra.mrb[8].mxu0 %v4249_v51  ;;  %v4259_v63 = vpack.c.bf16 %v488_v42, %v484_v53  ;;  %v4262_v62 = vpack.c.bf16 %v497_v24, %v493_v20  ;;  %v496_v27 = vld [vmem:[#allocation8 + $0x1f0] sm:$0xff]  ;;  %v4272_v24 = vpack.c.bf16 %v505_v11, %v501_v19  ;;  %v517_v11 = vld [vmem:[#allocation8 + $0x298] sm:$0xff] }
 0x170   : > { %1132 = vmatprep.mubr.f32.mxu0 %v4229_v31  ;;  %v4269_v53 = vpack.c.bf16 %v496_v27, %v492_v14  ;;  %v500_v42 = vld [vmem:[#allocation8 + $0x210] sm:$0xff]  ;;  %v521_v19 = vld [vmem:[#allocation8 + $0x2b8] sm:$0xff] }
 0x171   : > { %2658 = vmatpush1.bf16.msra.mxu0 %v4903_v25  ;;  %4905 = vst [vmem:[#allocation24_spill] sm:$0xff] %v4259_v63  ;;  %4906 = vst [vmem:[#allocation25_spill] sm:$0xff] %v4262_v62  ;;  %v4908_v25 = vld [vmem:[#allocation27_spill] sm:$0xff]  ;;  %v504_v20 = vld [vmem:[#allocation8 + $0x230] sm:$0xff] }
 0x172   : > { %2660 = vmatprep.subr.bf16.mxu0 %v4904_v16  ;;  %2470 = vmatpush1.bf16.msra.mxu1 %v4242_v22  ;;  %4909 = vst [vmem:[#allocation26_spill] sm:$0xff] %v4269_v53  ;;  %4910 = vst [vmem:[#allocation27_spill] sm:$0xff] %v4272_v24  ;;  %v509_v16 = vld [vmem:[#allocation8 + $0x258] sm:$0xff]  ;;  %v4911_v22 = vld [vmem:[#allocation28_spill] sm:$0xff] }
 0x173   : > { %2472 = vmatprep.subr.bf16.mxu1 %v4252_v29  ;;  %1133 = vmatmul.mubr.f32.gmra.mrb[10].mxu0 %v4232_v37  ;;  %v513_v29 = vld [vmem:[#allocation8 + $0x278] sm:$0xff]  ;;  %v508_v14 = vld [vmem:[#allocation8 + $0x250] sm:$0xff] }
 0x174   : > { %1282 = vmatprep.mubr.f32.mxu0 %v3934_v26  ;;  %v4280_v27 = vpack.c.bf16 %v513_v29, %v509_v16  ;;  %v525_v29 = vld [vmem:[#allocation8 + $0x2d8] sm:$0xff] }
 0x175   : > { %2662 = vmatpush1.bf16.msra.mxu0 %v4907_v52  ;;  %v4277_v52 = vpack.c.bf16 %v504_v20, %v500_v42  ;;  %v516_v42 = vld [vmem:[#allocation8 + $0x290] sm:$0xff]  ;;  %v529_v16 = vld [vmem:[#allocation8 + $0x2f8] sm:$0xff] }
 0x176   : > { %2664 = vmatprep.subr.bf16.mxu0 %v4908_v25  ;;  %2474 = vmatpush1.bf16.msra.mxu1 %v4259_v63  ;;  %4914 = vst [vmem:[#allocation29_spill] sm:$0xff] %v4280_v27  ;;  %v512_v25 = vld [vmem:[#allocation8 + $0x270] sm:$0xff]  ;;  %v4916_v63 = vld [vmem:[#allocation31_spill] sm:$0xff] }
 0x177   : > { %2476 = vmatprep.subr.bf16.mxu1 %v4262_v62  ;;  %4913 = vst [vmem:[#allocation28_spill] sm:$0xff] %v4277_v52  ;;  %v4915_v62 = vld [vmem:[#allocation30_spill] sm:$0xff]  ;;  %v520_v20 = vld [vmem:[#allocation8 + $0x2b0] sm:$0xff] }
 0x179   : > { %2666 = vmatpush1.bf16.msra.mxu0 %v4911_v22  ;;  %v4285_v22 = vpack.c.bf16 %v512_v25, %v508_v14  ;;  %v524_v14 = vld [vmem:[#allocation8 + $0x2d0] sm:$0xff] }
 0x17a   : > { %2668 = vmatprep.subr.bf16.mxu0 %v4912_v6  ;;  %2478 = vmatpush1.bf16.msra.mxu1 %v4269_v53  ;;  %v4288_v6 = vpack.c.bf16 %v521_v19, %v517_v11  ;;  %v4920_v53 = vld [vmem:[#allocation33_spill] sm:$0xff] }
 0x17b   : > { %2480 = vmatprep.subr.bf16.mxu1 %v4272_v24  ;;  %4917 = vst [vmem:[#allocation30_spill] sm:$0xff] %v4285_v22  ;;  %v4919_v24 = vld [vmem:[#allocation32_spill] sm:$0xff]  ;;  %v533_v11 = vld [vmem:[#allocation8 + $0x318] sm:$0xff] }
 0x17c   : > { %4918 = vst [vmem:[#allocation31_spill] sm:$0xff] %v4288_v6  ;;  %v528_v25 = vld [vmem:[#allocation8 + $0x2f0] sm:$0xff]  ;;  %v537_v19 = vld [vmem:[#allocation8 + $0x338] sm:$0xff] }
 0x17d   : > { %2670 = vmatpush1.bf16.msra.mxu0 %v4915_v62  ;;  %v4293_v62 = vpack.c.bf16 %v520_v20, %v516_v42  ;;  %v532_v42 = vld [vmem:[#allocation8 + $0x310] sm:$0xff] }
 0x17e   : > { %2672 = vmatprep.subr.bf16.mxu0 %v4916_v63  ;;  %2482 = vmatpush1.bf16.msra.mxu1 %v4277_v52  ;;  %v4296_v63 = vpack.c.bf16 %v529_v16, %v525_v29  ;;  %v4924_v52 = vld [vmem:[#allocation35_spill] sm:$0xff]  ;;  %v536_v20 = vld [vmem:[#allocation8 + $0x330] sm:$0xff]  ;;  %v541_v29 = vld [vmem:[#allocation8 + $0x358] sm:$0xff] }
 0x17f   : > { %2484 = vmatprep.subr.bf16.mxu1 %v4280_v27  ;;  %4921 = vst [vmem:[#allocation32_spill] sm:$0xff] %v4293_v62  ;;  %v4923_v27 = vld [vmem:[#allocation34_spill] sm:$0xff] }
 0x180   : > { %4922 = vst [vmem:[#allocation33_spill] sm:$0xff] %v4296_v63  ;;  %v545_v16 = vld [vmem:[#allocation8 + $0x378] sm:$0xff] }
 0x181   : > { %2674 = vmatpush1.bf16.msra.mxu0 %v4919_v24  ;;  %v4301_v24 = vpack.c.bf16 %v528_v25, %v524_v14  ;;  %v540_v14 = vld [vmem:[#allocation8 + $0x350] sm:$0xff] }
 0x182   : > { %2676 = vmatprep.subr.bf16.mxu0 %v4920_v53  ;;  %2486 = vmatpush1.bf16.msra.mxu1 %v4285_v22  ;;  %v4304_v53 = vpack.c.bf16 %v537_v19, %v533_v11  ;;  %v4928_v22 = vld [vmem:[#allocation37_spill] sm:$0xff] }
 0x183   : > { %2488 = vmatprep.subr.bf16.mxu1 %v4288_v6  ;;  %4925 = vst [vmem:[#allocation34_spill] sm:$0xff] %v4301_v24  ;;  %v4927_v6 = vld [vmem:[#allocation36_spill] sm:$0xff]  ;;  %v549_v11 = vld [vmem:[#allocation8 + $0x398] sm:$0xff] }
 0x184   : > { %4926 = vst [vmem:[#allocation35_spill] sm:$0xff] %v4304_v53  ;;  %v544_v25 = vld [vmem:[#allocation8 + $0x370] sm:$0xff]  ;;  %v553_v19 = vld [vmem:[#allocation8 + $0x3b8] sm:$0xff] }
 0x185   : > { %2678 = vmatpush1.bf16.msra.mxu0 %v4923_v27  ;;  %v4309_v27 = vpack.c.bf16 %v536_v20, %v532_v42  ;;  %v548_v42 = vld [vmem:[#allocation8 + $0x390] sm:$0xff] }
 0x186   : > { %2680 = vmatprep.subr.bf16.mxu0 %v4924_v52  ;;  %2490 = vmatpush1.bf16.msra.mxu1 %v4293_v62  ;;  %v4312_v52 = vpack.c.bf16 %v545_v16, %v541_v29  ;;  %v4931_v62 = vld [vmem:[#allocation39_spill] sm:$0xff]  ;;  %v552_v20 = vld [vmem:[#allocation8 + $0x3b0] sm:$0xff]  ;;  %v557_v29 = vld [vmem:[#allocation8 + $0x3d8] sm:$0xff] }
 0x187   : > { %2492 = vmatprep.subr.bf16.mxu1 %v4296_v63  ;;  %v4930_v63 = vld [vmem:[#allocation38_spill] sm:$0xff] }
 0x188   : > { %4929 = vst [vmem:[#allocation36_spill] sm:$0xff] %v4312_v52  ;;  %v561_v16 = vld [vmem:[#allocation8 + $0x3f8] sm:$0xff] }
 0x189   : > { %2682 = vmatpush1.bf16.msra.mxu0 %v4927_v6  ;;  %v4317_v6 = vpack.c.bf16 %v544_v25, %v540_v14  ;;  %v556_v14 = vld [vmem:[#allocation8 + $0x3d0] sm:$0xff] }
 0x18a   : > { %2684 = vmatprep.subr.bf16.mxu0 %v4928_v22  ;;  %2494 = vmatpush1.bf16.msra.mxu1 %v4301_v24  ;;  %v4320_v22 = vpack.c.bf16 %v553_v19, %v549_v11  ;;  %v4933_v24 = vld [vmem:[#allocation41_spill] sm:$0xff]  ;;  %v4934_v11 = vld [vmem:[#allocation42_spill] sm:$0xff]  ;;  %v4935_v19 = vld [vmem:[#allocation43_spill] sm:$0xff] }
 0x18b   : > { %2496 = vmatprep.subr.bf16.mxu1 %v4304_v53  ;;  %v4932_v53 = vld [vmem:[#allocation40_spill] sm:$0xff] }
 0x18c   : > { %v560_v25 = vld [vmem:[#allocation8 + $0x3f0] sm:$0xff] }
 0x18d   : > { %2686 = vmatpush1.bf16.msra.mxu0 %v4930_v63  ;;  %v4325_v63 = vpack.c.bf16 %v552_v20, %v548_v42  ;;  %v4938_v42 = vld [vmem:[#allocation46_spill] sm:$0xff] }
 0x18e   : > { %2688 = vmatprep.subr.bf16.mxu0 %v4931_v62  ;;  %2498 = vmatpush1.bf16.msra.mxu1 %v4309_v27  ;;  %v4328_v62 = vpack.c.bf16 %v561_v16, %v557_v29  ;;  %v1827_v29 = vld [vmem:[#allocation11 + $0x408] sm:$0xff]  ;;  %v1829_v16 = vld [vmem:[#allocation11 + $0x418] sm:$0xff] }
 0x18f   : > { %2500 = vmatprep.subr.bf16.mxu1 %v4312_v52  ;;  %v4333_v52 = vpack.c.bf16 %v560_v25, %v556_v14  ;;  %v4965_v20 = vld [vmem:[#allocation36_spill] sm:$0xff]  ;;  %v4432_v14 = vpack.c.bf16 %v1829_v16, %v1827_v29  ;;  %v1826_v25 = vld [vmem:[#allocation11 + $0x400] sm:$0xff] }
 0x190   : > { %v1846_v16 = vld [vmem:[#allocation11 + $0x4a0] sm:$0xff] }
 0x191   : > { %2690 = vmatpush1.bf16.msra.mxu0 %v4932_v53  ;;  %v4937_v53 = vld [vmem:[#allocation45_spill] sm:$0xff] }
 0x192   : > { %2692 = vmatprep.subr.bf16.mxu0 %v4933_v24  ;;  %2502 = vmatpush1.bf16.msra.mxu1 %v4317_v6  ;;  %v4936_v24 = vld [vmem:[#allocation44_spill] sm:$0xff] }
 0x193   : > { %2504 = vmatprep.subr.bf16.mxu1 %v4320_v22 }
 0x195   : > { %2694 = vmatpush1.bf16.msra.mxu0 %v4934_v11  ;;  %v1828_v11 = vld [vmem:[#allocation11 + $0x410] sm:$0xff] }
 0x196   : > { %2696 = vmatprep.subr.bf16.mxu0 %v4935_v19  ;;  %2506 = vmatpush1.bf16.msra.mxu1 %v4325_v63  ;;  %v1831_v19 = vld [vmem:[#allocation11 + $0x428] sm:$0xff] }
 0x197   : > { %2508 = vmatprep.subr.bf16.mxu1 %v4328_v62 }
 0x199   : > { %2698 = vmatpush1.bf16.msra.mxu0 %v4936_v24  ;;  %v1833_v24 = vld [vmem:[#allocation11 + $0x438] sm:$0xff] }
 0x19a   : > { %2700 = vmatprep.subr.bf16.mxu0 %v4937_v53  ;;  %2510 = vmatpush1.bf16.msra.mxu1 %v4333_v52  ;;  %v1832_v53 = vld [vmem:[#allocation11 + $0x430] sm:$0xff] }
 0x19b   : > { %2576 = vmatprep.subr.bf16.mxu1 %v4006_v33  ;;  %v4939_v33 = vld [vmem:[#allocation47_spill] sm:$0xff] }
 0x19d   : > { %2702 = vmatpush1.bf16.msra.mxu0 %v4002_v58  ;;  %1011 = vmatmul.mubr.f32.vlgmr.msra.gmra.mrb[6].mxu1 %v3947_v35  ;;  %v4940_v35 = vld [vmem:[#allocation48_spill] sm:$0xff]  ;;  %v4943_v58 = vld [vmem:[#allocation51_spill] sm:$0xff] }
 0x19e   : > { %2578 = vmatpush1.bf16.msra.mxu1 %v4022_v43  ;;  %1016 = vmatprep.mubr.f32.mxu1 %v4012_v17  ;;  %v4942_v17 = vld [vmem:[#allocation50_spill] sm:$0xff]  ;;  %v4945_v43 = vld [vmem:[#allocation53_spill] sm:$0xff] }
 0x19f   : > { %2580 = vmatprep.subr.bf16.mxu1 %v4026_v46  ;;  %v4946_v46 = vld [vmem:[#allocation54_spill] sm:$0xff] }
 0x1a0   : > { %1283 = vmatmul.mubr.f32.vlgmr.msra.gmra.mrb[6].mxu0 %v3940_v34  ;;  %v4941_v34 = vld [vmem:[#allocation49_spill] sm:$0xff] }
 0x1a1   : > { %1288 = vmatprep.mubr.f32.mxu0 %v4009_v61  ;;  %1017 = vmatmul.mubr.f32.gmra.mrb[8].mxu1 %v4018_v57  ;;  %v4944_v57 = vld [vmem:[#allocation52_spill] sm:$0xff] }
 0x1a2   : > { %2582 = vmatpush1.bf16.msra.mxu1 %v4938_v42  ;;  %1022 = vmatprep.mubr.f32.mxu1 %v4055_v10  ;;  %v4947_v10 = vld [vmem:[#allocation55_spill] sm:$0xff] }
 0x1a3   : > { %2584 = vmatprep.subr.bf16.mxu1 %v4939_v33  ;;  %v1835_v42 = vld [vmem:[#allocation11 + $0x448] sm:$0xff] }
 0x1a4   : > { %1289 = vmatmul.mubr.f32.gmra.mrb[8].mxu0 %v4015_v23  ;;  %v3174_v33 = vld [vmem:[#allocation2 + $0x10] sm:$0xff] }
 0x1a5   : > { %1294 = vmatprep.mubr.f32.mxu0 %v4048_v59  ;;  %1023 = vmatmul.mubr.f32.gmra.mrb[10].mxu1 %v4060_v2  ;;  %v4948_v2 = vld [vmem:[#allocation56_spill] sm:$0xff] }
 0x1a6   : > { %2586 = vmatpush1.bf16.msra.mxu1 %v4940_v35  ;;  %1201 = vmatprep.mubr.f32.mxu1 %v4109_v18  ;;  %v4951_v18 = vld [vmem:[#allocation23_spill] sm:$0xff]  ;;  %v1836_v35 = vld [vmem:[#allocation11 + $0x450] sm:$0xff] }
 0x1a7   : > { %2588 = vmatprep.subr.bf16.mxu1 %v4941_v34  ;;  %v1608_v34 = vld [vmem:[#allocation11 + $0x208] sm:$0xff] }
 0x1a8   : > { %1295 = vmatmul.mubr.f32.gmra.mrb[12].mxu0 %v4057_v45 }
 0x1aa   : > { %2590 = vmatpush1.bf16.msra.mxu1 %v4066_v15  ;;  %v4949_v15 = vld [vmem:[#allocation57_spill] sm:$0xff] }
 0x1ab   : > { %2592 = vmatprep.subr.bf16.mxu1 %v4070_v1  ;;  %v4950_v1 = vld [vmem:[#allocation58_spill] sm:$0xff] }
 0x1ae   : > { %2594 = vmatpush1.bf16.msra.mxu1 %v4076_v49 }
 0x1af   : > { %2596 = vmatprep.subr.bf16.mxu1 %v4942_v17  ;;  %v1610_v17 = vld [vmem:[#allocation11 + $0x218] sm:$0xff] }
 0x1b2   : > { %2598 = vmatpush1.bf16.msra.mxu1 %v4084_v28 }
 0x1b3   : > { %2600 = vmatprep.subr.bf16.mxu1 %v4943_v58  ;;  %v1607_v58 = vld [vmem:[#allocation11 + $0x200] sm:$0xff] }
 0x1b6   : > { %2602 = vmatpush1.bf16.msra.mxu1 %v4092_v50 }
 0x1b7   : > { %2604 = vmatprep.subr.bf16.mxu1 %v4095_v54 }
 0x1ba   : > { %2606 = vmatpush1.bf16.msra.mxu1 %v4101_v3 }
 0x1bb   : > { %2608 = vmatprep.subr.bf16.mxu1 %v4104_v41 }
 0x1be   : > { %2610 = vmatpush1.bf16.msra.mxu1 %v4115_v21 }
 0x1bf   : > { %2612 = vmatprep.subr.bf16.mxu1 %v4118_v4 }
 0x1c2   : > { %2614 = vmatpush1.bf16.msra.mxu1 %v4123_v32 }
 0x1c3   : > { %2616 = vmatprep.subr.bf16.mxu1 %v4126_v38 }
 0x1c6   : > { %2618 = vmatpush1.bf16.msra.mxu1 %v4131_v48 }
 0x1c7   : > { %2620 = vmatprep.subr.bf16.mxu1 %v4134_v56  ;;  %v4953_v56 = vld [vmem:[#allocation24_spill] sm:$0xff] }
 0x1ca   : > { %2622 = vmatpush1.bf16.msra.mxu1 %v4139_v5 }
 0x1cb   : > { %2624 = vmatprep.subr.bf16.mxu1 %v4142_v12  ;;  %v4954_v12 = vld [vmem:[#allocation25_spill] sm:$0xff] }
 0x1ce   : > { %2626 = vmatpush1.bf16.msra.mxu1 %v4147_v30 }
 0x1cf   : > { %2628 = vmatprep.subr.bf16.mxu1 %v4150_v40 }
 0x1d2   : > { %2630 = vmatpush1.bf16.msra.mxu1 %v4155_v60 }
 0x1d3   : > { %2632 = vmatprep.subr.bf16.mxu1 %v4158_v9 }
 0x1d6   : > { %2634 = vmatpush1.bf16.msra.mxu1 %v4163_v44 }
 0x1d7   : > { %2636 = vmatprep.subr.bf16.mxu1 %v4944_v57  ;;  %v2767_v57 = vpack.c.bf16 %v1610_v17, %v1608_v34  ;;  %v1850_v34 = vld [vmem:[#allocation11 + $0x4c0] sm:$0xff] }
 0x1d9   : > { %2768 = vmatprep.subr.bf16.mxu0 %v2767_v57  ;;  %v1629_v57 = vld [vmem:[#allocation11 + $0x2b0] sm:$0xff] }
 0x1da   : > { %2638 = vmatpush1.bf16.msra.mxu1 %v4171_v0  ;;  %v4955_v0 = vld [vmem:[#allocation26_spill] sm:$0xff] }
 0x1db   : > { %2704 = vmatprep.subr.bf16.mxu1 %v4174_v8 }
 0x1dd   : > { %1202 = vmatmul.mubr.f32.vlgmr.msra.gmra.mrb[12].mxu1 %v4189_v7  ;;  %v4958_v7 = vld [vmem:[#allocation29_spill] sm:$0xff] }
 0x1de   : > { %2706 = vmatpush1.bf16.msra.mxu1 %v4180_v13  ;;  %1207 = vmatprep.mubr.f32.mxu1 %v4239_v47  ;;  %v4956_v13 = vld [vmem:[#allocation27_spill] sm:$0xff]  ;;  %v4963_v47 = vld [vmem:[#allocation34_spill] sm:$0xff] }
 0x1df   : > { %2708 = vmatprep.subr.bf16.mxu1 %v4183_v36  ;;  %v4957_v36 = vld [vmem:[#allocation28_spill] sm:$0xff] }
 0x1e1   : > { %1208 = vmatmul.mubr.f32.gmra.mrb[14].mxu1 %v4249_v51  ;;  %v4964_v51 = vld [vmem:[#allocation35_spill] sm:$0xff] }
 0x1e2   : > { %2710 = vmatpush1.bf16.msra.mxu1 %v4194_v39  ;;  %1213 = vmatprep.mubr.f32.mxu1 %v4229_v31  ;;  %v4959_v39 = vld [vmem:[#allocation30_spill] sm:$0xff]  ;;  %v4961_v31 = vld [vmem:[#allocation32_spill] sm:$0xff] }
 0x1e3   : > { %2712 = vmatprep.subr.bf16.mxu1 %v4198_v55  ;;  %v4960_v55 = vld [vmem:[#allocation31_spill] sm:$0xff] }
 0x1e5   : > { %1214 = vmatmul.mubr.f32.gmra.mrb[16].mxu1 %v4232_v37  ;;  %v4962_v37 = vld [vmem:[#allocation33_spill] sm:$0xff] }
 0x1e6   : > { %2714 = vmatpush1.bf16.msra.mxu1 %v4945_v43  ;;  %1363 = vmatprep.mubr.f32.mxu1 %v3934_v26  ;;  %v4952_v26 = vld [vmem:[#allocation59_spill] sm:$0xff]  ;;  %v1609_v43 = vld [vmem:[#allocation11 + $0x210] sm:$0xff] }
 0x1e7   : > { %2716 = vmatprep.subr.bf16.mxu1 %v4946_v46  ;;  %v1612_v46 = vld [vmem:[#allocation11 + $0x228] sm:$0xff] }
 0x1ea   : > { %2718 = vmatpush1.bf16.msra.mxu1 %v4947_v10  ;;  %v1614_v10 = vld [vmem:[#allocation11 + $0x238] sm:$0xff] }
 0x1eb   : > { %2720 = vmatprep.subr.bf16.mxu1 %v4948_v2 }
 0x1ee   : > { %2722 = vmatpush1.bf16.msra.mxu1 %v4949_v15  ;;  %v2769_v15 = vpack.c.bf16 %v1609_v43, %v1607_v58  ;;  %v1627_v58 = vld [vmem:[#allocation11 + $0x2a0] sm:$0xff] }
 0x1ef   : > { %2724 = vmatprep.subr.bf16.mxu1 %v4950_v1  ;;  %v2771_v1 = vpack.c.bf16 %v1614_v10, %v1612_v46  ;;  %v1852_v46 = vld [vmem:[#allocation11 + $0x4d0] sm:$0xff]  ;;  %v1632_v10 = vld [vmem:[#allocation11 + $0x2c8] sm:$0xff] }
 0x1f0   : > { %v763_v49 = vpop.f32.mrb[0].mxu1  ;;  %2770 = vmatpush1.bf16.msra.mxu0 %v2769_v15  ;;  %v1634_v15 = vld [vmem:[#allocation11 + $0x2d8] sm:$0xff] }
 0x1f1   : > { %v765_v54 = vpop.f32.mrb[1].mxu1  ;;  %2772 = vmatprep.subr.bf16.mxu0 %v2771_v1  ;;  %v1855_v1 = vld [vmem:[#allocation11 + $0x4e8] sm:$0xff] }
 0x1f2   : > { %v929_v28 = vpop.f32.mrb[0].mxu0  ;;  %2726 = vmatpush1.bf16.msra.mxu1 %v4951_v18  ;;  %v1841_v18 = vld [vmem:[#allocation11 + $0x478] sm:$0xff] }
 0x1f3   : > { %v4400_v50 = vadd.f32 %v929_v28, %v763_v49  ;;  %v931_v3 = vpop.f32.mrb[1].mxu0  ;;  %2728 = vmatprep.subr.bf16.mxu1 %v4952_v26  ;;  %v1611_v49 = vld [vmem:[#allocation11 + $0x220] sm:$0xff]  ;;  %v1613_v28 = vld [vmem:[#allocation11 + $0x230] sm:$0xff] }
 0x1f4   : > { %v4402_v41 = vadd.f32 %v931_v3, %v765_v54  ;;  %v769_v21 = vpop.f32.mrb[2].mxu1  ;;  %v1616_v54 = vld [vmem:[#allocation11 + $0x248] sm:$0xff]  ;;  %v2773_v26 = vpack.c.bf16 %v1613_v28, %v1611_v49  ;;  %v1857_v49 = vld [vmem:[#allocation11 + $0x4f8] sm:$0xff]  ;;  %v2789_v28 = vpack.c.bf16 %v1629_v57, %v1627_v58  ;;  %v1872_v58 = vld [vmem:[#allocation11 + $0x570] sm:$0xff] }
 0x1f5   : > { %v771_v38 = vpop.f32.mrb[3].mxu1  ;;  %v1839_v3 = vld [vmem:[#allocation11 + $0x468] sm:$0xff] }
 0x1f6   : > { %v935_v4 = vpop.f32.mrb[2].mxu0  ;;  %2730 = vmatpush1.bf16.msra.mxu1 %v4953_v56  ;;  %v1617_v56 = vld [vmem:[#allocation11 + $0x250] sm:$0xff]  ;;  %2774 = vmatpush1.bf16.msra.mxu0 %v2773_v26  ;;  %v4478_v26 = vpack.c.bf16 %v1857_v49, %v1855_v1  ;;  %v1875_v57 = vld [vmem:[#allocation11 + $0x588] sm:$0xff]  ;;  %v1874_v49 = vld [vmem:[#allocation11 + $0x580] sm:$0xff] }
 0x1f7   : > { %v4406_v32 = vadd.f32 %v935_v4, %v769_v21  ;;  %v937_v48 = vpop.f32.mrb[3].mxu0  ;;  %2732 = vmatprep.subr.bf16.mxu1 %v4954_v12  ;;  %v1838_v4 = vld [vmem:[#allocation11 + $0x460] sm:$0xff]  ;;  %v4453_v12 = vpack.c.bf16 %v1841_v18, %v1839_v3  ;;  %v2791_v3 = vpack.c.bf16 %v1634_v15, %v1632_v10 }
 0x1f8   : > { %v4409_v5 = vadd.f32 %v937_v48, %v771_v38  ;;  %v775_v30 = vpop.f32.mrb[4].mxu1  ;;  %v1615_v48 = vld [vmem:[#allocation11 + $0x240] sm:$0xff] }
 0x1f9   : > { %v777_v9 = vpop.f32.mrb[5].mxu1  ;;  %v1631_v18 = vld [vmem:[#allocation11 + $0x2c0] sm:$0xff] }
 0x1fa   : > { %v941_v40 = vpop.f32.mrb[4].mxu0  ;;  %2734 = vmatpush1.bf16.msra.mxu1 %v4955_v0  ;;  %v2777_v0 = vpack.c.bf16 %v1617_v56, %v1615_v48  ;;  %v1859_v48 = vld [vmem:[#allocation11 + $0x508] sm:$0xff]  ;;  %v1861_v56 = vld [vmem:[#allocation11 + $0x518] sm:$0xff] }
 0x1fb   : > { %v4412_v60 = vadd.f32 %v941_v40, %v775_v30  ;;  %v943_v44 = vpop.f32.mrb[5].mxu0  ;;  %2736 = vmatprep.subr.bf16.mxu1 %v4956_v13  ;;  %v1840_v30 = vld [vmem:[#allocation11 + $0x470] sm:$0xff]  ;;  %v1620_v40 = vld [vmem:[#allocation11 + $0x268] sm:$0xff]  ;;  %v1842_v13 = vld [vmem:[#allocation11 + $0x480] sm:$0xff] }
 0x1fc   : > { %v4415_v8 = vadd.f32 %v943_v44, %v777_v9  ;;  %v1843_v9 = vld [vmem:[#allocation11 + $0x488] sm:$0xff]  ;;  %v1845_v44 = vld [vmem:[#allocation11 + $0x498] sm:$0xff] }
 0x1fe   : > { %2738 = vmatpush1.bf16.msra.mxu1 %v4957_v36 }
 0x1ff   : > { %2740 = vmatprep.subr.bf16.mxu1 %v4958_v7  ;;  %v1619_v7 = vld [vmem:[#allocation11 + $0x260] sm:$0xff] }
 0x202   : > { %2742 = vmatpush1.bf16.msra.mxu1 %v4959_v39  ;;  %v1621_v39 = vld [vmem:[#allocation11 + $0x270] sm:$0xff] }
 0x203   : > { %2744 = vmatprep.subr.bf16.mxu1 %v4960_v55  ;;  %v4460_v55 = vpack.c.bf16 %v1845_v44, %v1843_v9  ;;  %v1858_v9 = vld [vmem:[#allocation11 + $0x500] sm:$0xff]  ;;  %v1860_v44 = vld [vmem:[#allocation11 + $0x510] sm:$0xff] }
 0x206   : > { %2746 = vmatpush1.bf16.msra.mxu1 %v4961_v31  ;;  %v1844_v31 = vld [vmem:[#allocation11 + $0x490] sm:$0xff] }
 0x207   : > { %2748 = vmatprep.subr.bf16.mxu1 %v4962_v37  ;;  %v1624_v37 = vld [vmem:[#allocation11 + $0x288] sm:$0xff]  ;;  %v4463_v29 = vpack.c.bf16 %v1844_v31, %v1842_v13  ;;  %v1865_v13 = vld [vmem:[#allocation11 + $0x538] sm:$0xff]  ;;  %v4487_v31 = vpack.c.bf16 %v1860_v44, %v1858_v9 }
 0x208   : > { %v1885_v9 = vld [vmem:[#allocation11 + $0x5d8] sm:$0xff] }
 0x20a   : > { %2750 = vmatpush1.bf16.msra.mxu1 %v4963_v47  ;;  %v1626_v47 = vld [vmem:[#allocation11 + $0x298] sm:$0xff] }
 0x20b   : > { %2752 = vmatprep.subr.bf16.mxu1 %v4964_v51  ;;  %v1847_v51 = vld [vmem:[#allocation11 + $0x4a8] sm:$0xff] }
 0x20e   : > { %2754 = vmatpush1.bf16.msra.mxu1 %v4309_v27  ;;  %v4435_v27 = vpack.c.bf16 %v1828_v11, %v1826_v25  ;;  %v2783_v25 = vpack.c.bf16 %v1626_v47, %v1624_v37  ;;  %v1623_v11 = vld [vmem:[#allocation11 + $0x280] sm:$0xff]  ;;  %v1637_v47 = vld [vmem:[#allocation11 + $0x2f0] sm:$0xff] }
 0x20f   : > { %2756 = vmatprep.subr.bf16.mxu1 %v4965_v20  ;;  %v2781_v20 = vpack.c.bf16 %v1621_v39, %v1619_v7  ;;  %v1638_v7 = vld [vmem:[#allocation11 + $0x2f8] sm:$0xff]  ;;  %v1635_v39 = vld [vmem:[#allocation11 + $0x2e0] sm:$0xff] }
 0x212   : > { %2758 = vmatpush1.bf16.msra.mxu1 %v4317_v6  ;;  %v4438_v6 = vpack.c.bf16 %v1833_v24, %v1831_v19  ;;  %v1625_v19 = vld [vmem:[#allocation11 + $0x290] sm:$0xff] }
 0x213   : > { %2760 = vmatprep.subr.bf16.mxu1 %v4320_v22  ;;  %v1830_v22 = vld [vmem:[#allocation11 + $0x420] sm:$0xff] }
 0x216   : > { %2762 = vmatpush1.bf16.msra.mxu1 %v4325_v63  ;;  %v1837_v63 = vld [vmem:[#allocation11 + $0x458] sm:$0xff] }
 0x217   : > { %2764 = vmatprep.subr.bf16.mxu1 %v4328_v62  ;;  %v1834_v62 = vld [vmem:[#allocation11 + $0x440] sm:$0xff]  ;;  %v4445_v2 = vpack.c.bf16 %v1837_v63, %v1835_v42  ;;  %v1630_v42 = vld [vmem:[#allocation11 + $0x2b8] sm:$0xff]  ;;  %v1851_v63 = vld [vmem:[#allocation11 + $0x4c8] sm:$0xff] }
 0x218   : > { %v4449_v21 = vpack.c.bf16 %v1836_v35, %v1834_v62  ;;  %v2785_v62 = vpack.c.bf16 %v1625_v19, %v1623_v11  ;;  %v1869_v11 = vld [vmem:[#allocation11 + $0x558] sm:$0xff] }
 0x21a   : > { %2766 = vmatpush1.bf16.msra.mxu1 %v4333_v52  ;;  %v4442_v52 = vpack.c.bf16 %v1832_v53, %v1830_v22  ;;  %v1848_v22 = vld [vmem:[#allocation11 + $0x4b0] sm:$0xff]  ;;  %v1628_v53 = vld [vmem:[#allocation11 + $0x2a8] sm:$0xff] }
 0x21b   : > { %2959 = vmatprep.subr.bf16.mxu1 %v4432_v14  ;;  %v4469_v35 = vpack.c.bf16 %v1848_v22, %v1846_v16  ;;  %v2787_v17 = vpack.c.bf16 %v1630_v42, %v1628_v53  ;;  %v2797_v16 = vpack.c.bf16 %v1637_v47, %v1635_v39  ;;  %v1866_v53 = vld [vmem:[#allocation11 + $0x540] sm:$0xff]  ;;  %v1868_v42 = vld [vmem:[#allocation11 + $0x550] sm:$0xff]  ;;  %v1889_v39 = vld [vmem:[#allocation11 + $0x5f8] sm:$0xff] }
 0x21d   : > { %1364 = vmatmul.mubr.f32.vlgmr.msra.gmra.mrb[12].mxu1 %v3174_v33  ;;  %v1853_v33 = vld [vmem:[#allocation11 + $0x4d8] sm:$0xff] }
 0x21e   : > { %1369 = vmatprep.mubr.f32.mxu1 %v4009_v61  ;;  %2975 = vmatpush1.bf16.msra.mxu1 %v4435_v27  ;;  %v1618_v61 = vld [vmem:[#allocation11 + $0x258] sm:$0xff]  ;;  %v4472_v43 = vpack.c.bf16 %v1853_v33, %v1851_v63  ;;  %v1871_v63 = vld [vmem:[#allocation11 + $0x568] sm:$0xff] }
 0x21f   : > { %2960 = vmatprep.subr.bf16.mxu1 %v4438_v6  ;;  %v2775_v38 = vpack.c.bf16 %v1618_v61, %v1616_v54  ;;  %v4475_v54 = vpack.c.bf16 %v1852_v46, %v1850_v34  ;;  %v1633_v61 = vld [vmem:[#allocation11 + $0x2d0] sm:$0xff]  ;;  %v1873_v33 = vld [vmem:[#allocation11 + $0x578] sm:$0xff] }
 0x220   : > { %v4502_v34 = vpack.c.bf16 %v1873_v33, %v1871_v63  ;;  %v1877_v46 = vld [vmem:[#allocation11 + $0x598] sm:$0xff] }
 0x221   : > { %1370 = vmatmul.mubr.f32.gmra.mrb[14].mxu1 %v4015_v23  ;;  %v1622_v23 = vld [vmem:[#allocation11 + $0x278] sm:$0xff]  ;;  %2776 = vmatprep.subr.bf16.mxu0 %v2775_v38  ;;  %v1856_v38 = vld [vmem:[#allocation11 + $0x4f0] sm:$0xff]  ;;  %v4508_v1 = vpack.c.bf16 %v1877_v46, %v1875_v57 }
 0x222   : > { %2976 = vmatpush1.bf16.msra.mxu1 %v4442_v52  ;;  %1375 = vmatprep.mubr.f32.mxu1 %v4048_v59  ;;  %v4457_v59 = vpack.c.bf16 %v1840_v30, %v1838_v4  ;;  %v2779_v36 = vpack.c.bf16 %v1622_v23, %v1620_v40  ;;  %v1854_v4 = vld [vmem:[#allocation11 + $0x4e0] sm:$0xff]  ;;  %v2793_v30 = vpack.c.bf16 %v1633_v61, %v1631_v18  ;;  %v1879_v18 = vld [vmem:[#allocation11 + $0x5a8] sm:$0xff]  ;;  %v1881_v61 = vld [vmem:[#allocation11 + $0x5b8] sm:$0xff] }
 0x223   : > { %2961 = vmatprep.subr.bf16.mxu1 %v4445_v2  ;;  %2778 = vmatpush1.bf16.msra.mxu0 %v2777_v0  ;;  %v4481_v40 = vpack.c.bf16 %v1856_v38, %v1854_v4  ;;  %v4484_v23 = vpack.c.bf16 %v1861_v56, %v1859_v48  ;;  %v1863_v0 = vld [vmem:[#allocation11 + $0x528] sm:$0xff]  ;;  %v4514_v38 = vpack.c.bf16 %v1881_v61, %v1879_v18  ;;  %v1878_v48 = vld [vmem:[#allocation11 + $0x5a0] sm:$0xff]  ;;  %v1880_v56 = vld [vmem:[#allocation11 + $0x5b0] sm:$0xff] }
 0x224   : > { %2780 = vmatprep.subr.bf16.mxu0 %v2779_v36  ;;  %v1636_v36 = vld [vmem:[#allocation11 + $0x2e8] sm:$0xff]  ;;  %v4517_v44 = vpack.c.bf16 %v1880_v56, %v1878_v48  ;;  %v4537_v63 = vld [vmem:[#allocation9] sm:$0xf] }
 0x225   : > { %1376 = vmatmul.mubr.f32.gmra.mrb[18].mxu1 %v4057_v45  ;;  %v1849_v45 = vld [vmem:[#allocation11 + $0x4b8] sm:$0xff]  ;;  %v2795_v37 = vpack.c.bf16 %v1638_v7, %v1636_v36  ;;  %v1884_v36 = vld [vmem:[#allocation11 + $0x5d0] sm:$0xff]  ;;  %v1887_v7 = vld [vmem:[#allocation11 + $0x5e8] sm:$0xff] }
 0x226   : > { %2977 = vmatpush1.bf16.msra.mxu1 %v4449_v21  ;;  %v4466_v24 = vpack.c.bf16 %v1849_v45, %v1847_v51  ;;  %v4490_v51 = vpack.c.bf16 %v1865_v13, %v1863_v0  ;;  %v1862_v45 = vld [vmem:[#allocation11 + $0x520] sm:$0xff]  ;;  %4966 = vst [vmem:[#allocation37_spill] sm:$0xff] %v4517_v44  ;;  %v4526_v47 = vpack.c.bf16 %v1889_v39, %v1887_v7  ;;  %v1644_v48 = vld [vmem:[#allocation11 + $0x328] sm:$0xff]  ;;  %v1646_v56 = vld [vmem:[#allocation11 + $0x338] sm:$0xff] }
 0x227   : > { %2962 = vmatprep.subr.bf16.mxu1 %v4453_v12  ;;  %2782 = vmatpush1.bf16.msra.mxu0 %v2781_v20  ;;  %v1864_v20 = vld [vmem:[#allocation11 + $0x530] sm:$0xff]  ;;  %v1882_v13 = vld [vmem:[#allocation11 + $0x5c0] sm:$0xff] }
 0x228   : > { %2784 = vmatprep.subr.bf16.mxu0 %v2783_v25  ;;  %v1867_v25 = vld [vmem:[#allocation11 + $0x548] sm:$0xff]  ;;  %v4493_v19 = vpack.c.bf16 %v1864_v20, %v1862_v45  ;;  %4969 = vst [vmem:[#allocation40_spill] sm:$0xff] %v4526_v47  ;;  %v1886_v45 = vld [vmem:[#allocation11 + $0x5e0] sm:$0xff]  ;;  %v1888_v20 = vld [vmem:[#allocation11 + $0x5f0] sm:$0xff] }
 0x229   : > { %v4496_v22 = vpack.c.bf16 %v1869_v11, %v1867_v25  ;;  %v1382_v25 = vlaneseq  ;;  %v1645_v7 = vld [vmem:[#allocation11 + $0x330] sm:$0xff] }
 0x22a   : > { %2978 = vmatpush1.bf16.msra.mxu1 %v4457_v59 }
 0x22b   : > { %2963 = vmatprep.subr.bf16.mxu1 %v4460_v55  ;;  %2786 = vmatpush1.bf16.msra.mxu0 %v2785_v62  ;;  %v4499_v62 = vpack.c.bf16 %v1868_v42, %v1866_v53  ;;  %v4533_v11 = vshrl.u32 %v1382_v25, 7 }
 0x22c   : > { %2788 = vmatprep.subr.bf16.mxu0 %v2787_v17  ;;  %v1870_v17 = vld [vmem:[#allocation11 + $0x560] sm:$0xff] }
 0x22d   : > { %v4505_v10 = vpack.c.bf16 %v1872_v58, %v1870_v17  ;;  %4971 = vst [vmem:[#allocation42_spill] sm:$0xff] %v4533_v11  ;;  %v1392_v53 = vsub.s32 2, %v4533_v11  ;;  %v1396_v42 = vsub.s32 3, %v4533_v11  ;;  %v1640_v17 = vld [vmem:[#allocation11 + $0x308] sm:$0xff]  ;;  %v1642_v58 = vld [vmem:[#allocation11 + $0x318] sm:$0xff] }
 0x22e   : > { %2979 = vmatpush1.bf16.msra.mxu1 %v4463_v29  ;;  %v2799_v46 = vpack.c.bf16 %v1642_v58, %v1640_v17  ;;  %v1648_v58 = vld [vmem:[#allocation11 + $0x348] sm:$0xff] }
 0x22f   : > { %2964 = vmatprep.subr.bf16.mxu1 %v4466_v24  ;;  %2790 = vmatpush1.bf16.msra.mxu0 %v2789_v28  ;;  %v1876_v28 = vld [vmem:[#allocation11 + $0x590] sm:$0xff]  ;;  %v4540_v33 = vrot.slane %v4537_v63, %v1392_v53  ;;  %v4543_v57 = vrot.slane %v4537_v63, %v1396_v42 }
 0x230   : > { %2792 = vmatprep.subr.bf16.mxu0 %v2791_v3  ;;  %v4511_v4 = vpack.c.bf16 %v1876_v28, %v1874_v49  ;;  %v1641_v49 = vld [vmem:[#allocation11 + $0x310] sm:$0xff] }
 0x232   : > { %2980 = vmatpush1.bf16.msra.mxu1 %v4469_v35 }
 0x233   : > { %2965 = vmatprep.subr.bf16.mxu1 %v4472_v43  ;;  %2794 = vmatpush1.bf16.msra.mxu0 %v2793_v30  ;;  %v1883_v30 = vld [vmem:[#allocation11 + $0x5c8] sm:$0xff] }
 0x234   : > { %2796 = vmatprep.subr.bf16.mxu0 %v2795_v37  ;;  %v4520_v0 = vpack.c.bf16 %v1885_v9, %v1883_v30  ;;  %v4523_v37 = vpack.c.bf16 %v1884_v36, %v1882_v13  ;;  %v2803_v13 = vpack.c.bf16 %v1646_v56, %v1644_v48  ;;  %v1643_v36 = vld [vmem:[#allocation11 + $0x320] sm:$0xff] }
 0x236   : > { %2981 = vmatpush1.bf16.msra.mxu1 %v4475_v54  ;;  %4967 = vst [vmem:[#allocation38_spill] sm:$0xff] %v4520_v0  ;;  %4968 = vst [vmem:[#allocation39_spill] sm:$0xff] %v4523_v37 }
 0x237   : > { %2966 = vmatprep.subr.bf16.mxu1 %v4478_v26  ;;  %2798 = vmatpush1.bf16.msra.mxu0 %v2797_v16  ;;  %v4529_v16 = vpack.c.bf16 %v1888_v20, %v1886_v45  ;;  %v2805_v20 = vpack.c.bf16 %v1645_v7, %v1643_v36  ;;  %v1652_v36 = vld [vmem:[#allocation11 + $0x368] sm:$0xff]  ;;  %v1654_v7 = vld [vmem:[#allocation11 + $0x378] sm:$0xff] }
 0x238   : > { %2800 = vmatprep.subr.bf16.mxu0 %v2799_v46  ;;  %v1650_v46 = vld [vmem:[#allocation11 + $0x358] sm:$0xff] }
 0x239   : > { %4970 = vst [vmem:[#allocation41_spill] sm:$0xff] %v4529_v16 }
 0x23a   : > { %2982 = vmatpush1.bf16.msra.mxu1 %v4481_v40 }
 0x23b   : > { %2967 = vmatprep.subr.bf16.mxu1 %v4484_v23 }
 0x23e   : > { %2983 = vmatpush1.bf16.msra.mxu1 %v4487_v31 }
 0x23f   : > { %2968 = vmatprep.subr.bf16.mxu1 %v4490_v51 }
 0x242   : > { %2984 = vmatpush1.bf16.msra.mxu1 %v4493_v19 }
 0x243   : > { %2969 = vmatprep.subr.bf16.mxu1 %v4496_v22 }
 0x246   : > { %2985 = vmatpush1.bf16.msra.mxu1 %v4499_v62  ;;  %v1134_v15 = vpop.f32.mrb[10].mxu0 }
 0x247   : > { %2970 = vmatprep.subr.bf16.mxu1 %v4502_v34  ;;  %v1135_v3 = vpop.f32.mrb[11].mxu0  ;;  %v1639_v15 = vld [vmem:[#allocation11 + $0x300] sm:$0xff] }
 0x248   : > { %v2801_v28 = vpack.c.bf16 %v1641_v49, %v1639_v15  ;;  %v2807_v49 = vpack.c.bf16 %v1650_v46, %v1648_v58  ;;  %v1656_v46 = vld [vmem:[#allocation11 + $0x388] sm:$0xff] }
 0x24a   : > { %2986 = vmatpush1.bf16.msra.mxu1 %v4505_v10  ;;  %2802 = vmatpush1.bf16.msra.mxu0 %v2801_v28  ;;  %v1647_v28 = vld [vmem:[#allocation11 + $0x340] sm:$0xff] }
 0x24b   : > { %2971 = vmatprep.subr.bf16.mxu1 %v4508_v1  ;;  %2804 = vmatprep.subr.bf16.mxu0 %v2803_v13 }
 0x24e   : > { %2987 = vmatpush1.bf16.msra.mxu1 %v4511_v4  ;;  %2806 = vmatpush1.bf16.msra.mxu0 %v2805_v20  ;;  %v2811_v20 = vpack.c.bf16 %v1654_v7, %v1652_v36  ;;  %v1494_v36 = vadd.s32 8, %v4533_v11  ;;  %v1660_v7 = vld [vmem:[#allocation11 + $0x3a8] sm:$0xff] }
 0x24f   : > { %2972 = vmatprep.subr.bf16.mxu1 %v4514_v38  ;;  %2808 = vmatprep.subr.bf16.mxu0 %v2807_v49 }
 0x252   : > { %2988 = vmatpush1.bf16.msra.mxu1 %v4517_v44 }
 0x253   : > { %2973 = vmatprep.subr.bf16.mxu1 %v4520_v0 }
 0x256   : > { %2989 = vmatpush1.bf16.msra.mxu1 %v4523_v37  ;;  %v1669_v37 = vld [vmem:[#allocation11 + $0x3f0] sm:$0xff] }
 0x257   : > { %2974 = vmatprep.subr.bf16.mxu1 %v4526_v47 }
 0x25a   : > { %2990 = vmatpush1.bf16.msra.mxu1 %v4529_v16 }
 0x270   : > { %v1012_v3 = vpop.f32.mrb[6].mxu1 }
 0x271   : > { %v1404_v18 = vadd.f32 %v4540_v33, %v1012_v3  ;;  %v1014_v61 = vpop.f32.mrb[7].mxu1  ;;  %v1649_v3 = vld [vmem:[#allocation11 + $0x350] sm:$0xff] }
 0x272   : > { %v1405_v30 = vadd.f32 %v4543_v57, %v1014_v61  ;;  %v2809_v61 = vpack.c.bf16 %v1649_v3, %v1647_v28  ;;  %v1655_v28 = vld [vmem:[#allocation11 + $0x380] sm:$0xff]  ;;  %v1657_v3 = vld [vmem:[#allocation11 + $0x390] sm:$0xff] }
 0x273   : > { %v4547_v9 = vpop.f32.mrb[6].mxu0  ;;  %v2224_v39 = vmul.f32 -1.442695, %v1404_v18 }
 0x274   : > { %v4549_v45 = vpop.f32.mrb[7].mxu0  ;;  %v2225_v25 = vmul.f32 -1.442695, %v1405_v30  ;;  %v1018_v53 = vpop.f32.mrb[8].mxu1  ;;  %2810 = vmatpush1.bf16.msra.mxu0 %v2809_v61  ;;  %v2817_v61 = vpack.c.bf16 %v1657_v3, %v1655_v28  ;;  %v1665_v3 = vld [vmem:[#allocation11 + $0x3d0] sm:$0xff] }
 0x275   : > { %3130 = vpow2.f32 %v2224_v39  ;;  %v1408_v42 = vadd.f32 %v4540_v33, %v1018_v53  ;;  %v1020_v17 = vpop.f32.mrb[9].mxu1  ;;  %v1653_v53 = vld [vmem:[#allocation11 + $0x370] sm:$0xff]  ;;  %2812 = vmatprep.subr.bf16.mxu0 %v2811_v20  ;;  %v4566_v20 = vmul.u32 2, %v1494_v36  ;;  %v4973_v36 = vsub.s32 1, %v4533_v11 }
 0x276   : > { %3132 = vpow2.f32 %v2225_v25  ;;  %v1409_v15 = vadd.f32 %v4543_v57, %v1020_v17  ;;  %v1651_v25 = vld [vmem:[#allocation11 + $0x360] sm:$0xff] }
 0x277   : > { %v2226_v18 = vmul.f32 -1.442695, %v1408_v42  ;;  %v2813_v58 = vpack.c.bf16 %v1653_v53, %v1651_v25  ;;  %vm1529_vm13 = vcmp.ge.s32.totalorder %v4566_v20, 0  ;;  %vm1531_vm14 = vcmp.lt.s32.totalorder %v4566_v20, 8 }
 0x278   : > { %v2227_v48 = vmul.f32 -1.442695, %v1409_v15  ;;  %v1024_v56 = vpop.f32.mrb[10].mxu1  ;;  %v1658_v15 = vld [vmem:[#allocation11 + $0x398] sm:$0xff]  ;;  %vm1533_vm15 = vmand %vm1529_vm13, %vm1531_vm14 }
 0x279   : > { %3134 = vpow2.f32 %v2226_v18  ;;  %v1412_v30 = vadd.f32 %v4540_v33, %v1024_v56  ;;  %v1026_v13 = vpop.f32.mrb[11].mxu1  ;;  %2814 = vmatpush1.bf16.msra.mxu0 %v2813_v58  ;;  %v2815_v49 = vpack.c.bf16 %v1658_v15, %v1656_v46  ;;  %v1661_v58 = vld [vmem:[#allocation11 + $0x3b0] sm:$0xff]  ;;  %v4562_v15 = vmul.u32 2, %v4533_v11 }
 0x27a   : > { %3136 = vpow2.f32 %v2227_v48  ;;  %v1413_v39 = vadd.f32 %v4543_v57, %v1026_v13 }
 0x27b   : > { %v2228_v17 = vmul.f32 -1.442695, %v1412_v30  ;;  %2816 = vmatprep.subr.bf16.mxu0 %v2815_v49  ;;  %v4556_v30 = vpop.f32.mrb[8].mxu0  ;;  %vm1528_vm10 = vcmp.ge.s32.totalorder %v4562_v15, 0  ;;  %vm1530_vm11 = vcmp.lt.s32.totalorder %v4562_v15, 8 }
 0x27c   : > { %v2229_v42 = vmul.f32 -1.442695, %v1413_v39  ;;  %v1662_v39 = vld [vmem:[#allocation11 + $0x3b8] sm:$0xff]  ;;  %v4559_v25 = vpop.f32.mrb[9].mxu0  ;;  %vm4639_vm12 = vmand %vm1528_vm10, %vm1530_vm11 }
 0x27d   : > { %3138 = vpow2.f32 %v2228_v17  ;;  %2818 = vmatpush1.bf16.msra.mxu0 %v2817_v61  ;;  %v2819_v53 = vpack.c.bf16 %v1662_v39, %v1660_v7  ;;  %v1659_v17 = vld [vmem:[#allocation11 + $0x3a0] sm:$0xff]  ;;  %v1296_v49 = vpop.f32.mrb[12].mxu0  ;;  %v1664_v7 = vld [vmem:[#allocation11 + $0x3c8] sm:$0xff]  ;;  %v1666_v39 = vld [vmem:[#allocation11 + $0x3d8] sm:$0xff] }
 0x27e   : > { %3140 = vpow2.f32 %v2229_v42  ;;  %v2821_v46 = vpack.c.bf16 %v1661_v58, %v1659_v17  ;;  %v1297_v61 = vpop.f32.mrb[13].mxu0  ;;  %v2823_v58 = vpack.c.bf16 %v1666_v39, %v1664_v7  ;;  %v1663_v49 = vld [vmem:[#allocation11 + $0x3c0] sm:$0xff]  ;;  %v1668_v7 = vld [vmem:[#allocation11 + $0x3e8] sm:$0xff]  ;;  %v1670_v39 = vld [vmem:[#allocation11 + $0x3f8] sm:$0xff] }
 0x27f   : > { %v3131_v18 = vpop.eup %3130  ;;  %2820 = vmatprep.subr.bf16.mxu0 %v2819_v53  ;;  %v2825_v53 = vpack.c.bf16 %v1665_v3, %v1663_v49  ;;  %v1667_v49 = vld [vmem:[#allocation11 + $0x3e0] sm:$0xff] }
 0x280   : > { %v3133_v48 = vpop.eup %3132  ;;  %v1440_v56 = vadd.f32 1.0, %v3131_v18 }
 0x281   : > { %v1441_v13 = vadd.f32 1.0, %v3133_v48  ;;  %2822 = vmatpush1.bf16.msra.mxu0 %v2821_v46  ;;  %v4577_v46 = vrot.slane %v4537_v63, %v4973_v36 }
 0x282   : > { %3142 = vrcp.f32 %v1440_v56  ;;  %v1495_v56 = vadd.s32 16, %v4533_v11  ;;  %2824 = vmatprep.subr.bf16.mxu0 %v2823_v58 }
 0x283   : > { %v3135_v42 = vpop.eup %3134  ;;  %3144 = vrcp.f32 %v1441_v13  ;;  %v4972_v13 = vsub.s32 0, %v4533_v11  ;;  %v2829_v11 = vpack.c.bf16 %v1669_v37, %v1667_v49  ;;  %v1411_v49 = vadd.f32 %v4577_v46, %v4415_v8 }
 0x284   : > { %v3137_v28 = vpop.eup %3136  ;;  %v1442_v18 = vadd.f32 1.0, %v3135_v42 }
 0x285   : > { %v1443_v48 = vadd.f32 1.0, %v3137_v28  ;;  %v4571_v17 = vrot.slane %v4537_v63, %v4972_v13  ;;  %v2234_v28 = vadd.s32 4294967295, %v4562_v15  ;;  %v1499_v13 = vmul.u32 2, %v1495_v56  ;;  %2826 = vmatpush1.bf16.msra.mxu0 %v2825_v53  ;;  %v1543_v53 = vld [vmem:[#allocation11 + $0x8] sm:$0xff] }
 0x286   : > { %3146 = vrcp.f32 %v1442_v18  ;;  %v2235_v18 = vadd.s32 4294967295, %v4566_v20  ;;  %v1403_v56 = vadd.f32 %v4577_v46, %v4402_v41 }
 0x287   : > { %v3139_v42 = vpop.eup %3138  ;;  %3148 = vrcp.f32 %v1443_v48  ;;  %v1402_v3 = vadd.f32 %v4571_v17, %v4400_v50  ;;  %v2827_v48 = vpack.c.bf16 %v1670_v39, %v1668_v7  ;;  %vm1507_vm1 = vcmp.ge.s32.totalorder %v2234_v28, 0  ;;  %v1545_v50 = vld [vmem:[#allocation11 + $0x18] sm:$0xff] }
 0x288   : > { %v3141_v61 = vpop.eup %3140  ;;  %v1444_v16 = vadd.f32 1.0, %v3139_v42  ;;  %vm1510_vm2 = vcmp.lt.s32.totalorder %v2234_v28, 8  ;;  %v2236_v42 = vadd.s32 4294967295, %v1499_v13  ;;  %vm1508_vm3 = vcmp.ge.s32.totalorder %v2235_v18, 0 }
 0x289   : > { %v1445_v47 = vadd.f32 1.0, %v3141_v61  ;;  %2828 = vmatprep.subr.bf16.mxu0 %v2827_v48  ;;  %vm1511_vm4 = vcmp.lt.s32.totalorder %v2235_v18, 8  ;;  %v2831_v61 = vpack.c.bf16 %v1545_v50, %v1543_v53  ;;  %vm4589_vm5 = vmand %vm1507_vm1, %vm1510_vm2  ;;  %v1406_v41 = vadd.f32 %v4571_v17, %v4406_v32 }
 0x28a   : > { %3150 = vrcp.f32 %v1444_v16  ;;  %2830 = vmatpush1.bf16.msra.mxu0 %v2829_v11  ;;  %v1407_v13 = vadd.f32 %v4577_v46, %v4409_v5  ;;  %vm4597_vm6 = vmand %vm1508_vm3, %vm1511_vm4  ;;  %vm1509_vm7 = vcmp.ge.s32.totalorder %v2236_v42, 0  ;;  %vm1512_vm8 = vcmp.lt.s32.totalorder %v2236_v42, 8 }
 0x28b   : > { %3152 = vrcp.f32 %v1445_v47  ;;  %2832 = vmatprep.subr.bf16.mxu0 %v2831_v61  ;;  %v1410_v5 = vadd.f32 %v4571_v17, %v4412_v60  ;;  %vm1515_vm9 = vmand %vm1509_vm7, %vm1512_vm8 }
 0x28c   : > { %v3143_v63 = vpop.eup %3142 }
 0x28d   : > { %v3145_v58 = vpop.eup %3144  ;;  %v4584_v16 = vmul.f32 %v3143_v63, %v1402_v3 }
 0x28e   : > { %v4586_v36 = vmul.f32 %v3145_v58, %v1403_v56 }
 0x28f   : > { %v1522_v7 = vsel %vm4589_vm5, %v4584_v16, 0.0 }
 0x290   : > { %v3147_v47 = vpop.eup %3146  ;;  %v1523_v32 = vsel %vm4589_vm5, %v4586_v36, 0.0  ;;  %v1896_v58 = vrot.slane %v1522_v7, 1 }
 0x291   : > { %v3149_v18 = vpop.eup %3148  ;;  %v4601_v28 = vmul.f32 %v3147_v47, %v1406_v41  ;;  %v1899_v61 = vrot.slane %v1523_v32, 1 }
 0x292   : > { %v4606_v39 = vmul.f32 %v3149_v18, %v1407_v13 }
 0x293   : > { %v1524_v3 = vsel %vm4597_vm6, %v4601_v28, 0.0 }
 0x294   : > { %v3151_v48 = vpop.eup %3150  ;;  %v1525_v63 = vsel %vm4597_vm6, %v4606_v39, 0.0  ;;  %v1897_v56 = vrot.slane %v1524_v3, 1 }
 0x295   : > { %v3153_v42 = vpop.eup %3152  ;;  %v1462_v53 = vmul.f32 %v3151_v48, %v1410_v5  ;;  %v1900_v50 = vrot.slane %v1525_v63, 1 }
 0x296   : > { %v1463_v60 = vmul.f32 %v3153_v42, %v1411_v49  ;;  %v4622_v41 = vsel %vm1039_vm0, %v1896_v58, %v1897_v56 }
 0x297   : > { %v1526_v47 = vsel %vm1515_vm9, %v1462_v53, 0.0  ;;  %v4625_v13 = vsel %vm1039_vm0, %v1899_v61, %v1900_v50 }
 0x298   : > { %v1527_v8 = vsel %vm1515_vm9, %v1463_v60, 0.0  ;;  %v1902_v18 = vrot.slane %v1526_v47, 1 }
 0x299   : > { %v1904_v0 = vrot.slane %v1527_v8, 1 }
 0x29a   : > { %v1903_v7 = vsel %vm1039_vm0, %v1897_v56, %v1902_v18 }
 0x29b   : > { %v1905_v44 = vsel %vm1039_vm0, %v1900_v50, %v1904_v0 }
 0x29c   : > { %1980 = vmatprep.mubr.f32.mxu1 %v1905_v44 }
 0x29d   : > { %1981 = vmatmul.mubr.f32.vlgmr.msra.gmra.mrb[20].mxu1 %v1903_v7 }
 0x2b8   : > { %v1215_v5 = vpop.f32.mrb[16].mxu1 }
 0x2b9   : > { %v1216_v3 = vpop.f32.mrb[17].mxu1 }
 0x2f0   : > { %v1365_v32 = vpop.f32.mrb[12].mxu1 }
 0x2f1   : > { %v1416_v48 = vadd.f32 %v4540_v33, %v1365_v32  ;;  %v1367_v49 = vpop.f32.mrb[13].mxu1 }
 0x2f2   : > { %v1417_v63 = vadd.f32 %v4543_v57, %v1367_v49  ;;  %v1542_v49 = vld [vmem:[#allocation11] sm:$0xff] }
 0x2f3   : > { %v2230_v58 = vmul.f32 -1.442695, %v1416_v48 }
 0x2f4   : > { %v2231_v42 = vmul.f32 -1.442695, %v1417_v63  ;;  %v1371_v53 = vpop.f32.mrb[14].mxu1  ;;  %v1544_v63 = vld [vmem:[#allocation11 + $0x10] sm:$0xff] }
 0x2f5   : > { %3154 = vpow2.f32 %v2230_v58  ;;  %v1420_v61 = vadd.f32 %v4540_v33, %v1371_v53  ;;  %v1373_v60 = vpop.f32.mrb[15].mxu1  ;;  %v1547_v53 = vld [vmem:[#allocation11 + $0x28] sm:$0xff] }
 0x2f6   : > { %3156 = vpow2.f32 %v2231_v42  ;;  %v1421_v44 = vadd.f32 %v4543_v57, %v1373_v60  ;;  %v1414_v57 = vadd.f32 %v4571_v17, %v4547_v9  ;;  %v1415_v42 = vadd.f32 %v4577_v46, %v4549_v45  ;;  %v1548_v45 = vld [vmem:[#allocation11 + $0x30] sm:$0xff] }
 0x2f7   : > { %v2232_v0 = vmul.f32 -1.442695, %v1420_v61  ;;  %v1549_v61 = vld [vmem:[#allocation11 + $0x38] sm:$0xff]  ;;  %v1418_v9 = vadd.f32 %v4571_v17, %v4556_v30 }
 0x2f8   : > { %v2233_v56 = vmul.f32 -1.442695, %v1421_v44  ;;  %v1377_v50 = vpop.f32.mrb[18].mxu1  ;;  %v2835_v15 = vpack.c.bf16 %v1549_v61, %v1547_v53  ;;  %v1561_v53 = vld [vmem:[#allocation11 + $0x98] sm:$0xff] }
 0x2f9   : > { %3158 = vpow2.f32 %v2232_v0  ;;  %v1378_v47 = vpop.f32.mrb[19].mxu1  ;;  %v2833_v50 = vpack.c.bf16 %v1544_v63, %v1542_v49  ;;  %v1554_v63 = vld [vmem:[#allocation11 + $0x60] sm:$0xff]  ;;  %v1560_v0 = vld [vmem:[#allocation11 + $0x90] sm:$0xff] }
 0x2fa   : > { %3160 = vpow2.f32 %v2233_v56  ;;  %v1546_v47 = vld [vmem:[#allocation11 + $0x20] sm:$0xff] }
 0x2fb   : > { %v2837_v30 = vpack.c.bf16 %v1548_v45, %v1546_v47  ;;  %v1564_v47 = vld [vmem:[#allocation11 + $0xb0] sm:$0xff]  ;;  %v1567_v45 = vld [vmem:[#allocation11 + $0xc8] sm:$0xff] }
 0x2ff   : > { %v3155_v8 = vpop.eup %3154 }
 0x300   : > { %v3157_v18 = vpop.eup %3156  ;;  %v1476_v7 = vadd.f32 1.0, %v3155_v8 }
 0x301   : > { %v1477_v5 = vadd.f32 1.0, %v3157_v18  ;;  %v1419_v18 = vadd.f32 %v4577_v46, %v4559_v25  ;;  %v1555_v25 = vld [vmem:[#allocation11 + $0x68] sm:$0xff]  ;;  %v1557_v46 = vld [vmem:[#allocation11 + $0x78] sm:$0xff] }
 0x302   : > { %3162 = vrcp.f32 %v1476_v7  ;;  %v1551_v7 = vld [vmem:[#allocation11 + $0x48] sm:$0xff]  ;;  %v2843_v49 = vpack.c.bf16 %v1557_v46, %v1555_v25  ;;  %v1577_v46 = vld [vmem:[#allocation11 + $0x118] sm:$0xff] }
 0x303   : > { %v3159_v3 = vpop.eup %3158  ;;  %3164 = vrcp.f32 %v1477_v5  ;;  %v1553_v5 = vld [vmem:[#allocation11 + $0x58] sm:$0xff]  ;;  %v1575_v25 = vld [vmem:[#allocation11 + $0x108] sm:$0xff] }
 0x304   : > { %v3161_v32 = vpop.eup %3160  ;;  %v1478_v48 = vadd.f32 1.0, %v3159_v3  ;;  %v2839_v17 = vpack.c.bf16 %v1553_v5, %v1551_v7  ;;  %v1566_v5 = vld [vmem:[#allocation11 + $0xc0] sm:$0xff] }
 0x305   : > { %v1479_v33 = vadd.f32 1.0, %v3161_v32 }
 0x306   : > { %3166 = vrcp.f32 %v1478_v48  ;;  %v1550_v48 = vld [vmem:[#allocation11 + $0x40] sm:$0xff] }
 0x307   : > { %3168 = vrcp.f32 %v1479_v33  ;;  %v1552_v33 = vld [vmem:[#allocation11 + $0x50] sm:$0xff] }
 0x30c   : > { %v3163_v58 = vpop.eup %3162 }
 0x30d   : > { %v3165_v60 = vpop.eup %3164  ;;  %v1488_v44 = vmul.f32 %v3163_v58, %v1414_v57  ;;  %v2841_v57 = vpack.c.bf16 %v1552_v33, %v1550_v48  ;;  %v1556_v58 = vld [vmem:[#allocation11 + $0x70] sm:$0xff]  ;;  %v1570_v48 = vld [vmem:[#allocation11 + $0xe0] sm:$0xff] }
 0x30e   : > { %v1489_v56 = vmul.f32 %v3165_v60, %v1415_v42  ;;  %v1559_v42 = vld [vmem:[#allocation11 + $0x88] sm:$0xff]  ;;  %v2845_v61 = vpack.c.bf16 %v1556_v58, %v1554_v63  ;;  %v1572_v33 = vld [vmem:[#allocation11 + $0xf0] sm:$0xff]  ;;  %v1574_v63 = vld [vmem:[#allocation11 + $0x100] sm:$0xff] }
 0x30f   : > { %v2847_v60 = vpack.c.bf16 %v1561_v53, %v1559_v42  ;;  %v1576_v58 = vld [vmem:[#allocation11 + $0x110] sm:$0xff]  ;;  %v1579_v42 = vld [vmem:[#allocation11 + $0x128] sm:$0xff]  ;;  %v1581_v53 = vld [vmem:[#allocation11 + $0x138] sm:$0xff] }
 0x310   : > { %v3167_v8 = vpop.eup %3166  ;;  %2237 = vmatprep.mubr.msk.f32.mxu0 %vm4639_vm12, %v1489_v56  ;;  %v1563_v56 = vld [vmem:[#allocation11 + $0xa8] sm:$0xff] }
 0x311   : > { %v3169_v3 = vpop.eup %3168  ;;  %v1490_v32 = vmul.f32 %v3167_v8, %v1418_v9  ;;  %2238 = vmatmul.mubr.msk.f32.vlgmr.msra.gmra.mrb[14].mxu0 %vm4639_vm12, %v1488_v44  ;;  %v1558_v44 = vld [vmem:[#allocation11 + $0x80] sm:$0xff]  ;;  %v1569_v8 = vld [vmem:[#allocation11 + $0xd8] sm:$0xff] }
 0x312   : > { %v1491_v20 = vmul.f32 %v3169_v3, %v1419_v18  ;;  %2834 = vmatpush1.bf16.msra.mxu0 %v2833_v50  ;;  %v1565_v50 = vld [vmem:[#allocation11 + $0xb8] sm:$0xff]  ;;  %v2849_v9 = vpack.c.bf16 %v1560_v0, %v1558_v44  ;;  %v2855_v7 = vpack.c.bf16 %v1569_v8, %v1567_v45  ;;  %v1568_v3 = vld [vmem:[#allocation11 + $0xd0] sm:$0xff]  ;;  %v1578_v44 = vld [vmem:[#allocation11 + $0x120] sm:$0xff] }
 0x313   : > { %2836 = vmatprep.subr.bf16.mxu0 %v2835_v15  ;;  %v2851_v15 = vpack.c.bf16 %v1565_v50, %v1563_v56  ;;  %v1580_v0 = vld [vmem:[#allocation11 + $0x130] sm:$0xff]  ;;  %v1583_v56 = vld [vmem:[#allocation11 + $0x148] sm:$0xff]  ;;  %v1585_v50 = vld [vmem:[#allocation11 + $0x158] sm:$0xff] }
 0x314   : > { %2239 = vmatprep.mubr.msk.f32.mxu0 %vm1533_vm15, %v1491_v20  ;;  %v1573_v20 = vld [vmem:[#allocation11 + $0xf8] sm:$0xff]  ;;  %v1587_v45 = vld [vmem:[#allocation11 + $0x168] sm:$0xff] }
 0x315   : > { %2240 = vmatmul.mubr.msk.f32.gmra.mrb[16].mxu0 %vm1533_vm15, %v1490_v32  ;;  %v1571_v32 = vld [vmem:[#allocation11 + $0xe8] sm:$0xff]  ;;  %v1589_v8 = vld [vmem:[#allocation11 + $0x178] sm:$0xff] }
 0x316   : > { %2838 = vmatpush1.bf16.msra.mxu0 %v2837_v30  ;;  %2241 = vmatprep.mubr.msk.f32.mxu0 %vm4589_vm5, %v4586_v36  ;;  %v1562_v36 = vld [vmem:[#allocation11 + $0xa0] sm:$0xff]  ;;  %v2857_v30 = vpack.c.bf16 %v1568_v3, %v1566_v5  ;;  %v1588_v3 = vld [vmem:[#allocation11 + $0x170] sm:$0xff] }
 0x317   : > { %2840 = vmatprep.subr.bf16.mxu0 %v2839_v17  ;;  %v2853_v18 = vpack.c.bf16 %v1564_v47, %v1562_v36  ;;  %v2859_v17 = vpack.c.bf16 %v1573_v20, %v1571_v32  ;;  %v1582_v36 = vld [vmem:[#allocation11 + $0x140] sm:$0xff]  ;;  %v1584_v47 = vld [vmem:[#allocation11 + $0x150] sm:$0xff]  ;;  %v1591_v32 = vld [vmem:[#allocation11 + $0x188] sm:$0xff] }
 0x318   : > { %v1586_v5 = vld [vmem:[#allocation11 + $0x160] sm:$0xff]  ;;  %v1593_v20 = vld [vmem:[#allocation11 + $0x198] sm:$0xff] }
 0x31a   : > { %2842 = vmatpush1.bf16.msra.mxu0 %v2841_v57  ;;  %v2861_v57 = vpack.c.bf16 %v1572_v33, %v1570_v48  ;;  %v1590_v48 = vld [vmem:[#allocation11 + $0x180] sm:$0xff]  ;;  %v1592_v33 = vld [vmem:[#allocation11 + $0x190] sm:$0xff] }
 0x31b   : > { %2844 = vmatprep.subr.bf16.mxu0 %v2843_v49  ;;  %v2863_v49 = vpack.c.bf16 %v1577_v46, %v1575_v25  ;;  %v1595_v25 = vld [vmem:[#allocation11 + $0x1a8] sm:$0xff]  ;;  %v1597_v46 = vld [vmem:[#allocation11 + $0x1b8] sm:$0xff] }
 0x31e   : > { %2846 = vmatpush1.bf16.msra.mxu0 %v2845_v61  ;;  %v2865_v61 = vpack.c.bf16 %v1576_v58, %v1574_v63  ;;  %v1594_v63 = vld [vmem:[#allocation11 + $0x1a0] sm:$0xff]  ;;  %v1596_v58 = vld [vmem:[#allocation11 + $0x1b0] sm:$0xff] }
 0x31f   : > { %2848 = vmatprep.subr.bf16.mxu0 %v2847_v60  ;;  %v2867_v60 = vpack.c.bf16 %v1581_v53, %v1579_v42  ;;  %v1599_v42 = vld [vmem:[#allocation11 + $0x1c8] sm:$0xff]  ;;  %v1601_v53 = vld [vmem:[#allocation11 + $0x1d8] sm:$0xff] }
 0x322   : > { %2850 = vmatpush1.bf16.msra.mxu0 %v2849_v9  ;;  %v2869_v9 = vpack.c.bf16 %v1580_v0, %v1578_v44  ;;  %v1598_v44 = vld [vmem:[#allocation11 + $0x1c0] sm:$0xff]  ;;  %v1600_v0 = vld [vmem:[#allocation11 + $0x1d0] sm:$0xff] }
 0x323   : > { %2852 = vmatprep.subr.bf16.mxu0 %v2851_v15  ;;  %v2871_v15 = vpack.c.bf16 %v1585_v50, %v1583_v56  ;;  %v1603_v56 = vld [vmem:[#allocation11 + $0x1e8] sm:$0xff]  ;;  %v1605_v50 = vld [vmem:[#allocation11 + $0x1f8] sm:$0xff] }
 0x326   : > { %2854 = vmatpush1.bf16.msra.mxu0 %v2853_v18  ;;  %v2873_v18 = vpack.c.bf16 %v1584_v47, %v1582_v36  ;;  %v1602_v36 = vld [vmem:[#allocation11 + $0x1e0] sm:$0xff]  ;;  %v1604_v47 = vld [vmem:[#allocation11 + $0x1f0] sm:$0xff] }
 0x327   : > { %2856 = vmatprep.subr.bf16.mxu0 %v2855_v7  ;;  %v2875_v7 = vpack.c.bf16 %v1589_v8, %v1587_v45  ;;  %v2893_v45 = vpack.c.bf16 %v1604_v47, %v1602_v36 }
 0x32a   : > { %2858 = vmatpush1.bf16.msra.mxu0 %v2857_v30  ;;  %v2877_v30 = vpack.c.bf16 %v1588_v3, %v1586_v5 }
 0x32b   : > { %2860 = vmatprep.subr.bf16.mxu0 %v2859_v17  ;;  %v2879_v17 = vpack.c.bf16 %v1593_v20, %v1591_v32 }
 0x32e   : > { %2862 = vmatpush1.bf16.msra.mxu0 %v2861_v57  ;;  %v2881_v57 = vpack.c.bf16 %v1592_v33, %v1590_v48 }
 0x32f   : > { %2864 = vmatprep.subr.bf16.mxu0 %v2863_v49  ;;  %v2883_v49 = vpack.c.bf16 %v1597_v46, %v1595_v25 }
 0x332   : > { %2866 = vmatpush1.bf16.msra.mxu0 %v2865_v61  ;;  %v2885_v61 = vpack.c.bf16 %v1596_v58, %v1594_v63 }
 0x333   : > { %2868 = vmatprep.subr.bf16.mxu0 %v2867_v60  ;;  %v2887_v60 = vpack.c.bf16 %v1601_v53, %v1599_v42 }
 0x336   : > { %2870 = vmatpush1.bf16.msra.mxu0 %v2869_v9  ;;  %v2889_v9 = vpack.c.bf16 %v1600_v0, %v1598_v44 }
 0x337   : > { %2872 = vmatprep.subr.bf16.mxu0 %v2871_v15  ;;  %v2891_v15 = vpack.c.bf16 %v1605_v50, %v1603_v56 }
 0x33a   : > { %2874 = vmatpush1.bf16.msra.mxu0 %v2873_v18 }
 0x33b   : > { %2876 = vmatprep.subr.bf16.mxu0 %v2875_v7 }
 0x33e   : > { %2878 = vmatpush1.bf16.msra.mxu0 %v2877_v30 }
 0x33f   : > { %2880 = vmatprep.subr.bf16.mxu0 %v2879_v17 }
 0x342   : > { %2882 = vmatpush1.bf16.msra.mxu0 %v2881_v57 }
 0x343   : > { %2884 = vmatprep.subr.bf16.mxu0 %v2883_v49 }
 0x346   : > { %2886 = vmatpush1.bf16.msra.mxu0 %v2885_v61 }
 0x347   : > { %2888 = vmatprep.subr.bf16.mxu0 %v2887_v60 }
 0x34a   : > { %2890 = vmatpush1.bf16.msra.mxu0 %v2889_v9 }
 0x34b   : > { %2892 = vmatprep.subr.bf16.mxu0 %v2891_v15 }
 0x34e   : > { %2894 = vmatpush1.bf16.msra.mxu0 %v2893_v45 }
 0x34f   : > { %2896 = vmatprep.subr.bf16.mxu0 %v4432_v14 }
 0x351   : > { %2242 = vmatmul.mubr.msk.f32.vlgmr.msra.gmra.mrb[14].mxu0 %vm4589_vm5, %v4584_v16 }
 0x352   : > { %2243 = vmatprep.mubr.msk.f32.mxu0 %vm4597_vm6, %v4606_v39  ;;  %2898 = vmatpush1.bf16.msra.mxu0 %v4435_v27 }
 0x353   : > { %2900 = vmatprep.subr.bf16.mxu0 %v4438_v6  ;;  %v4980_v6 = vld [vmem:[#allocation37_spill] sm:$0xff] }
 0x355   : > { %2244 = vmatmul.mubr.msk.f32.gmra.mrb[18].mxu0 %vm4597_vm6, %v4601_v28 }
 0x356   : > { %2902 = vmatpush1.bf16.msra.mxu0 %v4442_v52  ;;  %1974 = vmatprep.mubr.f32.mxu0 %v4625_v13  ;;  %v4981_v52 = vld [vmem:[#allocation38_spill] sm:$0xff] }
 0x357   : > { %2904 = vmatprep.subr.bf16.mxu0 %v4445_v2  ;;  %v4982_v2 = vld [vmem:[#allocation39_spill] sm:$0xff] }
 0x35a   : > { %2906 = vmatpush1.bf16.msra.mxu0 %v4449_v21  ;;  %v4983_v21 = vld [vmem:[#allocation40_spill] sm:$0xff] }
 0x35b   : > { %2908 = vmatprep.subr.bf16.mxu0 %v4453_v12  ;;  %v4984_v12 = vld [vmem:[#allocation41_spill] sm:$0xff] }
 0x35e   : > { %2910 = vmatpush1.bf16.msra.mxu0 %v4457_v59 }
 0x35f   : > { %2912 = vmatprep.subr.bf16.mxu0 %v4460_v55 }
 0x362   : > { %2914 = vmatpush1.bf16.msra.mxu0 %v4463_v29  ;;  %v3458_v29 = vmov 0.0  }
 0x363   : > { %2916 = vmatprep.subr.bf16.mxu0 %v4466_v24  ;;  %2033 = vst [vmem:[%s390_s29 + $0x8] sm:$0xff] %v3458_v29 }
 0x366   : > { %2918 = vmatpush1.bf16.msra.mxu0 %v4469_v35 }
 0x367   : > { %2920 = vmatprep.subr.bf16.mxu0 %v4472_v43  ;;  %v1991_v43 = vld [vmem:[#allocation12] sm:$0x3] }
 0x36a   : > { %2922 = vmatpush1.bf16.msra.mxu0 %v4475_v54  ;;  %v4985_v54 = vld [vmem:[#allocation42_spill] sm:$0xff] }
 0x36b   : > { %2924 = vmatprep.subr.bf16.mxu0 %v4478_v26  ;;  %v4986_v26 = vsub.s32 1, %v4985_v54  ;;  %vm2024_vm0 = vcmp.lt.s32.totalorder %v4985_v54, 4 }
 0x36e   : > { %2926 = vmatpush1.bf16.msra.mxu0 %v4481_v40  ;;  %v2000_v40 = vrot.slane %v1991_v43, %v4986_v26 }
 0x36f   : > { %2928 = vmatprep.subr.bf16.mxu0 %v4484_v23 }
 0x370   : > { %v1982_v14 = vpop.f32.mrb[20].mxu1 }
 0x371   : > { %v1984_v27 = vpop.f32.mrb[21].mxu1 }
 0x372   : > { %2930 = vmatpush1.bf16.msra.mxu0 %v4487_v31 }
 0x373   : > { %2932 = vmatprep.subr.bf16.mxu0 %v4490_v51 }
 0x376   : > { %2934 = vmatpush1.bf16.msra.mxu0 %v4493_v19 }
 0x377   : > { %2936 = vmatprep.subr.bf16.mxu0 %v4496_v22 }
 0x37a   : > { %2938 = vmatpush1.bf16.msra.mxu0 %v4499_v62 }
 0x37b   : > { %2940 = vmatprep.subr.bf16.mxu0 %v4502_v34  ;;  %v4987_v34 = vsub.s32 0, %v4985_v54 }
 0x37e   : > { %2942 = vmatpush1.bf16.msra.mxu0 %v4505_v10  ;;  %v1996_v10 = vrot.slane %v1991_v43, %v4987_v34 }
 0x37f   : > { %2944 = vmatprep.subr.bf16.mxu0 %v4508_v1 }
 0x382   : > { %2946 = vmatpush1.bf16.msra.mxu0 %v4511_v4 }
 0x383   : > { %2948 = vmatprep.subr.bf16.mxu0 %v4514_v38 }
 0x386   : > { %2950 = vmatpush1.bf16.msra.mxu0 %v4980_v6 }
 0x387   : > { %2952 = vmatprep.subr.bf16.mxu0 %v4981_v52 }
 0x38a   : > { %2954 = vmatpush1.bf16.msra.mxu0 %v4982_v2 }
 0x38b   : > { %2956 = vmatprep.subr.bf16.mxu0 %v4983_v21 }
 0x38e   : > { %2958 = vmatpush1.bf16.msra.mxu0 %v4984_v12 }
 0x391   : > { %1975 = vmatmul.mubr.f32.vlgmr.msra.gmra.mrb[14].mxu0 %v4622_v41 }
 0x3e8   : > { %v1743_v59 = vpop.f32.mrb[16].mxu0 }
 0x3e9   : > { %v1745_v55 = vpop.f32.mrb[17].mxu0 }
 0x428   : > { %v1820_v24 = vpop.f32.mrb[18].mxu0 }
 0x429   : > { %v1822_v35 = vpop.f32.mrb[19].mxu0 }
 0x464   : > { %v1976_v23 = vpop.f32.mrb[14].mxu0 }
 0x465   : > { %v1978_v31 = vpop.f32.mrb[15].mxu0  ;;  %v2003_v1 = vadd.f32 %v1996_v10, %v1976_v23 }
 0x466   : > { %v2004_v51 = vadd.f32 %v2000_v40, %v1978_v31 }
 0x468   : > { %v2245_v19 = vmul.f32 -1.442695, %v2004_v51 }
 0x46a   : > { %3170 = vpow2.f32 %v2245_v19 }
 0x474   : > { %v3171_v22 = vpop.eup %3170 }
 0x475   : > { %v2013_v62 = vadd.f32 1.0, %v3171_v22 }
 0x477   : > { %3172 = vrcp.f32 %v2013_v62 }
 0x481   : > { %v3173_v4 = vpop.eup %3172 }
 0x482   : > { %v2019_v38 = vmul.f32 %v3173_v4, %v2003_v1 }
 0x484   : > { %v2030_v16 = vsel %vm2024_vm0, %v2019_v38, 0.0 }
 0x485   : > { %2032 = vst [vmem:[%s390_s29] sm:$0xff] %v2030_v16 }
 0x486   : > { %3361 = shalt.err (!%p3358_p6)
}
 0x487   : > { %s3362_s11 = scalar_lea.hbm %s4709_s15, 256  ;;  %s3366_s9 = scalar_lea.hbm %s4766_s6, 512 }
 0x488   : > { %p3363_p11 = scmp.ne.s32.totalorder %s4709_s15, %s3362_s11  ;;  %p3367_p2 = scmp.lt.u32.totalorder %s4709_s15, %s4766_s6 }
 0x489   : > { %p3368_p13 = scmp.lt.u32.totalorder %s3366_s9, %s3362_s11  ;;  %p3370_p1 = scmp.lt.u32.totalorder %s3362_s11, %s4709_s15 }
 0x48a   : > { %p3364_p9 = pnand %p3363_p11, %p3668_p5 }
 0x48b   : > { %p3369_p4 = por %p3368_p13, %p3367_p2 }
 0x48c   : > { %p3365_p0 = pneg %p3364_p9 }
 0x48d   : > { %p3371_p8 = por %p3370_p1, %p3369_p4 }
 0x48f   : > { %p3372_p10 = pnand %p3371_p8, %p3365_p0 }
 0x491   : > { %3375 = shalt.err (!%p3372_p10)
}
 0x492   : > { %s3460_s2 = smov 128   ;;  %s3461_s27 = smov 8  }
 0x493   : > { %3035 = dma.vmem_to_hbm [thread:$0]  (%p3668_p5), %s4711_s21, 256, %s4709_s15, %s2035_s3, %s3460_s2, %s3460_s2, %s3461_s27  }
 0x494 PF: > { %s4988_s29 = sld [smem:[#allocation21_spill]]  ;;  %s4989_s4 = sld [smem:[#allocation22_spill]] }
 0x495   : > { %p4991_p7 = scmp.ge.s32.totalorder %s3446_s26, 2 }
 0x49a   : > { %s2065_s28 = sand.u32 1, %s4988_s29   ;;  %p4990_p3 = scmp.ne.s32.totalorder %s4989_s4, 0 }
 0x49b   : > { %s2066_s30 = scalar_lea.sflag [#allocation5], %s2065_s28 }
 0x49c   : > { %p3058_p12 = pnand %p4991_p7, %p4990_p3 }
 0x49e   : > { %3421 = dma.done.wait (!%p3058_p12), %s2066_s30, 256  }
 0x49f   : > { %3423 = vsyncadd (!%p3058_p12), %s2066_s30, 4294967040  ;;  %s27_s26 = sadd.s32 1, %s3446_s26   ;;  %s4992_s21 = smov %s3430_s22 }
 0x4a0   : > { %p24_p6 = scmp.ge.s32.totalorder %s27_s26, 4   ;;  %s4993_s22 = smov %s3434_s23 }
 0x4a1   : > { %s4994_s23 = smov %s3679_s18  ;;  %s4995_s24 = smov %s3442_s25 }
 0x4a2   : > { %s4996_s25 = smov %s4998_s20  ;;  %26 = sbr.rel (!%p24_p6) target bundleno = 14 (0xe), region = 121 }
 0x4a9   :  { %2071 = vsyncpa [#allocation4], 1 }
 0x4aa   :  { %2073 = vsyncpa [#allocation4 + $0x1], 1 }
 0x4ab   :  { %2074 = vsyncpa [#allocation7], 1 }
 0x4ac   :  { %2076 = vsyncpa [#allocation7 + $0x1], 1 }
 0x4ad   :  { %2077 = vsyncpa [#allocation10], 1 }
 0x4ae   :  { %2078 = vsyncpa [#allocation13], 1 }
 0x4af   :  { %2079 = vsyncpa [#allocation5], 1 }
 0x4b0   :  { %2081 = vsyncpa [#allocation5 + $0x1], 1 }

</bundles_post_ra>
